<compile_context>
chip_gen: v5e
topology: v5e:2x2
jax: 0.10.0
libtpu: 0.0.40
codegen_flags: <defaults>
</compile_context>

<pallas_src>
import functools

import jax
import jax.numpy as jnp
from jax.experimental import pallas as pl
from jax.experimental.pallas import tpu as pltpu


def _vmem_limit_bytes() -> int:
    """Generation-aware scoped-VMEM limit: ~75% of physical VMEM, capped, with fallback."""
    try:
        cap = getattr(pltpu.get_tpu_info(), "vmem_capacity_bytes", None)
        if cap:
            return max(32 * 1024 * 1024, min(int(cap) * 3 // 4, 100 * 1024 * 1024))
    except Exception:
        pass
    return 48 * 1024 * 1024


def _choose_tile(dim: int, cap: int, align: int) -> int:
    """Largest tile <= cap that divides `dim` (multiple of `align`); `dim` itself if small."""
    if dim <= cap:
        return dim
    start = (cap // align) * align
    for t in range(start, align - 1, -align):
        if dim % t == 0:
            return t
    return dim


# ----------------------------------------------------------------------------
# Kernel 1: K-tiled dense projection  y = x @ W + b
# ----------------------------------------------------------------------------
def _linear_kernel(x_ref, w_ref, b_ref, o_ref, acc_ref):
    k = pl.program_id(2)

    @pl.when(k == 0)
    def _():
        acc_ref[...] = jnp.zeros_like(acc_ref)

    acc_ref[...] += jnp.dot(x_ref[...], w_ref[...],
                            preferred_element_type=jnp.float32)

    @pl.when(k == pl.num_programs(2) - 1)
    def _():
        o_ref[...] = (acc_ref[...] + b_ref[...].astype(jnp.float32)).astype(o_ref.dtype)


def linear(x, w, b, *, tm_cap=512, tn_cap=512, tk_cap=512):
    # x: [T, K], w: [K, N], b: [1, N] -> [T, N]
    T, K = x.shape
    K2, N = w.shape
    assert K == K2 and b.shape == (1, N)

    tm = _choose_tile(T, tm_cap, 8)
    tn = _choose_tile(N, tn_cap, 128)
    tk = _choose_tile(K, tk_cap, 128)
    grid = (T // tm, N // tn, K // tk)

    itemsize = jnp.dtype(x.dtype).itemsize
    cost = pl.CostEstimate(
        flops=2 * T * K * N,
        transcendentals=0,
        bytes_accessed=(T * K + K * N + T * N + N) * itemsize,
    )

    return pl.pallas_call(
        _linear_kernel,
        out_shape=jax.ShapeDtypeStruct((T, N), x.dtype),
        grid=grid,
        in_specs=[
            pl.BlockSpec((tm, tk), lambda i, j, k: (i, k)),
            pl.BlockSpec((tk, tn), lambda i, j, k: (k, j)),
            pl.BlockSpec((1, tn), lambda i, j, k: (0, j)),
        ],
        out_specs=pl.BlockSpec((tm, tn), lambda i, j, k: (i, j)),
        scratch_shapes=[pltpu.VMEM((tm, tn), jnp.float32)],
        compiler_params=pltpu.CompilerParams(
            dimension_semantics=("parallel", "parallel", "arbitrary"),
            vmem_limit_bytes=_vmem_limit_bytes(),
        ),
        cost_estimate=cost,
    )(x, w, b)


# ----------------------------------------------------------------------------
# Kernel 2: flash-style multi-query causal attention.
#   * One grid step per VALID (qi, kv<=qi) tile pair (flattened lower-triangle schedule,
#     scalar-prefetched qi/kv index arrays) -> no empty steps.
#   * All H heads processed per step (Q/acc span the full [tq, H*D] slab, shared K/V tile).
#   * Softmax scale pre-folded into the Q projection -> no in-kernel scaling.
# ----------------------------------------------------------------------------
def _mqa_flash_kernel(qi_ids_ref, kv_ids_ref, q_ref, k_ref, v_ref, o_ref,
                      m_ref, l_ref, acc_ref, *, num_heads, head_dim):
    s_idx = pl.program_id(0)
    qi = qi_ids_ref[s_idx]
    kv = kv_ids_ref[s_idx]
    H, D = num_heads, head_dim

    @pl.when(kv == 0)
    def _():
        m_ref[...] = jnp.full_like(m_ref, -1e30)
        l_ref[...] = jnp.zeros_like(l_ref)
        acc_ref[...] = jnp.zeros_like(acc_ref)

    k_tile = k_ref[...]                                   # (tkv, D), shared by all heads
    v_tile = v_ref[...]                                   # (tkv, D)

    def step(masked):
        tq = q_ref.shape[0]
        tkv = k_tile.shape[0]
        if masked:
            # Diagonal tile only (tq == tkv, qi == kv -> purely local mask).
            row = jax.lax.broadcasted_iota(jnp.int32, (tq, tkv), 0)
            col = jax.lax.broadcasted_iota(jnp.int32, (tq, tkv), 1)
            mask = col <= row
        # Heads are unrolled: MQA shares K/V, only Q / running stats differ per head.
        for h in range(H):
            q_h = q_ref[:, h * D:(h + 1) * D]             # (tq, D), scale already folded in
            s = jax.lax.dot_general(q_h, k_tile, (((1,), (1,)), ((), ())),
                                    preferred_element_type=jnp.float32)   # (tq, tkv)
            if masked:
                s = jnp.where(mask, s, -1e30)
            m_prev = m_ref[h]                             # (tq, 128), lane-replicated
            m_new = jnp.maximum(m_prev, jnp.max(s, axis=-1, keepdims=True))
            alpha = jnp.exp(m_prev - m_new)               # (tq, 128), lanes equal
            p = jnp.exp(s - m_new[:, :1])                 # (tq, tkv)
            l_ref[h] = alpha * l_ref[h] + jnp.sum(p, axis=-1, keepdims=True)
            acc_ref[:, h * D:(h + 1) * D] = (
                alpha[:, :1] * acc_ref[:, h * D:(h + 1) * D]
                + jnp.dot(p.astype(v_tile.dtype), v_tile,
                          preferred_element_type=jnp.float32))
            m_ref[h] = m_new

    @pl.when(kv < qi)        # strictly-below-diagonal tiles: no mask work at all
    def _():
        step(masked=False)

    @pl.when(kv == qi)       # diagonal tile: masked, and it is the last kv for this qi
    def _():
        step(masked=True)
        for h in range(H):
            inv_l = pl.reciprocal(l_ref[h][:, :1], approx=True)
            o_ref[:, h * D:(h + 1) * D] = (
                acc_ref[:, h * D:(h + 1) * D] * inv_l).astype(o_ref.dtype)


def mqa_attention(qkv, num_heads, head_dim, *, block=256):
    # qkv: [T, H*D + 2*D] (fused projection; Q columns pre-scaled) -> [T, H*D]
    T = qkv.shape[0]
    H, D = num_heads, head_dim
    hidden = H * D
    assert qkv.shape[1] == hidden + 2 * D
    assert D % 128 == 0, "head_dim must be lane-aligned (multiple of 128)"

    tq = min(block, T)
    assert T % tq == 0, "pad T to a multiple of the attention block in the caller"
    nq = T // tq

    # Flattened lower-triangle schedule; kv innermost so each output block's visits
    # are consecutive (resident accumulator / single writeback per qi).
    qi_list, kv_list = [], []
    for q_blk in range(nq):
        for k_blk in range(q_blk + 1):
            qi_list.append(q_blk)
            kv_list.append(k_blk)
    qi_ids = jnp.asarray(qi_list, dtype=jnp.int32)
    kv_ids = jnp.asarray(kv_list, dtype=jnp.int32)
    num_steps = nq * (nq + 1) // 2

    kernel = functools.partial(_mqa_flash_kernel, num_heads=H, head_dim=D)

    itemsize = jnp.dtype(qkv.dtype).itemsize
    cost = pl.CostEstimate(
        flops=2 * H * T * T * D,                 # QK^T + PV, causal-halved (approx)
        transcendentals=H * T * T // 2,
        bytes_accessed=(T * (hidden + 2 * D) + T * hidden) * itemsize,
    )

    grid_spec = pltpu.PrefetchScalarGridSpec(
        num_scalar_prefetch=2,
        grid=(num_steps,),
        in_specs=[
            # Q: all heads' columns of the fused projection, lane-dense read.
            pl.BlockSpec((tq, hidden), lambda s, qi_r, kv_r: (qi_r[s], 0)),
            # Shared K / V columns (multi-query).
            pl.BlockSpec((tq, D), lambda s, qi_r, kv_r: (kv_r[s], H)),
            pl.BlockSpec((tq, D), lambda s, qi_r, kv_r: (kv_r[s], H + 1)),
        ],
        # Output written directly as the lane-dense [T, H*D] slab.
        out_specs=pl.BlockSpec((tq, hidden), lambda s, qi_r, kv_r: (qi_r[s], 0)),
        scratch_shapes=[
            pltpu.VMEM((H, tq, 128), jnp.float32),   # running max (lane-wide per head)
            pltpu.VMEM((H, tq, 128), jnp.float32),   # running denominator
            pltpu.VMEM((tq, hidden), jnp.float32),   # running output accumulator (all heads)
        ],
    )

    # TODO(synk): on v7x, split the flattened schedule into two balanced halves across the
    # 2 TensorCores; with a single "arbitrary" axis the attention runs on one core.
    return pl.pallas_call(
        kernel,
        out_shape=jax.ShapeDtypeStruct((T, hidden), qkv.dtype),
        grid_spec=grid_spec,
        compiler_params=pltpu.CompilerParams(
            dimension_semantics=("arbitrary",),
            vmem_limit_bytes=_vmem_limit_bytes(),
        ),
        cost_estimate=cost,
    )(qi_ids, kv_ids, qkv, qkv, qkv)


# ----------------------------------------------------------------------------
# Module wrapper mirroring GPTBigCodeAttention (multi_query=True, TP world size 1).
# ----------------------------------------------------------------------------
class GPTBigCodeAttentionPallas:
    ATTN_BLOCK = 256

    def __init__(self, hidden_size, num_attention_heads, key, dtype=jnp.float32):
        assert hidden_size % num_attention_heads == 0
        self.hidden_size = hidden_size
        self.num_heads = num_attention_heads
        self.head_dim = hidden_size // num_attention_heads
        assert self.head_dim % 128 == 0
        self.kv_dim = self.head_dim               # multi-query: one shared KV head
        self.scale = self.head_dim ** (-0.5)

        ks = jax.random.split(key, 6)
        init = lambda k, shape: (0.02 * jax.random.normal(k, shape)).astype(dtype)
        # Original (unscaled) parameters, kept for the pure-JAX reference.
        self.wq = init(ks[0], (hidden_size, hidden_size))
        self.bq = init(ks[1], (1, hidden_size))
        self.wkv = init(ks[2], (hidden_size, 2 * self.kv_dim))
        self.bkv = init(ks[3], (1, 2 * self.kv_dim))
        self.wproj = init(ks[4], (hidden_size, hidden_size))
        self.bproj = init(ks[5], (1, hidden_size))

        # Fused c_attn_q + c_attn_kv (one projection kernel) with the softmax scale
        # folded into the Q columns -> no per-step Q scaling in the attention kernel.
        scale = jnp.asarray(self.scale, dtype)
        self.wqkv = jnp.concatenate([self.wq * scale, self.wkv], axis=1)  # [h, h + 2D]
        self.bqkv = jnp.concatenate([self.bq * scale, self.bkv], axis=1)  # [1, h + 2D]

    def __call__(self, hidden_states):
        # hidden_states: [num_tokens, hidden_size]
        T = hidden_states.shape[0]
        blk = self.ATTN_BLOCK
        T_pad = ((T + blk - 1) // blk) * blk
        x = hidden_states
        if T_pad != T:
            # Pad tokens once at the top; padded rows are causally invisible to real rows.
            x = jnp.pad(x, ((0, T_pad - T), (0, 0)))

        # Fused c_attn_q + c_attn_kv: one HBM pass over the activations.
        qkv = linear(x, self.wqkv, self.bqkv)                 # [T_pad, hidden + 2*D]
        # TODO(synk): paged KV-cache write/read (vLLM decode path with block tables /
        # InputMetadata) is not modeled; this is the prompt-phase causal attention.
        attn = mqa_attention(qkv, self.num_heads, self.head_dim, block=blk)  # [T_pad, hidden]
        out = linear(attn, self.wproj, self.bproj)            # [T_pad, hidden]
        if T_pad != T:
            out = out[:T]
        return out


# ----------------------------------------------------------------------------
# Pure-JAX reference (standard GPTBigCode MQA math) for a correctness check.
# ----------------------------------------------------------------------------
def _reference(x, mod):
    q = x @ mod.wq + mod.bq
    kv = x @ mod.wkv + mod.bkv
    k = kv[:, :mod.head_dim]
    v = kv[:, mod.head_dim:]
    H, D = mod.num_heads, mod.head_dim
    hidden = H * D
    T = x.shape[0]
    qh = q.reshape(T, H, D).transpose(1, 0, 2).astype(jnp.float32)
    s = jnp.einsum("htd,sd->hts", qh, k.astype(jnp.float32)) * mod.scale
    mask = jnp.tril(jnp.ones((T, T), dtype=bool))
    s = jnp.where(mask[None], s, -jnp.inf)
    p = jax.nn.softmax(s, axis=-1)
    o = jnp.einsum("hts,sd->htd", p, v.astype(jnp.float32))
    o = o.transpose(1, 0, 2).reshape(T, hidden).astype(x.dtype)
    return o @ mod.wproj + mod.bproj


if __name__ == "__main__":
    # Small but TPU-lane-aligned shapes (head_dim = 128, 2 query tiles of 256) so the
    # flattened lower-triangle schedule exercises interior (unmasked), diagonal (masked)
    # and multi-qi output-writeback paths.
    hidden_size = 256
    num_heads = 2          # head_dim = 128
    seq_len = 512

    key = jax.random.PRNGKey(0)
    k_params, k_x = jax.random.split(key)

    module = GPTBigCodeAttentionPallas(hidden_size, num_heads, k_params)
    hidden_states = jax.random.normal(k_x, (seq_len, hidden_size), dtype=jnp.float32)

    out = module(hidden_states)
    out = jax.block_until_ready(out)
    assert out.shape == (seq_len, hidden_size)
    assert bool(jnp.all(jnp.isfinite(out)))

    ref = _reference(hidden_states, module)
    err = float(jnp.max(jnp.abs(out - ref)))
    assert err < 2e-2, f"max abs error vs reference: {err}"
    print("KERNEL_OK")
</pallas_src>

<mosaic_0001>
module attributes {stable_mosaic.version = 11 : i64} {
  func.func @_linear_kernel(%arg0: i32, %arg1: i32, %arg2: i32, %arg3: memref<512x256xf32, #tpu.memory_space<vmem>>, %arg4: memref<256x512xf32, #tpu.memory_space<vmem>>, %arg5: memref<1x512xf32, #tpu.memory_space<vmem>>, %arg6: memref<512x512xf32, #tpu.memory_space<vmem>>, %arg7: memref<512x512xf32, #tpu.memory_space<vmem>>) attributes {dimension_semantics = [#tpu.dimension_semantics<parallel>, #tpu.dimension_semantics<parallel>, #tpu.dimension_semantics<arbitrary>], iteration_bounds = array<i64: 1, 1, 1>, scalar_prefetch = 0 : i64, scratch_operands = 1 : i64, tpu.core_type = #tpu.core_type<tc>, window_params = [{transform_indices = @transform_0, window_bounds = array<i64: 512, 256>}, {transform_indices = @transform_1, window_bounds = array<i64: 256, 512>}, {transform_indices = @transform_2, window_bounds = array<i64: 1, 512>}, {transform_indices = @transform_3, window_bounds = array<i64: 512, 512>}]} {
    %c0_i32 = arith.constant 0 : i32
    %0 = arith.cmpi eq, %arg2, %c0_i32 : i32
    %1 = arith.extui %0 : i1 to i32
    %c0_i32_0 = arith.constant 0 : i32
    %2 = arith.cmpi ne, %1, %c0_i32_0 : i32
    scf.if %2 {
      %cst_10 = arith.constant 0.000000e+00 : f32
      %12 = vector.broadcast %cst_10 : f32 to vector<512x512xf32>
      %c0_11 = arith.constant 0 : index
      %c0_12 = arith.constant 0 : index
      %13 = vector.load %arg7[%c0_11, %c0_12] : memref<512x512xf32, #tpu.memory_space<vmem>>, vector<512x512xf32>
      tpu.vector_store %arg7[%c0_11, %c0_12], %12 {strides = array<i32>} : memref<512x512xf32, #tpu.memory_space<vmem>>, vector<512x512xf32>,
    } else {
    }
    %c0 = arith.constant 0 : index
    %c0_1 = arith.constant 0 : index
    %3 = vector.load %arg7[%c0, %c0_1] : memref<512x512xf32, #tpu.memory_space<vmem>>, vector<512x512xf32>
    %c0_2 = arith.constant 0 : index
    %c0_3 = arith.constant 0 : index
    %4 = vector.load %arg3[%c0_2, %c0_3] : memref<512x256xf32, #tpu.memory_space<vmem>>, vector<512x256xf32>
    %c0_4 = arith.constant 0 : index
    %c0_5 = arith.constant 0 : index
    %5 = vector.load %arg4[%c0_4, %c0_5] : memref<256x512xf32, #tpu.memory_space<vmem>>, vector<256x512xf32>
    %cst = arith.constant dense<0.000000e+00> : vector<512x512xf32>
    %6 = tpu.matmul %4, %5, %cst {dimension_numbers = #tpu.dot_dimension_numbers<[1], [0], [0], [1], [0, 0, 1, 1], [], []>} : vector<512x256xf32>, vector<256x512xf32>, vector<512x512xf32> -> vector<512x512xf32>
    %7 = arith.addf %3, %6 : vector<512x512xf32>
    %c0_6 = arith.constant 0 : index
    %c0_7 = arith.constant 0 : index
    %8 = vector.load %arg7[%c0_6, %c0_7] : memref<512x512xf32, #tpu.memory_space<vmem>>, vector<512x512xf32>
    tpu.vector_store %arg7[%c0_6, %c0_7], %7 {strides = array<i32>} : memref<512x512xf32, #tpu.memory_space<vmem>>, vector<512x512xf32>,
    %c0_i32_8 = arith.constant 0 : i32
    %9 = arith.cmpi eq, %arg2, %c0_i32_8 : i32
    %10 = arith.extui %9 : i1 to i32
    %c0_i32_9 = arith.constant 0 : i32
    %11 = arith.cmpi ne, %10, %c0_i32_9 : i32
    scf.if %11 {
      %c0_10 = arith.constant 0 : index
      %c0_11 = arith.constant 0 : index
      %12 = vector.load %arg7[%c0_10, %c0_11] : memref<512x512xf32, #tpu.memory_space<vmem>>, vector<512x512xf32>
      %c0_12 = arith.constant 0 : index
      %c0_13 = arith.constant 0 : index
      %13 = vector.load %arg5[%c0_12, %c0_13] : memref<1x512xf32, #tpu.memory_space<vmem>>, vector<1x512xf32>
      %14 = vector.broadcast %13 : vector<1x512xf32> to vector<512x512xf32>
      %15 = arith.addf %12, %14 : vector<512x512xf32>
      %c0_14 = arith.constant 0 : index
      %c0_15 = arith.constant 0 : index
      %16 = vector.load %arg6[%c0_14, %c0_15] : memref<512x512xf32, #tpu.memory_space<vmem>>, vector<512x512xf32>
      tpu.vector_store %arg6[%c0_14, %c0_15], %15 {strides = array<i32>} : memref<512x512xf32, #tpu.memory_space<vmem>>, vector<512x512xf32>,
    } else {
    }
    return
  }
  func.func @transform_0(%arg0: i32, %arg1: i32, %arg2: i32) -> (i32, i32) {
    %c0_i32 = arith.constant 0 : i32
    return %arg0, %arg2 : i32, i32
  }
  func.func @transform_1(%arg0: i32, %arg1: i32, %arg2: i32) -> (i32, i32) {
    %c0_i32 = arith.constant 0 : i32
    return %arg2, %arg1 : i32, i32
  }
  func.func @transform_2(%arg0: i32, %arg1: i32, %arg2: i32) -> (i32, i32) {
    %c0_i32 = arith.constant 0 : i32
    %c0_i32_0 = arith.constant 0 : i32
    return %c0_i32, %arg1 : i32, i32
  }
  func.func @transform_3(%arg0: i32, %arg1: i32, %arg2: i32) -> (i32, i32) {
    %c0_i32 = arith.constant 0 : i32
    return %arg0, %arg1 : i32, i32
  }
}

</mosaic_0001>

<bundles_post_ra>
// kernel: tpu_custom_call.1
= control target key start
LH: loop header
LB: loop body
LE: loop exit
PB: predicated region body
PF: predicated region fallthrough
CT: control target
= control target key end

     0   :  { %8 = vsyncpa [#allocation4], 0  ;;  %s4366_s0 = inlined_call_operand.hbm [shape: f32[512,256], index: 0, kind: input, shape index: {}]   ;;  %s4367_s1 = inlined_call_operand.hbm [shape: f32[256,512], index: 1, kind: input, shape index: {}]   ;;  %s4368_s2 = inlined_call_operand.hbm [shape: f32[1,512], index: 2, kind: input, shape index: {}]   ;;  %s4369_s3 = inlined_call_operand.hbm [shape: f32[512,512], index: 3, kind: output, shape index: {}]  }
   0x1   :  { %9 = vsyncpa [#allocation7], 0  ;;  %s28_s14 = sshll.u32 %s4367_s1, 4  ;;  %s29_s14 = int_to_ptr.hbm [resolvable:$true] %s28_s14 }
   0x2   :  { %10 = vsyncpa [#allocation5], 0  ;;  %s4056_s15 = smov [#allocation6]   ;;  %s15_s19 = sshll.u32 %s4366_s0, 4  ;;  %s16_s19 = int_to_ptr.hbm [resolvable:$true] %s15_s19 }
   0x3   :  { %s30_s16 = sshll.u32 %s4056_s15, 4  ;;  %s4057_s20 = smov 512   ;;  %s31_s16 = int_to_ptr.vmem [resolvable:$true] %s30_s16 }
   0x4   :  { %s4058_s21 = smov 32   ;;  %s4059_s22 = smov [#allocation3]  }
   0x5   :  { %36 = dma.hbm_to_vmem [thread:$0]  %s29_s14, 16384, %s31_s16, [#allocation7], %s4057_s20, %s4057_s20, %s4058_s21  }
   0x6   :  { %s17_s23 = sshll.u32 %s4059_s22, 4  ;;  %s4060_s1 = smov 256   ;;  %s18_s23 = int_to_ptr.vmem [resolvable:$true] %s17_s23 }
   0x7   :  { %s4061_s24 = smov 16   ;;  %s42_s27 = sshll.u32 %s4368_s2, 4  ;;  %s43_s27 = int_to_ptr.hbm [resolvable:$true] %s42_s27 }
   0x8   :  { %23 = dma.hbm_to_vmem [thread:$0]  %s16_s19, 16384, %s18_s23, [#allocation4], %s4060_s1, %s4060_s1, %s4061_s24  }
   0x9   :  { %s4062_s28 = smov [#allocation8]  }
   0xa   :  { %s44_s0 = sshll.u32 %s4062_s28, 4  ;;  %s45_s0 = int_to_ptr.vmem [resolvable:$true] %s44_s0 }
   0xb   :  { %47 = dma.hbm_to_vmem [thread:$0]  %s43_s27, 64, %s45_s0, [#allocation7]  }
   0xc   :  { %4050 = dma.done.wait [#allocation4], 16384  }
   0xd   :  { %4051 = vsyncadd [#allocation4], 4294950912 }
   0xe   :  { %4052 = dma.done.wait [#allocation7], 16448  }
   0xf   :  { %4053 = vsyncadd [#allocation7], 4294950848  ;;  %v765_v0 = vld [vmem:[#allocation6 + $0x1e8] sm:$0xff]  ;;  %v764_v6 = vld [vmem:[#allocation6 + $0x1e0] sm:$0xff]  ;;  %s4063_s2 = smov [#allocation9]   ;;  %s3803_s5 = sshll.u32 %s4369_s3, 4  ;;  %s3804_s5 = int_to_ptr.hbm [resolvable:$true] %s3803_s5 }
  0x10   :  { %v829_v1 = vld [vmem:[#allocation6 + $0x3e8] sm:$0xff]  ;;  %1250 = vmatpush.msra.mxu2 %v765_v0  ;;  %v828_v7 = vld [vmem:[#allocation6 + $0x3e0] sm:$0xff]  ;;  %832 = vmatpush.msra.mxu0 %v764_v6  ;;  %v767_v62 = vld [vmem:[#allocation6 + $0x1f8] sm:$0xff]  ;;  %s3801_s29 = sshll.u32 %s4063_s2, 4  ;;  %s3802_s29 = int_to_ptr.vmem [resolvable:$true] %s3801_s29 }
  0x11   :  { %v761_v2 = vld [vmem:[#allocation6 + $0x1c8] sm:$0xff]  ;;  %1459 = vmatpush.msra.mxu3 %v829_v1  ;;  %v760_v8 = vld [vmem:[#allocation6 + $0x1c0] sm:$0xff]  ;;  %1041 = vmatpush.msra.mxu1 %v828_v7  ;;  %v831_v63 = vld [vmem:[#allocation6 + $0x3f8] sm:$0xff] }
  0x12   :  { %v825_v3 = vld [vmem:[#allocation6 + $0x3c8] sm:$0xff]  ;;  %1251 = vmatpush.msra.mxu2 %v761_v2  ;;  %v824_v9 = vld [vmem:[#allocation6 + $0x3c0] sm:$0xff]  ;;  %833 = vmatpush.msra.mxu0 %v760_v8  ;;  %v763_v2 = vld [vmem:[#allocation6 + $0x1d8] sm:$0xff] }
  0x13   :  { %v757_v4 = vld [vmem:[#allocation6 + $0x1a8] sm:$0xff]  ;;  %1460 = vmatpush.msra.mxu3 %v825_v3  ;;  %v756_v12 = vld [vmem:[#allocation6 + $0x1a0] sm:$0xff]  ;;  %1042 = vmatpush.msra.mxu1 %v824_v9  ;;  %v827_v3 = vld [vmem:[#allocation6 + $0x3d8] sm:$0xff] }
  0x14   :  { %v821_v5 = vld [vmem:[#allocation6 + $0x3a8] sm:$0xff]  ;;  %1252 = vmatpush.msra.mxu2 %v757_v4  ;;  %v820_v13 = vld [vmem:[#allocation6 + $0x3a0] sm:$0xff]  ;;  %834 = vmatpush.msra.mxu0 %v756_v12  ;;  %v766_v6 = vld [vmem:[#allocation6 + $0x1f0] sm:$0xff] }
  0x15   :  { %v753_v10 = vld [vmem:[#allocation6 + $0x188] sm:$0xff]  ;;  %1461 = vmatpush.msra.mxu3 %v821_v5  ;;  %v752_v16 = vld [vmem:[#allocation6 + $0x180] sm:$0xff]  ;;  %1043 = vmatpush.msra.mxu1 %v820_v13  ;;  %v830_v7 = vld [vmem:[#allocation6 + $0x3f0] sm:$0xff] }
  0x16   :  { %v817_v11 = vld [vmem:[#allocation6 + $0x388] sm:$0xff]  ;;  %1253 = vmatpush.msra.mxu2 %v753_v10  ;;  %v816_v17 = vld [vmem:[#allocation6 + $0x380] sm:$0xff]  ;;  %835 = vmatpush.msra.mxu0 %v752_v16  ;;  %v578_v8 = vld [vmem:[#allocation3 + $0x10] sm:$0xff] }
  0x17   :  { %v749_v14 = vld [vmem:[#allocation6 + $0x168] sm:$0xff]  ;;  %1462 = vmatpush.msra.mxu3 %v817_v11  ;;  %v748_v20 = vld [vmem:[#allocation6 + $0x160] sm:$0xff]  ;;  %1044 = vmatpush.msra.mxu1 %v816_v17  ;;  %v579_v9 = vld [vmem:[#allocation3 + $0x18] sm:$0xff] }
  0x18   :  { %v813_v15 = vld [vmem:[#allocation6 + $0x368] sm:$0xff]  ;;  %1254 = vmatpush.msra.mxu2 %v749_v14  ;;  %v812_v21 = vld [vmem:[#allocation6 + $0x360] sm:$0xff]  ;;  %836 = vmatpush.msra.mxu0 %v748_v20  ;;  %v762_v10 = vld [vmem:[#allocation6 + $0x1d0] sm:$0xff] }
  0x19   :  { %v745_v18 = vld [vmem:[#allocation6 + $0x148] sm:$0xff]  ;;  %1463 = vmatpush.msra.mxu3 %v813_v15  ;;  %v744_v24 = vld [vmem:[#allocation6 + $0x140] sm:$0xff]  ;;  %1045 = vmatpush.msra.mxu1 %v812_v21  ;;  %v826_v11 = vld [vmem:[#allocation6 + $0x3d0] sm:$0xff] }
  0x1a   :  { %v809_v19 = vld [vmem:[#allocation6 + $0x348] sm:$0xff]  ;;  %1255 = vmatpush.msra.mxu2 %v745_v18  ;;  %v808_v25 = vld [vmem:[#allocation6 + $0x340] sm:$0xff]  ;;  %837 = vmatpush.msra.mxu0 %v744_v24  ;;  %v582_v14 = vld [vmem:[#allocation3 + $0x30] sm:$0xff] }
  0x1b   :  { %v741_v22 = vld [vmem:[#allocation6 + $0x128] sm:$0xff]  ;;  %1464 = vmatpush.msra.mxu3 %v809_v19  ;;  %v740_v28 = vld [vmem:[#allocation6 + $0x120] sm:$0xff]  ;;  %1046 = vmatpush.msra.mxu1 %v808_v25  ;;  %v583_v15 = vld [vmem:[#allocation3 + $0x38] sm:$0xff] }
  0x1c   :  { %v805_v23 = vld [vmem:[#allocation6 + $0x328] sm:$0xff]  ;;  %1256 = vmatpush.msra.mxu2 %v741_v22  ;;  %v804_v29 = vld [vmem:[#allocation6 + $0x320] sm:$0xff]  ;;  %838 = vmatpush.msra.mxu0 %v740_v28  ;;  %v759_v18 = vld [vmem:[#allocation6 + $0x1b8] sm:$0xff] }
  0x1d   :  { %v737_v26 = vld [vmem:[#allocation6 + $0x108] sm:$0xff]  ;;  %1465 = vmatpush.msra.mxu3 %v805_v23  ;;  %v736_v32 = vld [vmem:[#allocation6 + $0x100] sm:$0xff]  ;;  %1047 = vmatpush.msra.mxu1 %v804_v29  ;;  %v823_v19 = vld [vmem:[#allocation6 + $0x3b8] sm:$0xff] }
  0x1e   :  { %v801_v27 = vld [vmem:[#allocation6 + $0x308] sm:$0xff]  ;;  %1257 = vmatpush.msra.mxu2 %v737_v26  ;;  %v800_v33 = vld [vmem:[#allocation6 + $0x300] sm:$0xff]  ;;  %839 = vmatpush.msra.mxu0 %v736_v32  ;;  %v586_v20 = vld [vmem:[#allocation3 + $0x50] sm:$0xff] }
  0x1f   :  { %v733_v30 = vld [vmem:[#allocation6 + $0xe8] sm:$0xff]  ;;  %1466 = vmatpush.msra.mxu3 %v801_v27  ;;  %v732_v36 = vld [vmem:[#allocation6 + $0xe0] sm:$0xff]  ;;  %1048 = vmatpush.msra.mxu1 %v800_v33  ;;  %v587_v21 = vld [vmem:[#allocation3 + $0x58] sm:$0xff] }
  0x20   :  { %v797_v31 = vld [vmem:[#allocation6 + $0x2e8] sm:$0xff]  ;;  %1258 = vmatpush.msra.mxu2 %v733_v30  ;;  %v796_v37 = vld [vmem:[#allocation6 + $0x2e0] sm:$0xff]  ;;  %840 = vmatpush.msra.mxu0 %v732_v36  ;;  %v758_v22 = vld [vmem:[#allocation6 + $0x1b0] sm:$0xff] }
  0x21   :  { %v729_v34 = vld [vmem:[#allocation6 + $0xc8] sm:$0xff]  ;;  %1467 = vmatpush.msra.mxu3 %v797_v31  ;;  %v728_v40 = vld [vmem:[#allocation6 + $0xc0] sm:$0xff]  ;;  %1049 = vmatpush.msra.mxu1 %v796_v37  ;;  %v822_v23 = vld [vmem:[#allocation6 + $0x3b0] sm:$0xff] }
  0x22   :  { %v793_v35 = vld [vmem:[#allocation6 + $0x2c8] sm:$0xff]  ;;  %1259 = vmatpush.msra.mxu2 %v729_v34  ;;  %v792_v41 = vld [vmem:[#allocation6 + $0x2c0] sm:$0xff]  ;;  %841 = vmatpush.msra.mxu0 %v728_v40  ;;  %v590_v26 = vld [vmem:[#allocation3 + $0x70] sm:$0xff] }
  0x23   :  { %v725_v38 = vld [vmem:[#allocation6 + $0xa8] sm:$0xff]  ;;  %1468 = vmatpush.msra.mxu3 %v793_v35  ;;  %v724_v44 = vld [vmem:[#allocation6 + $0xa0] sm:$0xff]  ;;  %1050 = vmatpush.msra.mxu1 %v792_v41  ;;  %v591_v27 = vld [vmem:[#allocation3 + $0x78] sm:$0xff] }
  0x24   :  { %v789_v39 = vld [vmem:[#allocation6 + $0x2a8] sm:$0xff]  ;;  %1260 = vmatpush.msra.mxu2 %v725_v38  ;;  %v788_v45 = vld [vmem:[#allocation6 + $0x2a0] sm:$0xff]  ;;  %842 = vmatpush.msra.mxu0 %v724_v44  ;;  %v755_v30 = vld [vmem:[#allocation6 + $0x198] sm:$0xff] }
  0x25   :  { %v721_v42 = vld [vmem:[#allocation6 + $0x88] sm:$0xff]  ;;  %1469 = vmatpush.msra.mxu3 %v789_v39  ;;  %v720_v48 = vld [vmem:[#allocation6 + $0x80] sm:$0xff]  ;;  %1051 = vmatpush.msra.mxu1 %v788_v45  ;;  %v819_v31 = vld [vmem:[#allocation6 + $0x398] sm:$0xff] }
  0x26   :  { %v785_v43 = vld [vmem:[#allocation6 + $0x288] sm:$0xff]  ;;  %1261 = vmatpush.msra.mxu2 %v721_v42  ;;  %v784_v49 = vld [vmem:[#allocation6 + $0x280] sm:$0xff]  ;;  %843 = vmatpush.msra.mxu0 %v720_v48  ;;  %v594_v32 = vld [vmem:[#allocation3 + $0x90] sm:$0xff] }
  0x27   :  { %v717_v46 = vld [vmem:[#allocation6 + $0x68] sm:$0xff]  ;;  %1470 = vmatpush.msra.mxu3 %v785_v43  ;;  %v716_v52 = vld [vmem:[#allocation6 + $0x60] sm:$0xff]  ;;  %1052 = vmatpush.msra.mxu1 %v784_v49  ;;  %v595_v33 = vld [vmem:[#allocation3 + $0x98] sm:$0xff] }
  0x28   :  { %v781_v47 = vld [vmem:[#allocation6 + $0x268] sm:$0xff]  ;;  %1262 = vmatpush.msra.mxu2 %v717_v46  ;;  %v780_v53 = vld [vmem:[#allocation6 + $0x260] sm:$0xff]  ;;  %844 = vmatpush.msra.mxu0 %v716_v52  ;;  %v754_v34 = vld [vmem:[#allocation6 + $0x190] sm:$0xff] }
  0x29   :  { %v713_v50 = vld [vmem:[#allocation6 + $0x48] sm:$0xff]  ;;  %1471 = vmatpush.msra.mxu3 %v781_v47  ;;  %v712_v56 = vld [vmem:[#allocation6 + $0x40] sm:$0xff]  ;;  %1053 = vmatpush.msra.mxu1 %v780_v53  ;;  %v818_v35 = vld [vmem:[#allocation6 + $0x390] sm:$0xff] }
  0x2a   :  { %v777_v51 = vld [vmem:[#allocation6 + $0x248] sm:$0xff]  ;;  %1263 = vmatpush.msra.mxu2 %v713_v50  ;;  %v776_v57 = vld [vmem:[#allocation6 + $0x240] sm:$0xff]  ;;  %845 = vmatpush.msra.mxu0 %v712_v56  ;;  %v598_v38 = vld [vmem:[#allocation3 + $0xb0] sm:$0xff] }
  0x2b   :  { %v709_v54 = vld [vmem:[#allocation6 + $0x28] sm:$0xff]  ;;  %1472 = vmatpush.msra.mxu3 %v777_v51  ;;  %v576_v60 = vld [vmem:[#allocation3] sm:$0xff]  ;;  %1054 = vmatpush.msra.mxu1 %v776_v57  ;;  %v599_v39 = vld [vmem:[#allocation3 + $0xb8] sm:$0xff] }
  0x2c   :  { %v773_v55 = vld [vmem:[#allocation6 + $0x228] sm:$0xff]  ;;  %1264 = vmatpush.msra.mxu2 %v709_v54  ;;  %v708_v0 = vld [vmem:[#allocation6 + $0x20] sm:$0xff]  ;;  %v751_v42 = vld [vmem:[#allocation6 + $0x178] sm:$0xff] }
  0x2d   :  { %v705_v58 = vld [vmem:[#allocation6 + $0x8] sm:$0xff]  ;;  %1473 = vmatpush.msra.mxu3 %v773_v55  ;;  %v772_v1 = vld [vmem:[#allocation6 + $0x220] sm:$0xff]  ;;  %846 = vmatpush.msra.mxu0 %v708_v0  ;;  %v815_v43 = vld [vmem:[#allocation6 + $0x378] sm:$0xff] }
  0x2e   :  { %v769_v59 = vld [vmem:[#allocation6 + $0x208] sm:$0xff]  ;;  %1265 = vmatpush.msra.mxu2 %v705_v58  ;;  %v704_v4 = vld [vmem:[#allocation6] sm:$0xff]  ;;  %1055 = vmatpush.msra.mxu1 %v772_v1  ;;  %v602_v44 = vld [vmem:[#allocation3 + $0xd0] sm:$0xff] }
  0x2f   :  { %v577_v61 = vld [vmem:[#allocation3 + $0x8] sm:$0xff]  ;;  %1474 = vmatpush.msra.mxu3 %v769_v59  ;;  %1266 = vmatmul.f32.vlgmr.msra.gmra.mxu2 %v576_v60  ;;  %v768_v5 = vld [vmem:[#allocation6 + $0x200] sm:$0xff]  ;;  %v603_v45 = vld [vmem:[#allocation3 + $0xd8] sm:$0xff] }
  0x30   :  { %1475 = vmatmul.f32.vlgmr.msra.gmra.mxu3 %v577_v61  ;;  %2086 = vmatpush.msrb.mxu2 %v767_v62  ;;  %v580_v12 = vld [vmem:[#allocation3 + $0x20] sm:$0xff]  ;;  %v581_v13 = vld [vmem:[#allocation3 + $0x28] sm:$0xff]  ;;  %v750_v46 = vld [vmem:[#allocation6 + $0x170] sm:$0xff] }
  0x31   :  { %2295 = vmatpush.msrb.mxu3 %v831_v63  ;;  %847 = vmatpush.msra.mxu0 %v704_v4  ;;  %v584_v16 = vld [vmem:[#allocation3 + $0x40] sm:$0xff]  ;;  %v585_v17 = vld [vmem:[#allocation3 + $0x48] sm:$0xff]  ;;  %v814_v47 = vld [vmem:[#allocation6 + $0x370] sm:$0xff] }
  0x32   :  { %2087 = vmatpush.msrb.mxu2 %v763_v2  ;;  %1056 = vmatpush.msra.mxu1 %v768_v5  ;;  %v588_v24 = vld [vmem:[#allocation3 + $0x60] sm:$0xff]  ;;  %v589_v25 = vld [vmem:[#allocation3 + $0x68] sm:$0xff]  ;;  %v606_v50 = vld [vmem:[#allocation3 + $0xf0] sm:$0xff] }
  0x33   :  { %2296 = vmatpush.msrb.mxu3 %v827_v3  ;;  %848 = vmatmul.f32.vlgmr.msra.gmra.mxu0 %v576_v60  ;;  %v592_v28 = vld [vmem:[#allocation3 + $0x80] sm:$0xff]  ;;  %v593_v29 = vld [vmem:[#allocation3 + $0x88] sm:$0xff]  ;;  %v607_v51 = vld [vmem:[#allocation3 + $0xf8] sm:$0xff] }
  0x34   :  { %1057 = vmatmul.f32.vlgmr.msra.gmra.mxu1 %v577_v61  ;;  %1668 = vmatpush.msrb.mxu0 %v766_v6  ;;  %v596_v36 = vld [vmem:[#allocation3 + $0xa0] sm:$0xff]  ;;  %v597_v37 = vld [vmem:[#allocation3 + $0xa8] sm:$0xff]  ;;  %v747_v55 = vld [vmem:[#allocation6 + $0x158] sm:$0xff] }
  0x35   :  { %1877 = vmatpush.msrb.mxu1 %v830_v7  ;;  %2088 = vmatpush.msrb.mxu2 %v759_v18  ;;  %v600_v40 = vld [vmem:[#allocation3 + $0xc0] sm:$0xff]  ;;  %v601_v41 = vld [vmem:[#allocation3 + $0xc8] sm:$0xff]  ;;  %v811_v56 = vld [vmem:[#allocation6 + $0x358] sm:$0xff] }
  0x36   :  { %1669 = vmatpush.msrb.mxu0 %v762_v10  ;;  %2297 = vmatpush.msrb.mxu3 %v823_v19  ;;  %v604_v48 = vld [vmem:[#allocation3 + $0xe0] sm:$0xff]  ;;  %v605_v49 = vld [vmem:[#allocation3 + $0xe8] sm:$0xff]  ;;  %v610_v2 = vld [vmem:[#allocation3 + $0x110] sm:$0xff] }
  0x37   :  { %1269 = vmatmul.f32.gmra.mxu2 %v578_v8  ;;  %1878 = vmatpush.msrb.mxu1 %v826_v11  ;;  %v608_v52 = vld [vmem:[#allocation3 + $0x100] sm:$0xff]  ;;  %v609_v53 = vld [vmem:[#allocation3 + $0x108] sm:$0xff]  ;;  %v611_v3 = vld [vmem:[#allocation3 + $0x118] sm:$0xff] }
  0x38   :  { %1478 = vmatmul.f32.gmra.mxu3 %v579_v9  ;;  %1670 = vmatpush.msrb.mxu0 %v758_v22  ;;  %v3275_v54 = vld [vmem:[#allocation8] sm:$0xf]  ;;  %v746_v5 = vld [vmem:[#allocation6 + $0x150] sm:$0xff] }
  0x39   :  { %1879 = vmatpush.msrb.mxu1 %v822_v23  ;;  %2089 = vmatpush.msrb.mxu2 %v755_v30  ;;  %v4096_v57 = vperm.slane %v3275_v54, 0  ;;  %v4098_v60 = vperm.slane %v3275_v54, 1  ;;  %v810_v6 = vld [vmem:[#allocation6 + $0x350] sm:$0xff] }
  0x3a   :  { %2298 = vmatpush.msrb.mxu3 %v819_v31  ;;  %1671 = vmatpush.msrb.mxu0 %v754_v34  ;;  %v616_v34 = vld [vmem:[#allocation3 + $0x140] sm:$0xff] }
  0x3b   :  { %851 = vmatmul.f32.gmra.mxu0 %v578_v8  ;;  %1880 = vmatpush.msrb.mxu1 %v818_v35  ;;  %v617_v35 = vld [vmem:[#allocation3 + $0x148] sm:$0xff] }
  0x3c   :  { %1060 = vmatmul.f32.gmra.mxu1 %v579_v9  ;;  %2090 = vmatpush.msrb.mxu2 %v751_v42 }
  0x3d   :  { %2299 = vmatpush.msrb.mxu3 %v815_v43  ;;  %1672 = vmatpush.msrb.mxu0 %v750_v46  ;;  %v618_v46 = vld [vmem:[#allocation3 + $0x150] sm:$0xff] }
  0x3e   :  { %1881 = vmatpush.msrb.mxu1 %v814_v47  ;;  %2091 = vmatpush.msrb.mxu2 %v747_v55  ;;  %v619_v47 = vld [vmem:[#allocation3 + $0x158] sm:$0xff] }
  0x3f   :  { %1272 = vmatmul.f32.gmra.mxu2 %v580_v12  ;;  %2300 = vmatpush.msrb.mxu3 %v811_v56 }
  0x40   :  { %1481 = vmatmul.f32.gmra.mxu3 %v581_v13  ;;  %1673 = vmatpush.msrb.mxu0 %v746_v5 }
  0x41   :  { %1882 = vmatpush.msrb.mxu1 %v810_v6  ;;  %v622_v6 = vld [vmem:[#allocation3 + $0x170] sm:$0xff] }
  0x43   :  { %854 = vmatmul.f32.gmra.mxu0 %v580_v12 }
  0x44   :  { %1063 = vmatmul.f32.gmra.mxu1 %v581_v13 }
  0x47   :  { %1275 = vmatmul.f32.gmra.mxu2 %v582_v14 }
  0x48   :  { %1484 = vmatmul.f32.gmra.mxu3 %v583_v15 }
  0x4b   :  { %857 = vmatmul.f32.gmra.mxu0 %v582_v14  ;;  %v612_v14 = vld [vmem:[#allocation3 + $0x120] sm:$0xff] }
  0x4c   :  { %1066 = vmatmul.f32.gmra.mxu1 %v583_v15  ;;  %v613_v15 = vld [vmem:[#allocation3 + $0x128] sm:$0xff] }
  0x4f   :  { %1278 = vmatmul.f32.gmra.mxu2 %v584_v16 }
  0x50   :  { %1487 = vmatmul.f32.gmra.mxu3 %v585_v17 }
  0x53   :  { %860 = vmatmul.f32.gmra.mxu0 %v584_v16 }
  0x54   :  { %1069 = vmatmul.f32.gmra.mxu1 %v585_v17 }
  0x57   :  { %1281 = vmatmul.f32.gmra.mxu2 %v586_v20 }
  0x58   :  { %1490 = vmatmul.f32.gmra.mxu3 %v587_v21 }
  0x5b   :  { %863 = vmatmul.f32.gmra.mxu0 %v586_v20 }
  0x5c   :  { %1072 = vmatmul.f32.gmra.mxu1 %v587_v21 }
  0x5f   :  { %1284 = vmatmul.f32.gmra.mxu2 %v588_v24 }
  0x60   :  { %1493 = vmatmul.f32.gmra.mxu3 %v589_v25 }
  0x63   :  { %866 = vmatmul.f32.gmra.mxu0 %v588_v24  ;;  %v614_v24 = vld [vmem:[#allocation3 + $0x130] sm:$0xff] }
  0x64   :  { %1075 = vmatmul.f32.gmra.mxu1 %v589_v25  ;;  %v615_v25 = vld [vmem:[#allocation3 + $0x138] sm:$0xff] }
  0x67   :  { %1287 = vmatmul.f32.gmra.mxu2 %v590_v26 }
  0x68   :  { %1496 = vmatmul.f32.gmra.mxu3 %v591_v27 }
  0x6b   :  { %869 = vmatmul.f32.gmra.mxu0 %v590_v26 }
  0x6c   :  { %1078 = vmatmul.f32.gmra.mxu1 %v591_v27 }
  0x6f   :  { %1290 = vmatmul.f32.gmra.mxu2 %v592_v28 }
  0x70   :  { %1499 = vmatmul.f32.gmra.mxu3 %v593_v29 }
  0x73   :  { %872 = vmatmul.f32.gmra.mxu0 %v592_v28 }
  0x74   :  { %1081 = vmatmul.f32.gmra.mxu1 %v593_v29 }
  0x77   :  { %1293 = vmatmul.f32.gmra.mxu2 %v594_v32 }
  0x78   :  { %1502 = vmatmul.f32.gmra.mxu3 %v595_v33 }
  0x7b   :  { %875 = vmatmul.f32.gmra.mxu0 %v594_v32 }
  0x7c   :  { %1084 = vmatmul.f32.gmra.mxu1 %v595_v33 }
  0x7f   :  { %1296 = vmatmul.f32.gmra.mxu2 %v596_v36 }
  0x80   :  { %1505 = vmatmul.f32.gmra.mxu3 %v597_v37 }
  0x83   :  { %878 = vmatmul.f32.gmra.mxu0 %v596_v36 }
  0x84   :  { %1087 = vmatmul.f32.gmra.mxu1 %v597_v37  ;;  %v743_v37 = vld [vmem:[#allocation6 + $0x138] sm:$0xff] }
  0x85   :  { %2092 = vmatpush.msrb.mxu2 %v743_v37 }
  0x87   :  { %1299 = vmatmul.f32.gmra.mxu2 %v598_v38 }
  0x88   :  { %1508 = vmatmul.f32.gmra.mxu3 %v599_v39 }
  0x8b   :  { %881 = vmatmul.f32.gmra.mxu0 %v598_v38  ;;  %v807_v38 = vld [vmem:[#allocation6 + $0x338] sm:$0xff] }
  0x8c   :  { %1090 = vmatmul.f32.gmra.mxu1 %v599_v39  ;;  %2301 = vmatpush.msrb.mxu3 %v807_v38 }
  0x8f   :  { %1302 = vmatmul.f32.gmra.mxu2 %v600_v40 }
  0x90   :  { %1511 = vmatmul.f32.gmra.mxu3 %v601_v41 }
  0x93   :  { %884 = vmatmul.f32.gmra.mxu0 %v600_v40 }
  0x94   :  { %1093 = vmatmul.f32.gmra.mxu1 %v601_v41 }
  0x97   :  { %1305 = vmatmul.f32.gmra.mxu2 %v602_v44 }
  0x98   :  { %1514 = vmatmul.f32.gmra.mxu3 %v603_v45 }
  0x9b   :  { %887 = vmatmul.f32.gmra.mxu0 %v602_v44 }
  0x9c   :  { %1096 = vmatmul.f32.gmra.mxu1 %v603_v45 }
  0x9f   :  { %1308 = vmatmul.f32.gmra.mxu2 %v604_v48 }
  0xa0   :  { %1517 = vmatmul.f32.gmra.mxu3 %v605_v49 }
  0xa3   :  { %890 = vmatmul.f32.gmra.mxu0 %v604_v48 }
  0xa4   :  { %1099 = vmatmul.f32.gmra.mxu1 %v605_v49  ;;  %v742_v49 = vld [vmem:[#allocation6 + $0x130] sm:$0xff] }
  0xa5   :  { %1674 = vmatpush.msrb.mxu0 %v742_v49 }
  0xa7   :  { %1311 = vmatmul.f32.gmra.mxu2 %v606_v50 }
  0xa8   :  { %1520 = vmatmul.f32.gmra.mxu3 %v607_v51 }
  0xab   :  { %893 = vmatmul.f32.gmra.mxu0 %v606_v50  ;;  %v806_v50 = vld [vmem:[#allocation6 + $0x330] sm:$0xff] }
  0xac   :  { %1102 = vmatmul.f32.gmra.mxu1 %v607_v51 }
  0xad   :  { %1883 = vmatpush.msrb.mxu1 %v806_v50  ;;  %v630_v50 = vld [vmem:[#allocation3 + $0x1b0] sm:$0xff] }
  0xaf   :  { %1314 = vmatmul.f32.gmra.mxu2 %v608_v52 }
  0xb0   :  { %1523 = vmatmul.f32.gmra.mxu3 %v609_v53  ;;  %v849_v58 = vpop.f32.mrf.mxu0 }
  0xb1   :  { %v1058_v59 = vpop.f32.mrf.mxu1 }
  0xb2   :  { %v1059_v61 = vadd.f32 %v1058_v59, %v849_v58  ;;  %v1267_v62 = vpop.f32.mrf.mxu2  ;;  %v620_v59 = vld [vmem:[#allocation3 + $0x160] sm:$0xff] }
  0xb3   :  { %v1476_v63 = vpop.f32.mrf.mxu3  ;;  %896 = vmatmul.f32.gmra.mxu0 %v608_v52 }
  0xb4   :  { %v1477_v0 = vadd.f32 %v1476_v63, %v1267_v62  ;;  %v3285_v1 = vadd.f32 %v4096_v57, %v1059_v61  ;;  %1105 = vmatmul.f32.gmra.mxu1 %v609_v53  ;;  %v621_v61 = vld [vmem:[#allocation3 + $0x168] sm:$0xff] }
  0xb6   :  { %v3286_v4 = vadd.f32 %v4098_v60, %v1477_v0  ;;  %3541 = vst [vmem:[#allocation9] sm:$0xff] %v3285_v1 }
  0xb7   :  { %1317 = vmatmul.f32.gmra.mxu2 %v610_v2 }
  0xb8   :  { %3542 = vst [vmem:[#allocation9 + $0x8] sm:$0xff] %v3286_v4  ;;  %1526 = vmatmul.f32.gmra.mxu3 %v611_v3  ;;  %v852_v7 = vpop.f32.mrf.mxu0 }
  0xb9   :  { %v1061_v8 = vpop.f32.mrf.mxu1 }
  0xba   :  { %v1062_v9 = vadd.f32 %v1061_v8, %v852_v7  ;;  %v1270_v10 = vpop.f32.mrf.mxu2  ;;  %v623_v7 = vld [vmem:[#allocation3 + $0x178] sm:$0xff] }
  0xbb   :  { %v1479_v11 = vpop.f32.mrf.mxu3  ;;  %899 = vmatmul.f32.gmra.mxu0 %v610_v2 }
  0xbc   :  { %v1480_v12 = vadd.f32 %v1479_v11, %v1270_v10  ;;  %v3289_v13 = vadd.f32 %v4096_v57, %v1062_v9  ;;  %1108 = vmatmul.f32.gmra.mxu1 %v611_v3 }
  0xbe   :  { %v3290_v16 = vadd.f32 %v4098_v60, %v1480_v12  ;;  %3545 = vst [vmem:[#allocation9 + $0x20] sm:$0xff] %v3289_v13 }
  0xbf   :  { %1320 = vmatmul.f32.gmra.mxu2 %v612_v14 }
  0xc0   :  { %3546 = vst [vmem:[#allocation9 + $0x28] sm:$0xff] %v3290_v16  ;;  %1529 = vmatmul.f32.gmra.mxu3 %v613_v15  ;;  %v855_v17 = vpop.f32.mrf.mxu0  ;;  %v624_v16 = vld [vmem:[#allocation3 + $0x180] sm:$0xff] }
  0xc1   :  { %v1064_v18 = vpop.f32.mrf.mxu1 }
  0xc2   :  { %v1065_v19 = vadd.f32 %v1064_v18, %v855_v17  ;;  %v1273_v20 = vpop.f32.mrf.mxu2  ;;  %v625_v17 = vld [vmem:[#allocation3 + $0x188] sm:$0xff] }
  0xc3   :  { %v1482_v21 = vpop.f32.mrf.mxu3  ;;  %902 = vmatmul.f32.gmra.mxu0 %v612_v14 }
  0xc4   :  { %v1483_v22 = vadd.f32 %v1482_v21, %v1273_v20  ;;  %v3293_v23 = vadd.f32 %v4096_v57, %v1065_v19  ;;  %1111 = vmatmul.f32.gmra.mxu1 %v613_v15  ;;  %v739_v19 = vld [vmem:[#allocation6 + $0x118] sm:$0xff] }
  0xc5   :  { %v803_v20 = vld [vmem:[#allocation6 + $0x318] sm:$0xff]  ;;  %2093 = vmatpush.msrb.mxu2 %v739_v19 }
  0xc6   :  { %v3294_v26 = vadd.f32 %v4098_v60, %v1483_v22  ;;  %3549 = vst [vmem:[#allocation9 + $0x40] sm:$0xff] %v3293_v23  ;;  %2302 = vmatpush.msrb.mxu3 %v803_v20 }
  0xc7   :  { %1323 = vmatmul.f32.gmra.mxu2 %v614_v24 }
  0xc8   :  { %3550 = vst [vmem:[#allocation9 + $0x48] sm:$0xff] %v3294_v26  ;;  %1532 = vmatmul.f32.gmra.mxu3 %v615_v25  ;;  %v858_v27 = vpop.f32.mrf.mxu0 }
  0xc9   :  { %v1067_v28 = vpop.f32.mrf.mxu1 }
  0xca   :  { %v1068_v29 = vadd.f32 %v1067_v28, %v858_v27  ;;  %v1276_v30 = vpop.f32.mrf.mxu2  ;;  %v626_v28 = vld [vmem:[#allocation3 + $0x190] sm:$0xff] }
  0xcb   :  { %v1485_v31 = vpop.f32.mrf.mxu3  ;;  %905 = vmatmul.f32.gmra.mxu0 %v614_v24 }
  0xcc   :  { %v1486_v32 = vadd.f32 %v1485_v31, %v1276_v30  ;;  %v3297_v33 = vadd.f32 %v4096_v57, %v1068_v29  ;;  %1114 = vmatmul.f32.gmra.mxu1 %v615_v25  ;;  %v627_v29 = vld [vmem:[#allocation3 + $0x198] sm:$0xff]  ;;  %v738_v31 = vld [vmem:[#allocation6 + $0x110] sm:$0xff] }
  0xcd   :  { %1675 = vmatpush.msrb.mxu0 %v738_v31 }
  0xce   :  { %v3298_v36 = vadd.f32 %v4098_v60, %v1486_v32  ;;  %3553 = vst [vmem:[#allocation9 + $0x60] sm:$0xff] %v3297_v33  ;;  %v802_v32 = vld [vmem:[#allocation6 + $0x310] sm:$0xff] }
  0xcf   :  { %1326 = vmatmul.f32.gmra.mxu2 %v616_v34  ;;  %1884 = vmatpush.msrb.mxu1 %v802_v32  ;;  %v638_v32 = vld [vmem:[#allocation3 + $0x1f0] sm:$0xff] }
  0xd0   :  { %3554 = vst [vmem:[#allocation9 + $0x68] sm:$0xff] %v3298_v36  ;;  %1535 = vmatmul.f32.gmra.mxu3 %v617_v35  ;;  %v861_v39 = vpop.f32.mrf.mxu0 }
  0xd1   :  { %v1070_v40 = vpop.f32.mrf.mxu1 }
  0xd2   :  { %v1071_v41 = vadd.f32 %v1070_v40, %v861_v39  ;;  %v1279_v42 = vpop.f32.mrf.mxu2  ;;  %v628_v40 = vld [vmem:[#allocation3 + $0x1a0] sm:$0xff] }
  0xd3   :  { %v1488_v43 = vpop.f32.mrf.mxu3  ;;  %908 = vmatmul.f32.gmra.mxu0 %v616_v34 }
  0xd4   :  { %v1489_v44 = vadd.f32 %v1488_v43, %v1279_v42  ;;  %v3301_v45 = vadd.f32 %v4096_v57, %v1071_v41  ;;  %1117 = vmatmul.f32.gmra.mxu1 %v617_v35  ;;  %v629_v41 = vld [vmem:[#allocation3 + $0x1a8] sm:$0xff] }
  0xd6   :  { %v3302_v48 = vadd.f32 %v4098_v60, %v1489_v44  ;;  %3557 = vst [vmem:[#allocation9 + $0x80] sm:$0xff] %v3301_v45 }
  0xd7   :  { %1329 = vmatmul.f32.gmra.mxu2 %v618_v46 }
  0xd8   :  { %3558 = vst [vmem:[#allocation9 + $0x88] sm:$0xff] %v3302_v48  ;;  %1538 = vmatmul.f32.gmra.mxu3 %v619_v47  ;;  %v864_v51 = vpop.f32.mrf.mxu0 }
  0xd9   :  { %v1073_v52 = vpop.f32.mrf.mxu1 }
  0xda   :  { %v1074_v53 = vadd.f32 %v1073_v52, %v864_v51  ;;  %v1282_v54 = vpop.f32.mrf.mxu2  ;;  %v631_v51 = vld [vmem:[#allocation3 + $0x1b8] sm:$0xff] }
  0xdb   :  { %v1491_v55 = vpop.f32.mrf.mxu3  ;;  %911 = vmatmul.f32.gmra.mxu0 %v618_v46 }
  0xdc   :  { %v1492_v56 = vadd.f32 %v1491_v55, %v1282_v54  ;;  %v3305_v58 = vadd.f32 %v4096_v57, %v1074_v53  ;;  %1120 = vmatmul.f32.gmra.mxu1 %v619_v47 }
  0xde   :  { %v3306_v62 = vadd.f32 %v4098_v60, %v1492_v56  ;;  %3561 = vst [vmem:[#allocation9 + $0xa0] sm:$0xff] %v3305_v58 }
  0xdf   :  { %1332 = vmatmul.f32.gmra.mxu2 %v620_v59 }
  0xe0   :  { %3562 = vst [vmem:[#allocation9 + $0xa8] sm:$0xff] %v3306_v62  ;;  %1541 = vmatmul.f32.gmra.mxu3 %v621_v61  ;;  %v867_v63 = vpop.f32.mrf.mxu0  ;;  %v632_v62 = vld [vmem:[#allocation3 + $0x1c0] sm:$0xff] }
  0xe1   :  { %v1076_v0 = vpop.f32.mrf.mxu1 }
  0xe2   :  { %v1077_v1 = vadd.f32 %v1076_v0, %v867_v63  ;;  %v1285_v2 = vpop.f32.mrf.mxu2  ;;  %v633_v63 = vld [vmem:[#allocation3 + $0x1c8] sm:$0xff] }
  0xe3   :  { %v1494_v3 = vpop.f32.mrf.mxu3  ;;  %914 = vmatmul.f32.gmra.mxu0 %v620_v59 }
  0xe4   :  { %v1495_v4 = vadd.f32 %v1494_v3, %v1285_v2  ;;  %v3309_v5 = vadd.f32 %v4096_v57, %v1077_v1  ;;  %1123 = vmatmul.f32.gmra.mxu1 %v621_v61  ;;  %v735_v1 = vld [vmem:[#allocation6 + $0xf8] sm:$0xff] }
  0xe5   :  { %v799_v2 = vld [vmem:[#allocation6 + $0x2f8] sm:$0xff]  ;;  %2094 = vmatpush.msrb.mxu2 %v735_v1 }
  0xe6   :  { %v3310_v8 = vadd.f32 %v4098_v60, %v1495_v4  ;;  %3565 = vst [vmem:[#allocation9 + $0xc0] sm:$0xff] %v3309_v5  ;;  %2303 = vmatpush.msrb.mxu3 %v799_v2 }
  0xe7   :  { %1335 = vmatmul.f32.gmra.mxu2 %v622_v6 }
  0xe8   :  { %3566 = vst [vmem:[#allocation9 + $0xc8] sm:$0xff] %v3310_v8  ;;  %1544 = vmatmul.f32.gmra.mxu3 %v623_v7  ;;  %v870_v9 = vpop.f32.mrf.mxu0 }
  0xe9   :  { %v1079_v10 = vpop.f32.mrf.mxu1 }
  0xea   :  { %v1080_v11 = vadd.f32 %v1079_v10, %v870_v9  ;;  %v1288_v12 = vpop.f32.mrf.mxu2  ;;  %v634_v10 = vld [vmem:[#allocation3 + $0x1d0] sm:$0xff] }
  0xeb   :  { %v1497_v13 = vpop.f32.mrf.mxu3  ;;  %917 = vmatmul.f32.gmra.mxu0 %v622_v6 }
  0xec   :  { %v1498_v14 = vadd.f32 %v1497_v13, %v1288_v12  ;;  %v3313_v15 = vadd.f32 %v4096_v57, %v1080_v11  ;;  %1126 = vmatmul.f32.gmra.mxu1 %v623_v7  ;;  %v635_v11 = vld [vmem:[#allocation3 + $0x1d8] sm:$0xff]  ;;  %v734_v13 = vld [vmem:[#allocation6 + $0xf0] sm:$0xff] }
  0xed   :  { %1676 = vmatpush.msrb.mxu0 %v734_v13 }
  0xee   :  { %v3314_v18 = vadd.f32 %v4098_v60, %v1498_v14  ;;  %3569 = vst [vmem:[#allocation9 + $0xe0] sm:$0xff] %v3313_v15  ;;  %v798_v14 = vld [vmem:[#allocation6 + $0x2f0] sm:$0xff] }
  0xef   :  { %1338 = vmatmul.f32.gmra.mxu2 %v624_v16  ;;  %1885 = vmatpush.msrb.mxu1 %v798_v14  ;;  %v646_v14 = vld [vmem:[#allocation3 + $0x230] sm:$0xff] }
  0xf0   :  { %3570 = vst [vmem:[#allocation9 + $0xe8] sm:$0xff] %v3314_v18  ;;  %1547 = vmatmul.f32.gmra.mxu3 %v625_v17  ;;  %v873_v21 = vpop.f32.mrf.mxu0 }
  0xf1   :  { %v1082_v22 = vpop.f32.mrf.mxu1 }
  0xf2   :  { %v1083_v23 = vadd.f32 %v1082_v22, %v873_v21  ;;  %v1291_v24 = vpop.f32.mrf.mxu2  ;;  %v636_v22 = vld [vmem:[#allocation3 + $0x1e0] sm:$0xff] }
  0xf3   :  { %v1500_v25 = vpop.f32.mrf.mxu3  ;;  %920 = vmatmul.f32.gmra.mxu0 %v624_v16 }
  0xf4   :  { %v1501_v26 = vadd.f32 %v1500_v25, %v1291_v24  ;;  %v3317_v27 = vadd.f32 %v4096_v57, %v1083_v23  ;;  %1129 = vmatmul.f32.gmra.mxu1 %v625_v17  ;;  %v637_v23 = vld [vmem:[#allocation3 + $0x1e8] sm:$0xff] }
  0xf6   :  { %v3318_v30 = vadd.f32 %v4098_v60, %v1501_v26  ;;  %3573 = vst [vmem:[#allocation9 + $0x100] sm:$0xff] %v3317_v27 }
  0xf7   :  { %1341 = vmatmul.f32.gmra.mxu2 %v626_v28 }
  0xf8   :  { %3574 = vst [vmem:[#allocation9 + $0x108] sm:$0xff] %v3318_v30  ;;  %1550 = vmatmul.f32.gmra.mxu3 %v627_v29  ;;  %v876_v33 = vpop.f32.mrf.mxu0 }
  0xf9   :  { %v1085_v34 = vpop.f32.mrf.mxu1 }
  0xfa   :  { %v1086_v35 = vadd.f32 %v1085_v34, %v876_v33  ;;  %v1294_v36 = vpop.f32.mrf.mxu2  ;;  %v639_v33 = vld [vmem:[#allocation3 + $0x1f8] sm:$0xff] }
  0xfb   :  { %v1503_v37 = vpop.f32.mrf.mxu3  ;;  %923 = vmatmul.f32.gmra.mxu0 %v626_v28 }
  0xfc   :  { %v1504_v38 = vadd.f32 %v1503_v37, %v1294_v36  ;;  %v3321_v39 = vadd.f32 %v4096_v57, %v1086_v35  ;;  %1132 = vmatmul.f32.gmra.mxu1 %v627_v29 }
  0xfe   :  { %v3322_v42 = vadd.f32 %v4098_v60, %v1504_v38  ;;  %3577 = vst [vmem:[#allocation9 + $0x120] sm:$0xff] %v3321_v39 }
  0xff   :  { %1344 = vmatmul.f32.gmra.mxu2 %v628_v40 }
 0x100   :  { %3578 = vst [vmem:[#allocation9 + $0x128] sm:$0xff] %v3322_v42  ;;  %1553 = vmatmul.f32.gmra.mxu3 %v629_v41  ;;  %v879_v43 = vpop.f32.mrf.mxu0  ;;  %v640_v42 = vld [vmem:[#allocation3 + $0x200] sm:$0xff] }
 0x101   :  { %v1088_v44 = vpop.f32.mrf.mxu1 }
 0x102   :  { %v1089_v45 = vadd.f32 %v1088_v44, %v879_v43  ;;  %v1297_v46 = vpop.f32.mrf.mxu2  ;;  %v641_v43 = vld [vmem:[#allocation3 + $0x208] sm:$0xff] }
 0x103   :  { %v1506_v47 = vpop.f32.mrf.mxu3  ;;  %926 = vmatmul.f32.gmra.mxu0 %v628_v40 }
 0x104   :  { %v1507_v48 = vadd.f32 %v1506_v47, %v1297_v46  ;;  %v3325_v49 = vadd.f32 %v4096_v57, %v1089_v45  ;;  %1135 = vmatmul.f32.gmra.mxu1 %v629_v41  ;;  %v731_v45 = vld [vmem:[#allocation6 + $0xd8] sm:$0xff] }
 0x105   :  { %v795_v46 = vld [vmem:[#allocation6 + $0x2d8] sm:$0xff]  ;;  %2095 = vmatpush.msrb.mxu2 %v731_v45 }
 0x106   :  { %v3326_v52 = vadd.f32 %v4098_v60, %v1507_v48  ;;  %3581 = vst [vmem:[#allocation9 + $0x140] sm:$0xff] %v3325_v49  ;;  %2304 = vmatpush.msrb.mxu3 %v795_v46 }
 0x107   :  { %1347 = vmatmul.f32.gmra.mxu2 %v630_v50 }
 0x108   :  { %3582 = vst [vmem:[#allocation9 + $0x148] sm:$0xff] %v3326_v52  ;;  %1556 = vmatmul.f32.gmra.mxu3 %v631_v51  ;;  %v882_v53 = vpop.f32.mrf.mxu0 }
 0x109   :  { %v1091_v54 = vpop.f32.mrf.mxu1 }
 0x10a   :  { %v1092_v55 = vadd.f32 %v1091_v54, %v882_v53  ;;  %v1300_v56 = vpop.f32.mrf.mxu2  ;;  %v642_v54 = vld [vmem:[#allocation3 + $0x210] sm:$0xff] }
 0x10b   :  { %v1509_v58 = vpop.f32.mrf.mxu3  ;;  %929 = vmatmul.f32.gmra.mxu0 %v630_v50 }
 0x10c   :  { %v1510_v59 = vadd.f32 %v1509_v58, %v1300_v56  ;;  %v3329_v61 = vadd.f32 %v4096_v57, %v1092_v55  ;;  %1138 = vmatmul.f32.gmra.mxu1 %v631_v51  ;;  %v643_v55 = vld [vmem:[#allocation3 + $0x218] sm:$0xff]  ;;  %v730_v58 = vld [vmem:[#allocation6 + $0xd0] sm:$0xff] }
 0x10d   :  { %1677 = vmatpush.msrb.mxu0 %v730_v58 }
 0x10e   :  { %v3330_v0 = vadd.f32 %v4098_v60, %v1510_v59  ;;  %3585 = vst [vmem:[#allocation9 + $0x160] sm:$0xff] %v3329_v61  ;;  %v794_v59 = vld [vmem:[#allocation6 + $0x2d0] sm:$0xff] }
 0x10f   :  { %1350 = vmatmul.f32.gmra.mxu2 %v632_v62  ;;  %1886 = vmatpush.msrb.mxu1 %v794_v59  ;;  %v654_v59 = vld [vmem:[#allocation3 + $0x270] sm:$0xff] }
 0x110   :  { %3586 = vst [vmem:[#allocation9 + $0x168] sm:$0xff] %v3330_v0  ;;  %1559 = vmatmul.f32.gmra.mxu3 %v633_v63  ;;  %v885_v3 = vpop.f32.mrf.mxu0 }
 0x111   :  { %v1094_v4 = vpop.f32.mrf.mxu1 }
 0x112   :  { %v1095_v5 = vadd.f32 %v1094_v4, %v885_v3  ;;  %v1303_v6 = vpop.f32.mrf.mxu2  ;;  %v644_v4 = vld [vmem:[#allocation3 + $0x220] sm:$0xff] }
 0x113   :  { %v1512_v7 = vpop.f32.mrf.mxu3  ;;  %932 = vmatmul.f32.gmra.mxu0 %v632_v62 }
 0x114   :  { %v1513_v8 = vadd.f32 %v1512_v7, %v1303_v6  ;;  %v3333_v9 = vadd.f32 %v4096_v57, %v1095_v5  ;;  %1141 = vmatmul.f32.gmra.mxu1 %v633_v63  ;;  %v645_v5 = vld [vmem:[#allocation3 + $0x228] sm:$0xff] }
 0x116   :  { %v3334_v12 = vadd.f32 %v4098_v60, %v1513_v8  ;;  %3589 = vst [vmem:[#allocation9 + $0x180] sm:$0xff] %v3333_v9 }
 0x117   :  { %1353 = vmatmul.f32.gmra.mxu2 %v634_v10 }
 0x118   :  { %3590 = vst [vmem:[#allocation9 + $0x188] sm:$0xff] %v3334_v12  ;;  %1562 = vmatmul.f32.gmra.mxu3 %v635_v11  ;;  %v888_v15 = vpop.f32.mrf.mxu0 }
 0x119   :  { %v1097_v16 = vpop.f32.mrf.mxu1 }
 0x11a   :  { %v1098_v17 = vadd.f32 %v1097_v16, %v888_v15  ;;  %v1306_v18 = vpop.f32.mrf.mxu2  ;;  %v647_v15 = vld [vmem:[#allocation3 + $0x238] sm:$0xff] }
 0x11b   :  { %v1515_v19 = vpop.f32.mrf.mxu3  ;;  %935 = vmatmul.f32.gmra.mxu0 %v634_v10 }
 0x11c   :  { %v1516_v20 = vadd.f32 %v1515_v19, %v1306_v18  ;;  %v3337_v21 = vadd.f32 %v4096_v57, %v1098_v17  ;;  %1144 = vmatmul.f32.gmra.mxu1 %v635_v11 }
 0x11e   :  { %v3338_v24 = vadd.f32 %v4098_v60, %v1516_v20  ;;  %3593 = vst [vmem:[#allocation9 + $0x1a0] sm:$0xff] %v3337_v21 }
 0x11f   :  { %1356 = vmatmul.f32.gmra.mxu2 %v636_v22 }
 0x120   :  { %3594 = vst [vmem:[#allocation9 + $0x1a8] sm:$0xff] %v3338_v24  ;;  %1565 = vmatmul.f32.gmra.mxu3 %v637_v23  ;;  %v891_v25 = vpop.f32.mrf.mxu0  ;;  %v648_v24 = vld [vmem:[#allocation3 + $0x240] sm:$0xff] }
 0x121   :  { %v1100_v26 = vpop.f32.mrf.mxu1 }
 0x122   :  { %v1101_v27 = vadd.f32 %v1100_v26, %v891_v25  ;;  %v1309_v28 = vpop.f32.mrf.mxu2  ;;  %v649_v25 = vld [vmem:[#allocation3 + $0x248] sm:$0xff] }
 0x123   :  { %v1518_v29 = vpop.f32.mrf.mxu3  ;;  %938 = vmatmul.f32.gmra.mxu0 %v636_v22 }
 0x124   :  { %v1519_v30 = vadd.f32 %v1518_v29, %v1309_v28  ;;  %v3341_v31 = vadd.f32 %v4096_v57, %v1101_v27  ;;  %1147 = vmatmul.f32.gmra.mxu1 %v637_v23  ;;  %v727_v27 = vld [vmem:[#allocation6 + $0xb8] sm:$0xff] }
 0x125   :  { %v791_v28 = vld [vmem:[#allocation6 + $0x2b8] sm:$0xff]  ;;  %2096 = vmatpush.msrb.mxu2 %v727_v27 }
 0x126   :  { %v3342_v34 = vadd.f32 %v4098_v60, %v1519_v30  ;;  %3597 = vst [vmem:[#allocation9 + $0x1c0] sm:$0xff] %v3341_v31  ;;  %2305 = vmatpush.msrb.mxu3 %v791_v28 }
 0x127   :  { %1359 = vmatmul.f32.gmra.mxu2 %v638_v32 }
 0x128   :  { %3598 = vst [vmem:[#allocation9 + $0x1c8] sm:$0xff] %v3342_v34  ;;  %1568 = vmatmul.f32.gmra.mxu3 %v639_v33  ;;  %v894_v35 = vpop.f32.mrf.mxu0 }
 0x129   :  { %v1103_v36 = vpop.f32.mrf.mxu1 }
 0x12a   :  { %v1104_v37 = vadd.f32 %v1103_v36, %v894_v35  ;;  %v1312_v38 = vpop.f32.mrf.mxu2  ;;  %v650_v36 = vld [vmem:[#allocation3 + $0x250] sm:$0xff] }
 0x12b   :  { %v1521_v39 = vpop.f32.mrf.mxu3  ;;  %941 = vmatmul.f32.gmra.mxu0 %v638_v32 }
 0x12c   :  { %v1522_v40 = vadd.f32 %v1521_v39, %v1312_v38  ;;  %v3345_v41 = vadd.f32 %v4096_v57, %v1104_v37  ;;  %1150 = vmatmul.f32.gmra.mxu1 %v639_v33  ;;  %v651_v37 = vld [vmem:[#allocation3 + $0x258] sm:$0xff]  ;;  %v726_v39 = vld [vmem:[#allocation6 + $0xb0] sm:$0xff] }
 0x12d   :  { %1678 = vmatpush.msrb.mxu0 %v726_v39 }
 0x12e   :  { %v3346_v44 = vadd.f32 %v4098_v60, %v1522_v40  ;;  %3601 = vst [vmem:[#allocation9 + $0x1e0] sm:$0xff] %v3345_v41  ;;  %v790_v40 = vld [vmem:[#allocation6 + $0x2b0] sm:$0xff] }
 0x12f   :  { %1362 = vmatmul.f32.gmra.mxu2 %v640_v42  ;;  %1887 = vmatpush.msrb.mxu1 %v790_v40  ;;  %v662_v40 = vld [vmem:[#allocation3 + $0x2b0] sm:$0xff] }
 0x130   :  { %3602 = vst [vmem:[#allocation9 + $0x1e8] sm:$0xff] %v3346_v44  ;;  %1571 = vmatmul.f32.gmra.mxu3 %v641_v43  ;;  %v897_v47 = vpop.f32.mrf.mxu0 }
 0x131   :  { %v1106_v48 = vpop.f32.mrf.mxu1 }
 0x132   :  { %v1107_v49 = vadd.f32 %v1106_v48, %v897_v47  ;;  %v1315_v50 = vpop.f32.mrf.mxu2  ;;  %v652_v48 = vld [vmem:[#allocation3 + $0x260] sm:$0xff] }
 0x133   :  { %v1524_v51 = vpop.f32.mrf.mxu3  ;;  %944 = vmatmul.f32.gmra.mxu0 %v640_v42 }
 0x134   :  { %v1525_v52 = vadd.f32 %v1524_v51, %v1315_v50  ;;  %v3349_v53 = vadd.f32 %v4096_v57, %v1107_v49  ;;  %1153 = vmatmul.f32.gmra.mxu1 %v641_v43  ;;  %v653_v49 = vld [vmem:[#allocation3 + $0x268] sm:$0xff] }
 0x136   :  { %v3350_v56 = vadd.f32 %v4098_v60, %v1525_v52  ;;  %3605 = vst [vmem:[#allocation9 + $0x200] sm:$0xff] %v3349_v53 }
 0x137   :  { %1365 = vmatmul.f32.gmra.mxu2 %v642_v54 }
 0x138   :  { %3606 = vst [vmem:[#allocation9 + $0x208] sm:$0xff] %v3350_v56  ;;  %1574 = vmatmul.f32.gmra.mxu3 %v643_v55  ;;  %v900_v61 = vpop.f32.mrf.mxu0 }
 0x139   :  { %v1109_v62 = vpop.f32.mrf.mxu1 }
 0x13a   :  { %v1110_v63 = vadd.f32 %v1109_v62, %v900_v61  ;;  %v1318_v0 = vpop.f32.mrf.mxu2  ;;  %v655_v61 = vld [vmem:[#allocation3 + $0x278] sm:$0xff] }
 0x13b   :  { %v1527_v1 = vpop.f32.mrf.mxu3  ;;  %947 = vmatmul.f32.gmra.mxu0 %v642_v54 }
 0x13c   :  { %v1528_v2 = vadd.f32 %v1527_v1, %v1318_v0  ;;  %v3353_v3 = vadd.f32 %v4096_v57, %v1110_v63  ;;  %1156 = vmatmul.f32.gmra.mxu1 %v643_v55 }
 0x13e   :  { %v3354_v6 = vadd.f32 %v4098_v60, %v1528_v2  ;;  %3609 = vst [vmem:[#allocation9 + $0x220] sm:$0xff] %v3353_v3 }
 0x13f   :  { %1368 = vmatmul.f32.gmra.mxu2 %v644_v4 }
 0x140   :  { %3610 = vst [vmem:[#allocation9 + $0x228] sm:$0xff] %v3354_v6  ;;  %1577 = vmatmul.f32.gmra.mxu3 %v645_v5  ;;  %v903_v7 = vpop.f32.mrf.mxu0  ;;  %v656_v6 = vld [vmem:[#allocation3 + $0x280] sm:$0xff] }
 0x141   :  { %v1112_v8 = vpop.f32.mrf.mxu1 }
 0x142   :  { %v1113_v9 = vadd.f32 %v1112_v8, %v903_v7  ;;  %v1321_v10 = vpop.f32.mrf.mxu2  ;;  %v657_v7 = vld [vmem:[#allocation3 + $0x288] sm:$0xff] }
 0x143   :  { %v1530_v11 = vpop.f32.mrf.mxu3  ;;  %950 = vmatmul.f32.gmra.mxu0 %v644_v4 }
 0x144   :  { %v1531_v12 = vadd.f32 %v1530_v11, %v1321_v10  ;;  %v3357_v13 = vadd.f32 %v4096_v57, %v1113_v9  ;;  %1159 = vmatmul.f32.gmra.mxu1 %v645_v5  ;;  %v723_v9 = vld [vmem:[#allocation6 + $0x98] sm:$0xff] }
 0x145   :  { %v787_v10 = vld [vmem:[#allocation6 + $0x298] sm:$0xff]  ;;  %2097 = vmatpush.msrb.mxu2 %v723_v9 }
 0x146   :  { %v3358_v16 = vadd.f32 %v4098_v60, %v1531_v12  ;;  %3613 = vst [vmem:[#allocation9 + $0x240] sm:$0xff] %v3357_v13  ;;  %2306 = vmatpush.msrb.mxu3 %v787_v10 }
 0x147   :  { %1371 = vmatmul.f32.gmra.mxu2 %v646_v14 }
 0x148   :  { %3614 = vst [vmem:[#allocation9 + $0x248] sm:$0xff] %v3358_v16  ;;  %1580 = vmatmul.f32.gmra.mxu3 %v647_v15  ;;  %v906_v17 = vpop.f32.mrf.mxu0 }
 0x149   :  { %v1115_v18 = vpop.f32.mrf.mxu1 }
 0x14a   :  { %v1116_v19 = vadd.f32 %v1115_v18, %v906_v17  ;;  %v1324_v20 = vpop.f32.mrf.mxu2  ;;  %v658_v18 = vld [vmem:[#allocation3 + $0x290] sm:$0xff] }
 0x14b   :  { %v1533_v21 = vpop.f32.mrf.mxu3  ;;  %953 = vmatmul.f32.gmra.mxu0 %v646_v14 }
 0x14c   :  { %v1534_v22 = vadd.f32 %v1533_v21, %v1324_v20  ;;  %v3361_v23 = vadd.f32 %v4096_v57, %v1116_v19  ;;  %1162 = vmatmul.f32.gmra.mxu1 %v647_v15  ;;  %v659_v19 = vld [vmem:[#allocation3 + $0x298] sm:$0xff]  ;;  %v722_v21 = vld [vmem:[#allocation6 + $0x90] sm:$0xff] }
 0x14d   :  { %1679 = vmatpush.msrb.mxu0 %v722_v21 }
 0x14e   :  { %v3362_v26 = vadd.f32 %v4098_v60, %v1534_v22  ;;  %3617 = vst [vmem:[#allocation9 + $0x260] sm:$0xff] %v3361_v23  ;;  %v786_v22 = vld [vmem:[#allocation6 + $0x290] sm:$0xff] }
 0x14f   :  { %1374 = vmatmul.f32.gmra.mxu2 %v648_v24  ;;  %1888 = vmatpush.msrb.mxu1 %v786_v22  ;;  %v670_v22 = vld [vmem:[#allocation3 + $0x2f0] sm:$0xff] }
 0x150   :  { %3618 = vst [vmem:[#allocation9 + $0x268] sm:$0xff] %v3362_v26  ;;  %1583 = vmatmul.f32.gmra.mxu3 %v649_v25  ;;  %v909_v29 = vpop.f32.mrf.mxu0 }
 0x151   :  { %v1118_v30 = vpop.f32.mrf.mxu1 }
 0x152   :  { %v1119_v31 = vadd.f32 %v1118_v30, %v909_v29  ;;  %v1327_v32 = vpop.f32.mrf.mxu2  ;;  %v660_v30 = vld [vmem:[#allocation3 + $0x2a0] sm:$0xff] }
 0x153   :  { %v1536_v33 = vpop.f32.mrf.mxu3  ;;  %956 = vmatmul.f32.gmra.mxu0 %v648_v24 }
 0x154   :  { %v1537_v34 = vadd.f32 %v1536_v33, %v1327_v32  ;;  %v3365_v35 = vadd.f32 %v4096_v57, %v1119_v31  ;;  %1165 = vmatmul.f32.gmra.mxu1 %v649_v25  ;;  %v661_v31 = vld [vmem:[#allocation3 + $0x2a8] sm:$0xff] }
 0x156   :  { %v3366_v38 = vadd.f32 %v4098_v60, %v1537_v34  ;;  %3621 = vst [vmem:[#allocation9 + $0x280] sm:$0xff] %v3365_v35 }
 0x157   :  { %1377 = vmatmul.f32.gmra.mxu2 %v650_v36 }
 0x158   :  { %3622 = vst [vmem:[#allocation9 + $0x288] sm:$0xff] %v3366_v38  ;;  %1586 = vmatmul.f32.gmra.mxu3 %v651_v37  ;;  %v912_v41 = vpop.f32.mrf.mxu0 }
 0x159   :  { %v1121_v42 = vpop.f32.mrf.mxu1 }
 0x15a   :  { %v1122_v43 = vadd.f32 %v1121_v42, %v912_v41  ;;  %v1330_v44 = vpop.f32.mrf.mxu2  ;;  %v663_v41 = vld [vmem:[#allocation3 + $0x2b8] sm:$0xff] }
 0x15b   :  { %v1539_v45 = vpop.f32.mrf.mxu3  ;;  %959 = vmatmul.f32.gmra.mxu0 %v650_v36 }
 0x15c   :  { %v1540_v46 = vadd.f32 %v1539_v45, %v1330_v44  ;;  %v3369_v47 = vadd.f32 %v4096_v57, %v1122_v43  ;;  %1168 = vmatmul.f32.gmra.mxu1 %v651_v37 }
 0x15e   :  { %v3370_v50 = vadd.f32 %v4098_v60, %v1540_v46  ;;  %3625 = vst [vmem:[#allocation9 + $0x2a0] sm:$0xff] %v3369_v47 }
 0x15f   :  { %1380 = vmatmul.f32.gmra.mxu2 %v652_v48 }
 0x160   :  { %3626 = vst [vmem:[#allocation9 + $0x2a8] sm:$0xff] %v3370_v50  ;;  %1589 = vmatmul.f32.gmra.mxu3 %v653_v49  ;;  %v915_v51 = vpop.f32.mrf.mxu0  ;;  %v664_v50 = vld [vmem:[#allocation3 + $0x2c0] sm:$0xff] }
 0x161   :  { %v1124_v52 = vpop.f32.mrf.mxu1 }
 0x162   :  { %v1125_v53 = vadd.f32 %v1124_v52, %v915_v51  ;;  %v1333_v54 = vpop.f32.mrf.mxu2  ;;  %v665_v51 = vld [vmem:[#allocation3 + $0x2c8] sm:$0xff] }
 0x163   :  { %v1542_v55 = vpop.f32.mrf.mxu3  ;;  %962 = vmatmul.f32.gmra.mxu0 %v652_v48 }
 0x164   :  { %v1543_v56 = vadd.f32 %v1542_v55, %v1333_v54  ;;  %v3373_v58 = vadd.f32 %v4096_v57, %v1125_v53  ;;  %1171 = vmatmul.f32.gmra.mxu1 %v653_v49  ;;  %v719_v53 = vld [vmem:[#allocation6 + $0x78] sm:$0xff] }
 0x165   :  { %v783_v54 = vld [vmem:[#allocation6 + $0x278] sm:$0xff]  ;;  %2098 = vmatpush.msrb.mxu2 %v719_v53 }
 0x166   :  { %v3374_v62 = vadd.f32 %v4098_v60, %v1543_v56  ;;  %3629 = vst [vmem:[#allocation9 + $0x2c0] sm:$0xff] %v3373_v58  ;;  %2307 = vmatpush.msrb.mxu3 %v783_v54 }
 0x167   :  { %1383 = vmatmul.f32.gmra.mxu2 %v654_v59 }
 0x168   :  { %3630 = vst [vmem:[#allocation9 + $0x2c8] sm:$0xff] %v3374_v62  ;;  %1592 = vmatmul.f32.gmra.mxu3 %v655_v61  ;;  %v918_v63 = vpop.f32.mrf.mxu0 }
 0x169   :  { %v1127_v0 = vpop.f32.mrf.mxu1 }
 0x16a   :  { %v1128_v1 = vadd.f32 %v1127_v0, %v918_v63  ;;  %v1336_v2 = vpop.f32.mrf.mxu2  ;;  %v666_v0 = vld [vmem:[#allocation3 + $0x2d0] sm:$0xff] }
 0x16b   :  { %v1545_v3 = vpop.f32.mrf.mxu3  ;;  %965 = vmatmul.f32.gmra.mxu0 %v654_v59 }
 0x16c   :  { %v1546_v4 = vadd.f32 %v1545_v3, %v1336_v2  ;;  %v3377_v5 = vadd.f32 %v4096_v57, %v1128_v1  ;;  %1174 = vmatmul.f32.gmra.mxu1 %v655_v61  ;;  %v667_v1 = vld [vmem:[#allocation3 + $0x2d8] sm:$0xff]  ;;  %v718_v3 = vld [vmem:[#allocation6 + $0x70] sm:$0xff] }
 0x16d   :  { %1680 = vmatpush.msrb.mxu0 %v718_v3 }
 0x16e   :  { %v3378_v8 = vadd.f32 %v4098_v60, %v1546_v4  ;;  %3633 = vst [vmem:[#allocation9 + $0x2e0] sm:$0xff] %v3377_v5  ;;  %v782_v4 = vld [vmem:[#allocation6 + $0x270] sm:$0xff] }
 0x16f   :  { %1386 = vmatmul.f32.gmra.mxu2 %v656_v6  ;;  %1889 = vmatpush.msrb.mxu1 %v782_v4  ;;  %v678_v4 = vld [vmem:[#allocation3 + $0x330] sm:$0xff] }
 0x170   :  { %3634 = vst [vmem:[#allocation9 + $0x2e8] sm:$0xff] %v3378_v8  ;;  %1595 = vmatmul.f32.gmra.mxu3 %v657_v7  ;;  %v921_v11 = vpop.f32.mrf.mxu0 }
 0x171   :  { %v1130_v12 = vpop.f32.mrf.mxu1 }
 0x172   :  { %v1131_v13 = vadd.f32 %v1130_v12, %v921_v11  ;;  %v1339_v14 = vpop.f32.mrf.mxu2  ;;  %v668_v12 = vld [vmem:[#allocation3 + $0x2e0] sm:$0xff] }
 0x173   :  { %v1548_v15 = vpop.f32.mrf.mxu3  ;;  %968 = vmatmul.f32.gmra.mxu0 %v656_v6 }
 0x174   :  { %v1549_v16 = vadd.f32 %v1548_v15, %v1339_v14  ;;  %v3381_v17 = vadd.f32 %v4096_v57, %v1131_v13  ;;  %1177 = vmatmul.f32.gmra.mxu1 %v657_v7  ;;  %v669_v13 = vld [vmem:[#allocation3 + $0x2e8] sm:$0xff] }
 0x176   :  { %v3382_v20 = vadd.f32 %v4098_v60, %v1549_v16  ;;  %3637 = vst [vmem:[#allocation9 + $0x300] sm:$0xff] %v3381_v17 }
 0x177   :  { %1389 = vmatmul.f32.gmra.mxu2 %v658_v18 }
 0x178   :  { %3638 = vst [vmem:[#allocation9 + $0x308] sm:$0xff] %v3382_v20  ;;  %1598 = vmatmul.f32.gmra.mxu3 %v659_v19  ;;  %v924_v23 = vpop.f32.mrf.mxu0 }
 0x179   :  { %v1133_v24 = vpop.f32.mrf.mxu1 }
 0x17a   :  { %v1134_v25 = vadd.f32 %v1133_v24, %v924_v23  ;;  %v1342_v26 = vpop.f32.mrf.mxu2  ;;  %v671_v23 = vld [vmem:[#allocation3 + $0x2f8] sm:$0xff] }
 0x17b   :  { %v1551_v27 = vpop.f32.mrf.mxu3  ;;  %971 = vmatmul.f32.gmra.mxu0 %v658_v18 }
 0x17c   :  { %v1552_v28 = vadd.f32 %v1551_v27, %v1342_v26  ;;  %v3385_v29 = vadd.f32 %v4096_v57, %v1134_v25  ;;  %1180 = vmatmul.f32.gmra.mxu1 %v659_v19 }
 0x17e   :  { %v3386_v32 = vadd.f32 %v4098_v60, %v1552_v28  ;;  %3641 = vst [vmem:[#allocation9 + $0x320] sm:$0xff] %v3385_v29 }
 0x17f   :  { %1392 = vmatmul.f32.gmra.mxu2 %v660_v30 }
 0x180   :  { %3642 = vst [vmem:[#allocation9 + $0x328] sm:$0xff] %v3386_v32  ;;  %1601 = vmatmul.f32.gmra.mxu3 %v661_v31  ;;  %v927_v33 = vpop.f32.mrf.mxu0  ;;  %v672_v32 = vld [vmem:[#allocation3 + $0x300] sm:$0xff] }
 0x181   :  { %v1136_v34 = vpop.f32.mrf.mxu1 }
 0x182   :  { %v1137_v35 = vadd.f32 %v1136_v34, %v927_v33  ;;  %v1345_v36 = vpop.f32.mrf.mxu2  ;;  %v673_v33 = vld [vmem:[#allocation3 + $0x308] sm:$0xff] }
 0x183   :  { %v1554_v37 = vpop.f32.mrf.mxu3  ;;  %974 = vmatmul.f32.gmra.mxu0 %v660_v30 }
 0x184   :  { %v1555_v38 = vadd.f32 %v1554_v37, %v1345_v36  ;;  %v3389_v39 = vadd.f32 %v4096_v57, %v1137_v35  ;;  %1183 = vmatmul.f32.gmra.mxu1 %v661_v31  ;;  %v715_v35 = vld [vmem:[#allocation6 + $0x58] sm:$0xff] }
 0x185   :  { %v779_v36 = vld [vmem:[#allocation6 + $0x258] sm:$0xff]  ;;  %2099 = vmatpush.msrb.mxu2 %v715_v35 }
 0x186   :  { %v3390_v42 = vadd.f32 %v4098_v60, %v1555_v38  ;;  %3645 = vst [vmem:[#allocation9 + $0x340] sm:$0xff] %v3389_v39  ;;  %2308 = vmatpush.msrb.mxu3 %v779_v36 }
 0x187   :  { %1395 = vmatmul.f32.gmra.mxu2 %v662_v40 }
 0x188   :  { %3646 = vst [vmem:[#allocation9 + $0x348] sm:$0xff] %v3390_v42  ;;  %1604 = vmatmul.f32.gmra.mxu3 %v663_v41  ;;  %v930_v43 = vpop.f32.mrf.mxu0 }
 0x189   :  { %v1139_v44 = vpop.f32.mrf.mxu1 }
 0x18a   :  { %v1140_v45 = vadd.f32 %v1139_v44, %v930_v43  ;;  %v1348_v46 = vpop.f32.mrf.mxu2  ;;  %v674_v44 = vld [vmem:[#allocation3 + $0x310] sm:$0xff] }
 0x18b   :  { %v1557_v47 = vpop.f32.mrf.mxu3  ;;  %977 = vmatmul.f32.gmra.mxu0 %v662_v40 }
 0x18c   :  { %v1558_v48 = vadd.f32 %v1557_v47, %v1348_v46  ;;  %v3393_v49 = vadd.f32 %v4096_v57, %v1140_v45  ;;  %1186 = vmatmul.f32.gmra.mxu1 %v663_v41  ;;  %v675_v45 = vld [vmem:[#allocation3 + $0x318] sm:$0xff]  ;;  %v714_v47 = vld [vmem:[#allocation6 + $0x50] sm:$0xff] }
 0x18d   :  { %1681 = vmatpush.msrb.mxu0 %v714_v47 }
 0x18e   :  { %v3394_v52 = vadd.f32 %v4098_v60, %v1558_v48  ;;  %3649 = vst [vmem:[#allocation9 + $0x360] sm:$0xff] %v3393_v49  ;;  %v778_v48 = vld [vmem:[#allocation6 + $0x250] sm:$0xff] }
 0x18f   :  { %1398 = vmatmul.f32.gmra.mxu2 %v664_v50  ;;  %1890 = vmatpush.msrb.mxu1 %v778_v48  ;;  %v686_v48 = vld [vmem:[#allocation3 + $0x370] sm:$0xff] }
 0x190   :  { %3650 = vst [vmem:[#allocation9 + $0x368] sm:$0xff] %v3394_v52  ;;  %1607 = vmatmul.f32.gmra.mxu3 %v665_v51  ;;  %v933_v55 = vpop.f32.mrf.mxu0 }
 0x191   :  { %v1142_v56 = vpop.f32.mrf.mxu1 }
 0x192   :  { %v1143_v58 = vadd.f32 %v1142_v56, %v933_v55  ;;  %v1351_v59 = vpop.f32.mrf.mxu2  ;;  %v676_v56 = vld [vmem:[#allocation3 + $0x320] sm:$0xff] }
 0x193   :  { %v1560_v61 = vpop.f32.mrf.mxu3  ;;  %980 = vmatmul.f32.gmra.mxu0 %v664_v50 }
 0x194   :  { %v1561_v62 = vadd.f32 %v1560_v61, %v1351_v59  ;;  %v3397_v63 = vadd.f32 %v4096_v57, %v1143_v58  ;;  %1189 = vmatmul.f32.gmra.mxu1 %v665_v51  ;;  %v677_v58 = vld [vmem:[#allocation3 + $0x328] sm:$0xff] }
 0x196   :  { %v3398_v2 = vadd.f32 %v4098_v60, %v1561_v62  ;;  %3653 = vst [vmem:[#allocation9 + $0x380] sm:$0xff] %v3397_v63 }
 0x197   :  { %1401 = vmatmul.f32.gmra.mxu2 %v666_v0 }
 0x198   :  { %3654 = vst [vmem:[#allocation9 + $0x388] sm:$0xff] %v3398_v2  ;;  %1610 = vmatmul.f32.gmra.mxu3 %v667_v1  ;;  %v936_v5 = vpop.f32.mrf.mxu0 }
 0x199   :  { %v1145_v6 = vpop.f32.mrf.mxu1 }
 0x19a   :  { %v1146_v7 = vadd.f32 %v1145_v6, %v936_v5  ;;  %v1354_v8 = vpop.f32.mrf.mxu2  ;;  %v679_v5 = vld [vmem:[#allocation3 + $0x338] sm:$0xff] }
 0x19b   :  { %v1563_v9 = vpop.f32.mrf.mxu3  ;;  %983 = vmatmul.f32.gmra.mxu0 %v666_v0 }
 0x19c   :  { %v1564_v10 = vadd.f32 %v1563_v9, %v1354_v8  ;;  %v3401_v11 = vadd.f32 %v4096_v57, %v1146_v7  ;;  %1192 = vmatmul.f32.gmra.mxu1 %v667_v1 }
 0x19e   :  { %v3402_v14 = vadd.f32 %v4098_v60, %v1564_v10  ;;  %3657 = vst [vmem:[#allocation9 + $0x3a0] sm:$0xff] %v3401_v11 }
 0x19f   :  { %1404 = vmatmul.f32.gmra.mxu2 %v668_v12 }
 0x1a0   :  { %3658 = vst [vmem:[#allocation9 + $0x3a8] sm:$0xff] %v3402_v14  ;;  %1613 = vmatmul.f32.gmra.mxu3 %v669_v13  ;;  %v939_v15 = vpop.f32.mrf.mxu0  ;;  %v680_v14 = vld [vmem:[#allocation3 + $0x340] sm:$0xff] }
 0x1a1   :  { %v1148_v16 = vpop.f32.mrf.mxu1 }
 0x1a2   :  { %v1149_v17 = vadd.f32 %v1148_v16, %v939_v15  ;;  %v1357_v18 = vpop.f32.mrf.mxu2  ;;  %v681_v15 = vld [vmem:[#allocation3 + $0x348] sm:$0xff] }
 0x1a3   :  { %v1566_v19 = vpop.f32.mrf.mxu3  ;;  %986 = vmatmul.f32.gmra.mxu0 %v668_v12 }
 0x1a4   :  { %v1567_v20 = vadd.f32 %v1566_v19, %v1357_v18  ;;  %v3405_v21 = vadd.f32 %v4096_v57, %v1149_v17  ;;  %1195 = vmatmul.f32.gmra.mxu1 %v669_v13  ;;  %v711_v17 = vld [vmem:[#allocation6 + $0x38] sm:$0xff] }
 0x1a5   :  { %v775_v18 = vld [vmem:[#allocation6 + $0x238] sm:$0xff]  ;;  %2100 = vmatpush.msrb.mxu2 %v711_v17 }
 0x1a6   :  { %v3406_v24 = vadd.f32 %v4098_v60, %v1567_v20  ;;  %3661 = vst [vmem:[#allocation9 + $0x3c0] sm:$0xff] %v3405_v21  ;;  %2309 = vmatpush.msrb.mxu3 %v775_v18 }
 0x1a7   :  { %1407 = vmatmul.f32.gmra.mxu2 %v670_v22 }
 0x1a8   :  { %3662 = vst [vmem:[#allocation9 + $0x3c8] sm:$0xff] %v3406_v24  ;;  %1616 = vmatmul.f32.gmra.mxu3 %v671_v23  ;;  %v942_v25 = vpop.f32.mrf.mxu0 }
 0x1a9   :  { %v1151_v26 = vpop.f32.mrf.mxu1 }
 0x1aa   :  { %v1152_v27 = vadd.f32 %v1151_v26, %v942_v25  ;;  %v1360_v28 = vpop.f32.mrf.mxu2  ;;  %v682_v26 = vld [vmem:[#allocation3 + $0x350] sm:$0xff] }
 0x1ab   :  { %v1569_v29 = vpop.f32.mrf.mxu3  ;;  %989 = vmatmul.f32.gmra.mxu0 %v670_v22 }
 0x1ac   :  { %v1570_v30 = vadd.f32 %v1569_v29, %v1360_v28  ;;  %v3409_v31 = vadd.f32 %v4096_v57, %v1152_v27  ;;  %1198 = vmatmul.f32.gmra.mxu1 %v671_v23  ;;  %v683_v27 = vld [vmem:[#allocation3 + $0x358] sm:$0xff]  ;;  %v710_v29 = vld [vmem:[#allocation6 + $0x30] sm:$0xff] }
 0x1ad   :  { %1682 = vmatpush.msrb.mxu0 %v710_v29 }
 0x1ae   :  { %v3410_v34 = vadd.f32 %v4098_v60, %v1570_v30  ;;  %3665 = vst [vmem:[#allocation9 + $0x3e0] sm:$0xff] %v3409_v31  ;;  %v774_v30 = vld [vmem:[#allocation6 + $0x230] sm:$0xff] }
 0x1af   :  { %1410 = vmatmul.f32.gmra.mxu2 %v672_v32  ;;  %1891 = vmatpush.msrb.mxu1 %v774_v30  ;;  %v694_v30 = vld [vmem:[#allocation3 + $0x3b0] sm:$0xff] }
 0x1b0   :  { %3666 = vst [vmem:[#allocation9 + $0x3e8] sm:$0xff] %v3410_v34  ;;  %1619 = vmatmul.f32.gmra.mxu3 %v673_v33  ;;  %v945_v37 = vpop.f32.mrf.mxu0 }
 0x1b1   :  { %v1154_v38 = vpop.f32.mrf.mxu1 }
 0x1b2   :  { %v1155_v39 = vadd.f32 %v1154_v38, %v945_v37  ;;  %v1363_v40 = vpop.f32.mrf.mxu2  ;;  %v684_v38 = vld [vmem:[#allocation3 + $0x360] sm:$0xff] }
 0x1b3   :  { %v1572_v41 = vpop.f32.mrf.mxu3  ;;  %992 = vmatmul.f32.gmra.mxu0 %v672_v32 }
 0x1b4   :  { %v1573_v42 = vadd.f32 %v1572_v41, %v1363_v40  ;;  %v3413_v43 = vadd.f32 %v4096_v57, %v1155_v39  ;;  %1201 = vmatmul.f32.gmra.mxu1 %v673_v33  ;;  %v685_v39 = vld [vmem:[#allocation3 + $0x368] sm:$0xff] }
 0x1b6   :  { %v3414_v46 = vadd.f32 %v4098_v60, %v1573_v42  ;;  %3669 = vst [vmem:[#allocation9 + $0x400] sm:$0xff] %v3413_v43 }
 0x1b7   :  { %1413 = vmatmul.f32.gmra.mxu2 %v674_v44 }
 0x1b8   :  { %3670 = vst [vmem:[#allocation9 + $0x408] sm:$0xff] %v3414_v46  ;;  %1622 = vmatmul.f32.gmra.mxu3 %v675_v45  ;;  %v948_v49 = vpop.f32.mrf.mxu0 }
 0x1b9   :  { %v1157_v50 = vpop.f32.mrf.mxu1 }
 0x1ba   :  { %v1158_v51 = vadd.f32 %v1157_v50, %v948_v49  ;;  %v1366_v52 = vpop.f32.mrf.mxu2  ;;  %v687_v49 = vld [vmem:[#allocation3 + $0x378] sm:$0xff] }
 0x1bb   :  { %v1575_v53 = vpop.f32.mrf.mxu3  ;;  %995 = vmatmul.f32.gmra.mxu0 %v674_v44 }
 0x1bc   :  { %v1576_v54 = vadd.f32 %v1575_v53, %v1366_v52  ;;  %v3417_v55 = vadd.f32 %v4096_v57, %v1158_v51  ;;  %1204 = vmatmul.f32.gmra.mxu1 %v675_v45 }
 0x1be   :  { %v3418_v59 = vadd.f32 %v4098_v60, %v1576_v54  ;;  %3673 = vst [vmem:[#allocation9 + $0x420] sm:$0xff] %v3417_v55 }
 0x1bf   :  { %1416 = vmatmul.f32.gmra.mxu2 %v676_v56 }
 0x1c0   :  { %3674 = vst [vmem:[#allocation9 + $0x428] sm:$0xff] %v3418_v59  ;;  %1625 = vmatmul.f32.gmra.mxu3 %v677_v58  ;;  %v951_v61 = vpop.f32.mrf.mxu0  ;;  %v688_v59 = vld [vmem:[#allocation3 + $0x380] sm:$0xff] }
 0x1c1   :  { %v1160_v62 = vpop.f32.mrf.mxu1 }
 0x1c2   :  { %v1161_v63 = vadd.f32 %v1160_v62, %v951_v61  ;;  %v1369_v0 = vpop.f32.mrf.mxu2  ;;  %v689_v61 = vld [vmem:[#allocation3 + $0x388] sm:$0xff] }
 0x1c3   :  { %v1578_v1 = vpop.f32.mrf.mxu3  ;;  %998 = vmatmul.f32.gmra.mxu0 %v676_v56 }
 0x1c4   :  { %v1579_v2 = vadd.f32 %v1578_v1, %v1369_v0  ;;  %v3421_v3 = vadd.f32 %v4096_v57, %v1161_v63  ;;  %1207 = vmatmul.f32.gmra.mxu1 %v677_v58  ;;  %v707_v63 = vld [vmem:[#allocation6 + $0x18] sm:$0xff] }
 0x1c5   :  { %v771_v0 = vld [vmem:[#allocation6 + $0x218] sm:$0xff]  ;;  %2101 = vmatpush.msrb.mxu2 %v707_v63  ;;  %v701_v63 = vld [vmem:[#allocation3 + $0x3e8] sm:$0xff] }
 0x1c6   :  { %v3422_v6 = vadd.f32 %v4098_v60, %v1579_v2  ;;  %3677 = vst [vmem:[#allocation9 + $0x440] sm:$0xff] %v3421_v3  ;;  %2310 = vmatpush.msrb.mxu3 %v771_v0 }
 0x1c7   :  { %1419 = vmatmul.f32.gmra.mxu2 %v678_v4 }
 0x1c8   :  { %3678 = vst [vmem:[#allocation9 + $0x448] sm:$0xff] %v3422_v6  ;;  %1628 = vmatmul.f32.gmra.mxu3 %v679_v5  ;;  %v954_v7 = vpop.f32.mrf.mxu0 }
 0x1c9   :  { %v1163_v8 = vpop.f32.mrf.mxu1 }
 0x1ca   :  { %v1164_v9 = vadd.f32 %v1163_v8, %v954_v7  ;;  %v1372_v10 = vpop.f32.mrf.mxu2  ;;  %v690_v8 = vld [vmem:[#allocation3 + $0x390] sm:$0xff] }
 0x1cb   :  { %v1581_v11 = vpop.f32.mrf.mxu3  ;;  %1001 = vmatmul.f32.gmra.mxu0 %v678_v4 }
 0x1cc   :  { %v1582_v12 = vadd.f32 %v1581_v11, %v1372_v10  ;;  %v3425_v13 = vadd.f32 %v4096_v57, %v1164_v9  ;;  %1210 = vmatmul.f32.gmra.mxu1 %v679_v5  ;;  %v691_v9 = vld [vmem:[#allocation3 + $0x398] sm:$0xff]  ;;  %v706_v11 = vld [vmem:[#allocation6 + $0x10] sm:$0xff] }
 0x1cd   :  { %1683 = vmatpush.msrb.mxu0 %v706_v11 }
 0x1ce   :  { %v3426_v16 = vadd.f32 %v4098_v60, %v1582_v12  ;;  %3681 = vst [vmem:[#allocation9 + $0x460] sm:$0xff] %v3425_v13  ;;  %v770_v12 = vld [vmem:[#allocation6 + $0x210] sm:$0xff] }
 0x1cf   :  { %1422 = vmatmul.f32.gmra.mxu2 %v680_v14  ;;  %1892 = vmatpush.msrb.mxu1 %v770_v12 }
 0x1d0   :  { %3682 = vst [vmem:[#allocation9 + $0x468] sm:$0xff] %v3426_v16  ;;  %1631 = vmatmul.f32.gmra.mxu3 %v681_v15  ;;  %v957_v19 = vpop.f32.mrf.mxu0 }
 0x1d1   :  { %v1166_v20 = vpop.f32.mrf.mxu1 }
 0x1d2   :  { %v1167_v21 = vadd.f32 %v1166_v20, %v957_v19  ;;  %v1375_v22 = vpop.f32.mrf.mxu2  ;;  %v692_v20 = vld [vmem:[#allocation3 + $0x3a0] sm:$0xff] }
 0x1d3   :  { %v1584_v23 = vpop.f32.mrf.mxu3  ;;  %1004 = vmatmul.f32.gmra.mxu0 %v680_v14 }
 0x1d4   :  { %v1585_v24 = vadd.f32 %v1584_v23, %v1375_v22  ;;  %v3429_v25 = vadd.f32 %v4096_v57, %v1167_v21  ;;  %1213 = vmatmul.f32.gmra.mxu1 %v681_v15  ;;  %v693_v21 = vld [vmem:[#allocation3 + $0x3a8] sm:$0xff] }
 0x1d6   :  { %v3430_v28 = vadd.f32 %v4098_v60, %v1585_v24  ;;  %3685 = vst [vmem:[#allocation9 + $0x480] sm:$0xff] %v3429_v25 }
 0x1d7   :  { %1425 = vmatmul.f32.gmra.mxu2 %v682_v26 }
 0x1d8   :  { %3686 = vst [vmem:[#allocation9 + $0x488] sm:$0xff] %v3430_v28  ;;  %1634 = vmatmul.f32.gmra.mxu3 %v683_v27  ;;  %v960_v31 = vpop.f32.mrf.mxu0 }
 0x1d9   :  { %v1169_v32 = vpop.f32.mrf.mxu1 }
 0x1da   :  { %v1170_v33 = vadd.f32 %v1169_v32, %v960_v31  ;;  %v1378_v34 = vpop.f32.mrf.mxu2  ;;  %v695_v31 = vld [vmem:[#allocation3 + $0x3b8] sm:$0xff] }
 0x1db   :  { %v1587_v35 = vpop.f32.mrf.mxu3  ;;  %1007 = vmatmul.f32.gmra.mxu0 %v682_v26 }
 0x1dc   :  { %v1588_v36 = vadd.f32 %v1587_v35, %v1378_v34  ;;  %v3433_v37 = vadd.f32 %v4096_v57, %v1170_v33  ;;  %1216 = vmatmul.f32.gmra.mxu1 %v683_v27 }
 0x1de   :  { %v3434_v40 = vadd.f32 %v4098_v60, %v1588_v36  ;;  %3689 = vst [vmem:[#allocation9 + $0x4a0] sm:$0xff] %v3433_v37 }
 0x1df   :  { %1428 = vmatmul.f32.gmra.mxu2 %v684_v38 }
 0x1e0   :  { %3690 = vst [vmem:[#allocation9 + $0x4a8] sm:$0xff] %v3434_v40  ;;  %1637 = vmatmul.f32.gmra.mxu3 %v685_v39  ;;  %v963_v41 = vpop.f32.mrf.mxu0  ;;  %v696_v40 = vld [vmem:[#allocation3 + $0x3c0] sm:$0xff] }
 0x1e1   :  { %v1172_v42 = vpop.f32.mrf.mxu1 }
 0x1e2   :  { %v1173_v43 = vadd.f32 %v1172_v42, %v963_v41  ;;  %v1381_v44 = vpop.f32.mrf.mxu2  ;;  %v697_v41 = vld [vmem:[#allocation3 + $0x3c8] sm:$0xff] }
 0x1e3   :  { %v1590_v45 = vpop.f32.mrf.mxu3  ;;  %1010 = vmatmul.f32.gmra.mxu0 %v684_v38 }
 0x1e4   :  { %v1591_v46 = vadd.f32 %v1590_v45, %v1381_v44  ;;  %v3437_v47 = vadd.f32 %v4096_v57, %v1173_v43  ;;  %1219 = vmatmul.f32.gmra.mxu1 %v685_v39 }
 0x1e6   :  { %v3438_v50 = vadd.f32 %v4098_v60, %v1591_v46  ;;  %3693 = vst [vmem:[#allocation9 + $0x4c0] sm:$0xff] %v3437_v47 }
 0x1e7   :  { %1431 = vmatmul.f32.gmra.mxu2 %v686_v48 }
 0x1e8   :  { %3694 = vst [vmem:[#allocation9 + $0x4c8] sm:$0xff] %v3438_v50  ;;  %1640 = vmatmul.f32.gmra.mxu3 %v687_v49  ;;  %v966_v51 = vpop.f32.mrf.mxu0  ;;  %v698_v50 = vld [vmem:[#allocation3 + $0x3d0] sm:$0xff] }
 0x1e9   :  { %v1175_v52 = vpop.f32.mrf.mxu1 }
 0x1ea   :  { %v1176_v53 = vadd.f32 %v1175_v52, %v966_v51  ;;  %v1384_v54 = vpop.f32.mrf.mxu2  ;;  %v699_v51 = vld [vmem:[#allocation3 + $0x3d8] sm:$0xff] }
 0x1eb   :  { %v1593_v55 = vpop.f32.mrf.mxu3  ;;  %1013 = vmatmul.f32.gmra.mxu0 %v686_v48 }
 0x1ec   :  { %v1594_v56 = vadd.f32 %v1593_v55, %v1384_v54  ;;  %v3441_v58 = vadd.f32 %v4096_v57, %v1176_v53  ;;  %1222 = vmatmul.f32.gmra.mxu1 %v687_v49 }
 0x1ee   :  { %v3442_v62 = vadd.f32 %v4098_v60, %v1594_v56  ;;  %3697 = vst [vmem:[#allocation9 + $0x4e0] sm:$0xff] %v3441_v58 }
 0x1ef   :  { %1434 = vmatmul.f32.gmra.mxu2 %v688_v59 }
 0x1f0   :  { %3698 = vst [vmem:[#allocation9 + $0x4e8] sm:$0xff] %v3442_v62  ;;  %1643 = vmatmul.f32.gmra.mxu3 %v689_v61  ;;  %v969_v1 = vpop.f32.mrf.mxu0  ;;  %v700_v62 = vld [vmem:[#allocation3 + $0x3e0] sm:$0xff] }
 0x1f1   :  { %v1178_v2 = vpop.f32.mrf.mxu1 }
 0x1f2   :  { %v1179_v3 = vadd.f32 %v1178_v2, %v969_v1  ;;  %v1387_v4 = vpop.f32.mrf.mxu2 }
 0x1f3   :  { %v1596_v5 = vpop.f32.mrf.mxu3  ;;  %1016 = vmatmul.f32.gmra.mxu0 %v688_v59 }
 0x1f4   :  { %v1597_v6 = vadd.f32 %v1596_v5, %v1387_v4  ;;  %v3445_v7 = vadd.f32 %v4096_v57, %v1179_v3  ;;  %1225 = vmatmul.f32.gmra.mxu1 %v689_v61 }
 0x1f6   :  { %v3446_v10 = vadd.f32 %v4098_v60, %v1597_v6  ;;  %3701 = vst [vmem:[#allocation9 + $0x500] sm:$0xff] %v3445_v7 }
 0x1f7   :  { %1437 = vmatmul.f32.gmra.mxu2 %v690_v8 }
 0x1f8   :  { %3702 = vst [vmem:[#allocation9 + $0x508] sm:$0xff] %v3446_v10  ;;  %1646 = vmatmul.f32.gmra.mxu3 %v691_v9  ;;  %v972_v13 = vpop.f32.mrf.mxu0 }
 0x1f9   :  { %v1181_v14 = vpop.f32.mrf.mxu1 }
 0x1fa   :  { %v1182_v15 = vadd.f32 %v1181_v14, %v972_v13  ;;  %v1390_v16 = vpop.f32.mrf.mxu2 }
 0x1fb   :  { %v1599_v17 = vpop.f32.mrf.mxu3  ;;  %1019 = vmatmul.f32.gmra.mxu0 %v690_v8  ;;  %v702_v8 = vld [vmem:[#allocation3 + $0x3f0] sm:$0xff] }
 0x1fc   :  { %v1600_v18 = vadd.f32 %v1599_v17, %v1390_v16  ;;  %v3449_v19 = vadd.f32 %v4096_v57, %v1182_v15  ;;  %1228 = vmatmul.f32.gmra.mxu1 %v691_v9  ;;  %v703_v9 = vld [vmem:[#allocation3 + $0x3f8] sm:$0xff] }
 0x1fe   :  { %v3450_v22 = vadd.f32 %v4098_v60, %v1600_v18  ;;  %3705 = vst [vmem:[#allocation9 + $0x520] sm:$0xff] %v3449_v19  ;;  %v3825_v19 = vld [vmem:[#allocation3] sm:$0xff] }
 0x1ff   :  { %1440 = vmatmul.f32.gmra.mxu2 %v692_v20 }
 0x200   :  { %3706 = vst [vmem:[#allocation9 + $0x528] sm:$0xff] %v3450_v22  ;;  %1649 = vmatmul.f32.gmra.mxu3 %v693_v21  ;;  %v975_v23 = vpop.f32.mrf.mxu0 }
 0x201   :  { %v1184_v24 = vpop.f32.mrf.mxu1 }
 0x202   :  { %v1185_v25 = vadd.f32 %v1184_v24, %v975_v23  ;;  %v1393_v26 = vpop.f32.mrf.mxu2 }
 0x203   :  { %v1602_v27 = vpop.f32.mrf.mxu3  ;;  %1022 = vmatmul.f32.gmra.mxu0 %v692_v20  ;;  %v3826_v20 = vld [vmem:[#allocation3 + $0x8] sm:$0xff] }
 0x204   :  { %v1603_v28 = vadd.f32 %v1602_v27, %v1393_v26  ;;  %v3453_v29 = vadd.f32 %v4096_v57, %v1185_v25  ;;  %1231 = vmatmul.f32.gmra.mxu1 %v693_v21 }
 0x206   :  { %v3454_v32 = vadd.f32 %v4098_v60, %v1603_v28  ;;  %3709 = vst [vmem:[#allocation9 + $0x540] sm:$0xff] %v3453_v29  ;;  %v3827_v29 = vld [vmem:[#allocation3 + $0x10] sm:$0xff] }
 0x207   :  { %1443 = vmatmul.f32.gmra.mxu2 %v694_v30 }
 0x208   :  { %3710 = vst [vmem:[#allocation9 + $0x548] sm:$0xff] %v3454_v32  ;;  %1652 = vmatmul.f32.gmra.mxu3 %v695_v31  ;;  %v978_v33 = vpop.f32.mrf.mxu0 }
 0x209   :  { %v1187_v34 = vpop.f32.mrf.mxu1 }
 0x20a   :  { %v1188_v35 = vadd.f32 %v1187_v34, %v978_v33  ;;  %v1396_v36 = vpop.f32.mrf.mxu2 }
 0x20b   :  { %v1605_v37 = vpop.f32.mrf.mxu3  ;;  %1025 = vmatmul.f32.gmra.mxu0 %v694_v30  ;;  %v3828_v30 = vld [vmem:[#allocation3 + $0x18] sm:$0xff] }
 0x20c   :  { %v1606_v38 = vadd.f32 %v1605_v37, %v1396_v36  ;;  %v3457_v39 = vadd.f32 %v4096_v57, %v1188_v35  ;;  %1234 = vmatmul.f32.gmra.mxu1 %v695_v31 }
 0x20e   :  { %v3458_v42 = vadd.f32 %v4098_v60, %v1606_v38  ;;  %3713 = vst [vmem:[#allocation9 + $0x560] sm:$0xff] %v3457_v39  ;;  %v3829_v39 = vld [vmem:[#allocation3 + $0x20] sm:$0xff] }
 0x20f   :  { %1446 = vmatmul.f32.gmra.mxu2 %v696_v40 }
 0x210   :  { %3714 = vst [vmem:[#allocation9 + $0x568] sm:$0xff] %v3458_v42  ;;  %1655 = vmatmul.f32.gmra.mxu3 %v697_v41  ;;  %v981_v43 = vpop.f32.mrf.mxu0 }
 0x211   :  { %v1190_v44 = vpop.f32.mrf.mxu1 }
 0x212   :  { %v1191_v45 = vadd.f32 %v1190_v44, %v981_v43  ;;  %v1399_v46 = vpop.f32.mrf.mxu2 }
 0x213   :  { %v1608_v47 = vpop.f32.mrf.mxu3  ;;  %1028 = vmatmul.f32.gmra.mxu0 %v696_v40  ;;  %v3830_v40 = vld [vmem:[#allocation3 + $0x28] sm:$0xff] }
 0x214   :  { %v1609_v48 = vadd.f32 %v1608_v47, %v1399_v46  ;;  %v3461_v49 = vadd.f32 %v4096_v57, %v1191_v45  ;;  %1237 = vmatmul.f32.gmra.mxu1 %v697_v41 }
 0x216   :  { %v3462_v52 = vadd.f32 %v4098_v60, %v1609_v48  ;;  %3717 = vst [vmem:[#allocation9 + $0x580] sm:$0xff] %v3461_v49  ;;  %v3831_v49 = vld [vmem:[#allocation3 + $0x30] sm:$0xff] }
 0x217   :  { %1449 = vmatmul.f32.gmra.mxu2 %v698_v50 }
 0x218   :  { %3718 = vst [vmem:[#allocation9 + $0x588] sm:$0xff] %v3462_v52  ;;  %1658 = vmatmul.f32.gmra.mxu3 %v699_v51  ;;  %v984_v53 = vpop.f32.mrf.mxu0 }
 0x219   :  { %v1193_v54 = vpop.f32.mrf.mxu1 }
 0x21a   :  { %v1194_v55 = vadd.f32 %v1193_v54, %v984_v53  ;;  %v1402_v56 = vpop.f32.mrf.mxu2 }
 0x21b   :  { %v1611_v58 = vpop.f32.mrf.mxu3  ;;  %1031 = vmatmul.f32.gmra.mxu0 %v698_v50  ;;  %v3832_v50 = vld [vmem:[#allocation3 + $0x38] sm:$0xff] }
 0x21c   :  { %v1612_v59 = vadd.f32 %v1611_v58, %v1402_v56  ;;  %v3465_v61 = vadd.f32 %v4096_v57, %v1194_v55  ;;  %1240 = vmatmul.f32.gmra.mxu1 %v699_v51 }
 0x21e   :  { %v3466_v0 = vadd.f32 %v4098_v60, %v1612_v59  ;;  %3721 = vst [vmem:[#allocation9 + $0x5a0] sm:$0xff] %v3465_v61  ;;  %v3833_v61 = vld [vmem:[#allocation3 + $0x40] sm:$0xff] }
 0x21f   :  { %1452 = vmatmul.f32.gmra.mxu2 %v700_v62 }
 0x220   :  { %3722 = vst [vmem:[#allocation9 + $0x5a8] sm:$0xff] %v3466_v0  ;;  %1661 = vmatmul.f32.gmra.mxu3 %v701_v63  ;;  %v987_v1 = vpop.f32.mrf.mxu0 }
 0x221   :  { %v1196_v2 = vpop.f32.mrf.mxu1 }
 0x222   :  { %v1197_v3 = vadd.f32 %v1196_v2, %v987_v1  ;;  %v1405_v4 = vpop.f32.mrf.mxu2 }
 0x223   :  { %v1614_v5 = vpop.f32.mrf.mxu3  ;;  %1034 = vmatmul.f32.gmra.mxu0 %v700_v62  ;;  %v3834_v62 = vld [vmem:[#allocation3 + $0x48] sm:$0xff] }
 0x224   :  { %v1615_v6 = vadd.f32 %v1614_v5, %v1405_v4  ;;  %v3469_v7 = vadd.f32 %v4096_v57, %v1197_v3  ;;  %1243 = vmatmul.f32.gmra.mxu1 %v701_v63 }
 0x226   :  { %v3470_v10 = vadd.f32 %v4098_v60, %v1615_v6  ;;  %3725 = vst [vmem:[#allocation9 + $0x5c0] sm:$0xff] %v3469_v7  ;;  %v3835_v7 = vld [vmem:[#allocation3 + $0x50] sm:$0xff] }
 0x227   :  { %1455 = vmatmul.f32.gmra.mxu2 %v702_v8 }
 0x228   :  { %3726 = vst [vmem:[#allocation9 + $0x5c8] sm:$0xff] %v3470_v10  ;;  %1664 = vmatmul.f32.gmra.mxu3 %v703_v9  ;;  %v990_v11 = vpop.f32.mrf.mxu0 }
 0x229   :  { %v1199_v12 = vpop.f32.mrf.mxu1 }
 0x22a   :  { %v1200_v13 = vadd.f32 %v1199_v12, %v990_v11  ;;  %v1408_v14 = vpop.f32.mrf.mxu2 }
 0x22b   :  { %v1617_v15 = vpop.f32.mrf.mxu3  ;;  %1037 = vmatmul.f32.gmra.mxu0 %v702_v8  ;;  %v3836_v8 = vld [vmem:[#allocation3 + $0x58] sm:$0xff] }
 0x22c   :  { %v1618_v16 = vadd.f32 %v1617_v15, %v1408_v14  ;;  %v3473_v17 = vadd.f32 %v4096_v57, %v1200_v13  ;;  %1246 = vmatmul.f32.gmra.mxu1 %v703_v9 }
 0x22e   :  { %v3474_v18 = vadd.f32 %v4098_v60, %v1618_v16  ;;  %3729 = vst [vmem:[#allocation9 + $0x5e0] sm:$0xff] %v3473_v17  ;;  %v3837_v17 = vld [vmem:[#allocation3 + $0x60] sm:$0xff] }
 0x22f   :  { %2102 = vmatmul.f32.vlgmr.msrb.gmra.mxu2 %v3825_v19 }
 0x230   :  { %3730 = vst [vmem:[#allocation9 + $0x5e8] sm:$0xff] %v3474_v18  ;;  %2311 = vmatmul.f32.vlgmr.msrb.gmra.mxu3 %v3826_v20  ;;  %v993_v21 = vpop.f32.mrf.mxu0  ;;  %v3838_v18 = vld [vmem:[#allocation3 + $0x68] sm:$0xff] }
 0x231   :  { %v1202_v22 = vpop.f32.mrf.mxu1 }
 0x232   :  { %v1203_v23 = vadd.f32 %v1202_v22, %v993_v21  ;;  %v1411_v24 = vpop.f32.mrf.mxu2 }
 0x233   :  { %v1620_v25 = vpop.f32.mrf.mxu3  ;;  %1684 = vmatmul.f32.vlgmr.msrb.gmra.mxu0 %v3825_v19 }
 0x234   :  { %v1621_v26 = vadd.f32 %v1620_v25, %v1411_v24  ;;  %v3477_v27 = vadd.f32 %v4096_v57, %v1203_v23  ;;  %1893 = vmatmul.f32.vlgmr.msrb.gmra.mxu1 %v3826_v20 }
 0x236   :  { %v3478_v28 = vadd.f32 %v4098_v60, %v1621_v26  ;;  %3733 = vst [vmem:[#allocation9 + $0x600] sm:$0xff] %v3477_v27  ;;  %v3839_v27 = vld [vmem:[#allocation3 + $0x70] sm:$0xff] }
 0x237   :  { %2105 = vmatmul.f32.gmra.mxu2 %v3827_v29 }
 0x238   :  { %3734 = vst [vmem:[#allocation9 + $0x608] sm:$0xff] %v3478_v28  ;;  %2314 = vmatmul.f32.gmra.mxu3 %v3828_v30  ;;  %v996_v31 = vpop.f32.mrf.mxu0  ;;  %v3840_v28 = vld [vmem:[#allocation3 + $0x78] sm:$0xff] }
 0x239   :  { %v1205_v32 = vpop.f32.mrf.mxu1 }
 0x23a   :  { %v1206_v33 = vadd.f32 %v1205_v32, %v996_v31  ;;  %v1414_v34 = vpop.f32.mrf.mxu2 }
 0x23b   :  { %v1623_v35 = vpop.f32.mrf.mxu3  ;;  %1687 = vmatmul.f32.gmra.mxu0 %v3827_v29 }
 0x23c   :  { %v1624_v36 = vadd.f32 %v1623_v35, %v1414_v34  ;;  %v3481_v37 = vadd.f32 %v4096_v57, %v1206_v33  ;;  %1896 = vmatmul.f32.gmra.mxu1 %v3828_v30 }
 0x23e   :  { %v3482_v38 = vadd.f32 %v4098_v60, %v1624_v36  ;;  %3737 = vst [vmem:[#allocation9 + $0x620] sm:$0xff] %v3481_v37  ;;  %v3841_v37 = vld [vmem:[#allocation3 + $0x80] sm:$0xff] }
 0x23f   :  { %2108 = vmatmul.f32.gmra.mxu2 %v3829_v39 }
 0x240   :  { %3738 = vst [vmem:[#allocation9 + $0x628] sm:$0xff] %v3482_v38  ;;  %2317 = vmatmul.f32.gmra.mxu3 %v3830_v40  ;;  %v999_v41 = vpop.f32.mrf.mxu0  ;;  %v3842_v38 = vld [vmem:[#allocation3 + $0x88] sm:$0xff] }
 0x241   :  { %v1208_v42 = vpop.f32.mrf.mxu1 }
 0x242   :  { %v1209_v43 = vadd.f32 %v1208_v42, %v999_v41  ;;  %v1417_v44 = vpop.f32.mrf.mxu2 }
 0x243   :  { %v1626_v45 = vpop.f32.mrf.mxu3  ;;  %1690 = vmatmul.f32.gmra.mxu0 %v3829_v39 }
 0x244   :  { %v1627_v46 = vadd.f32 %v1626_v45, %v1417_v44  ;;  %v3485_v47 = vadd.f32 %v4096_v57, %v1209_v43  ;;  %1899 = vmatmul.f32.gmra.mxu1 %v3830_v40 }
 0x246   :  { %v3486_v48 = vadd.f32 %v4098_v60, %v1627_v46  ;;  %3741 = vst [vmem:[#allocation9 + $0x640] sm:$0xff] %v3485_v47  ;;  %v3843_v47 = vld [vmem:[#allocation3 + $0x90] sm:$0xff] }
 0x247   :  { %2111 = vmatmul.f32.gmra.mxu2 %v3831_v49 }
 0x248   :  { %3742 = vst [vmem:[#allocation9 + $0x648] sm:$0xff] %v3486_v48  ;;  %2320 = vmatmul.f32.gmra.mxu3 %v3832_v50  ;;  %v1002_v51 = vpop.f32.mrf.mxu0  ;;  %v3844_v48 = vld [vmem:[#allocation3 + $0x98] sm:$0xff] }
 0x249   :  { %v1211_v52 = vpop.f32.mrf.mxu1 }
 0x24a   :  { %v1212_v53 = vadd.f32 %v1211_v52, %v1002_v51  ;;  %v1420_v54 = vpop.f32.mrf.mxu2 }
 0x24b   :  { %v1629_v55 = vpop.f32.mrf.mxu3  ;;  %1693 = vmatmul.f32.gmra.mxu0 %v3831_v49 }
 0x24c   :  { %v1630_v56 = vadd.f32 %v1629_v55, %v1420_v54  ;;  %v3489_v58 = vadd.f32 %v4096_v57, %v1212_v53  ;;  %1902 = vmatmul.f32.gmra.mxu1 %v3832_v50 }
 0x24e   :  { %v3490_v59 = vadd.f32 %v4098_v60, %v1630_v56  ;;  %3745 = vst [vmem:[#allocation9 + $0x660] sm:$0xff] %v3489_v58  ;;  %v3845_v58 = vld [vmem:[#allocation3 + $0xa0] sm:$0xff] }
 0x24f   :  { %2114 = vmatmul.f32.gmra.mxu2 %v3833_v61 }
 0x250   :  { %3746 = vst [vmem:[#allocation9 + $0x668] sm:$0xff] %v3490_v59  ;;  %2323 = vmatmul.f32.gmra.mxu3 %v3834_v62  ;;  %v1005_v63 = vpop.f32.mrf.mxu0  ;;  %v3846_v59 = vld [vmem:[#allocation3 + $0xa8] sm:$0xff] }
 0x251   :  { %v1214_v0 = vpop.f32.mrf.mxu1 }
 0x252   :  { %v1215_v1 = vadd.f32 %v1214_v0, %v1005_v63  ;;  %v1423_v2 = vpop.f32.mrf.mxu2 }
 0x253   :  { %v1632_v3 = vpop.f32.mrf.mxu3  ;;  %1696 = vmatmul.f32.gmra.mxu0 %v3833_v61 }
 0x254   :  { %v1633_v4 = vadd.f32 %v1632_v3, %v1423_v2  ;;  %v3493_v5 = vadd.f32 %v4096_v57, %v1215_v1  ;;  %1905 = vmatmul.f32.gmra.mxu1 %v3834_v62 }
 0x256   :  { %v3494_v6 = vadd.f32 %v4098_v60, %v1633_v4  ;;  %3749 = vst [vmem:[#allocation9 + $0x680] sm:$0xff] %v3493_v5  ;;  %v3847_v5 = vld [vmem:[#allocation3 + $0xb0] sm:$0xff] }
 0x257   :  { %2117 = vmatmul.f32.gmra.mxu2 %v3835_v7 }
 0x258   :  { %3750 = vst [vmem:[#allocation9 + $0x688] sm:$0xff] %v3494_v6  ;;  %2326 = vmatmul.f32.gmra.mxu3 %v3836_v8  ;;  %v1008_v9 = vpop.f32.mrf.mxu0  ;;  %v3848_v6 = vld [vmem:[#allocation3 + $0xb8] sm:$0xff] }
 0x259   :  { %v1217_v10 = vpop.f32.mrf.mxu1 }
 0x25a   :  { %v1218_v11 = vadd.f32 %v1217_v10, %v1008_v9  ;;  %v1426_v12 = vpop.f32.mrf.mxu2 }
 0x25b   :  { %v1635_v13 = vpop.f32.mrf.mxu3  ;;  %1699 = vmatmul.f32.gmra.mxu0 %v3835_v7 }
 0x25c   :  { %v1636_v14 = vadd.f32 %v1635_v13, %v1426_v12  ;;  %v3497_v15 = vadd.f32 %v4096_v57, %v1218_v11  ;;  %1908 = vmatmul.f32.gmra.mxu1 %v3836_v8 }
 0x25e   :  { %v3498_v16 = vadd.f32 %v4098_v60, %v1636_v14  ;;  %3753 = vst [vmem:[#allocation9 + $0x6a0] sm:$0xff] %v3497_v15  ;;  %v3849_v15 = vld [vmem:[#allocation3 + $0xc0] sm:$0xff] }
 0x25f   :  { %2120 = vmatmul.f32.gmra.mxu2 %v3837_v17 }
 0x260   :  { %3754 = vst [vmem:[#allocation9 + $0x6a8] sm:$0xff] %v3498_v16  ;;  %2329 = vmatmul.f32.gmra.mxu3 %v3838_v18  ;;  %v1011_v19 = vpop.f32.mrf.mxu0  ;;  %v3850_v16 = vld [vmem:[#allocation3 + $0xc8] sm:$0xff] }
 0x261   :  { %v1220_v20 = vpop.f32.mrf.mxu1 }
 0x262   :  { %v1221_v21 = vadd.f32 %v1220_v20, %v1011_v19  ;;  %v1429_v22 = vpop.f32.mrf.mxu2 }
 0x263   :  { %v1638_v23 = vpop.f32.mrf.mxu3  ;;  %1702 = vmatmul.f32.gmra.mxu0 %v3837_v17 }
 0x264   :  { %v1639_v24 = vadd.f32 %v1638_v23, %v1429_v22  ;;  %v3501_v25 = vadd.f32 %v4096_v57, %v1221_v21  ;;  %1911 = vmatmul.f32.gmra.mxu1 %v3838_v18 }
 0x266   :  { %v3502_v26 = vadd.f32 %v4098_v60, %v1639_v24  ;;  %3757 = vst [vmem:[#allocation9 + $0x6c0] sm:$0xff] %v3501_v25  ;;  %v3851_v25 = vld [vmem:[#allocation3 + $0xd0] sm:$0xff] }
 0x267   :  { %2123 = vmatmul.f32.gmra.mxu2 %v3839_v27 }
 0x268   :  { %3758 = vst [vmem:[#allocation9 + $0x6c8] sm:$0xff] %v3502_v26  ;;  %2332 = vmatmul.f32.gmra.mxu3 %v3840_v28  ;;  %v1014_v29 = vpop.f32.mrf.mxu0  ;;  %v3852_v26 = vld [vmem:[#allocation3 + $0xd8] sm:$0xff] }
 0x269   :  { %v1223_v30 = vpop.f32.mrf.mxu1 }
 0x26a   :  { %v1224_v31 = vadd.f32 %v1223_v30, %v1014_v29  ;;  %v1432_v32 = vpop.f32.mrf.mxu2 }
 0x26b   :  { %v1641_v33 = vpop.f32.mrf.mxu3  ;;  %1705 = vmatmul.f32.gmra.mxu0 %v3839_v27 }
 0x26c   :  { %v1642_v34 = vadd.f32 %v1641_v33, %v1432_v32  ;;  %v3505_v35 = vadd.f32 %v4096_v57, %v1224_v31  ;;  %1914 = vmatmul.f32.gmra.mxu1 %v3840_v28 }
 0x26e   :  { %v3506_v36 = vadd.f32 %v4098_v60, %v1642_v34  ;;  %3761 = vst [vmem:[#allocation9 + $0x6e0] sm:$0xff] %v3505_v35  ;;  %v3853_v35 = vld [vmem:[#allocation3 + $0xe0] sm:$0xff] }
 0x26f   :  { %2126 = vmatmul.f32.gmra.mxu2 %v3841_v37 }
 0x270   :  { %3762 = vst [vmem:[#allocation9 + $0x6e8] sm:$0xff] %v3506_v36  ;;  %2335 = vmatmul.f32.gmra.mxu3 %v3842_v38  ;;  %v1017_v39 = vpop.f32.mrf.mxu0  ;;  %v3854_v36 = vld [vmem:[#allocation3 + $0xe8] sm:$0xff] }
 0x271   :  { %v1226_v40 = vpop.f32.mrf.mxu1 }
 0x272   :  { %v1227_v41 = vadd.f32 %v1226_v40, %v1017_v39  ;;  %v1435_v42 = vpop.f32.mrf.mxu2 }
 0x273   :  { %v1644_v43 = vpop.f32.mrf.mxu3  ;;  %1708 = vmatmul.f32.gmra.mxu0 %v3841_v37 }
 0x274   :  { %v1645_v44 = vadd.f32 %v1644_v43, %v1435_v42  ;;  %v3509_v45 = vadd.f32 %v4096_v57, %v1227_v41  ;;  %1917 = vmatmul.f32.gmra.mxu1 %v3842_v38 }
 0x276   :  { %v3510_v46 = vadd.f32 %v4098_v60, %v1645_v44  ;;  %3765 = vst [vmem:[#allocation9 + $0x700] sm:$0xff] %v3509_v45  ;;  %v3855_v45 = vld [vmem:[#allocation3 + $0xf0] sm:$0xff] }
 0x277   :  { %2129 = vmatmul.f32.gmra.mxu2 %v3843_v47 }
 0x278   :  { %3766 = vst [vmem:[#allocation9 + $0x708] sm:$0xff] %v3510_v46  ;;  %2338 = vmatmul.f32.gmra.mxu3 %v3844_v48  ;;  %v1020_v49 = vpop.f32.mrf.mxu0  ;;  %v3856_v46 = vld [vmem:[#allocation3 + $0xf8] sm:$0xff] }
 0x279   :  { %v1229_v50 = vpop.f32.mrf.mxu1 }
 0x27a   :  { %v1230_v51 = vadd.f32 %v1229_v50, %v1020_v49  ;;  %v1438_v52 = vpop.f32.mrf.mxu2 }
 0x27b   :  { %v1647_v53 = vpop.f32.mrf.mxu3  ;;  %1711 = vmatmul.f32.gmra.mxu0 %v3843_v47 }
 0x27c   :  { %v1648_v54 = vadd.f32 %v1647_v53, %v1438_v52  ;;  %v3513_v55 = vadd.f32 %v4096_v57, %v1230_v51  ;;  %1920 = vmatmul.f32.gmra.mxu1 %v3844_v48 }
 0x27e   :  { %v3514_v56 = vadd.f32 %v4098_v60, %v1648_v54  ;;  %3769 = vst [vmem:[#allocation9 + $0x720] sm:$0xff] %v3513_v55  ;;  %v3857_v55 = vld [vmem:[#allocation3 + $0x100] sm:$0xff] }
 0x27f   :  { %2132 = vmatmul.f32.gmra.mxu2 %v3845_v58 }
 0x280   :  { %3770 = vst [vmem:[#allocation9 + $0x728] sm:$0xff] %v3514_v56  ;;  %2341 = vmatmul.f32.gmra.mxu3 %v3846_v59  ;;  %v1023_v61 = vpop.f32.mrf.mxu0  ;;  %v3858_v56 = vld [vmem:[#allocation3 + $0x108] sm:$0xff] }
 0x281   :  { %v1232_v62 = vpop.f32.mrf.mxu1 }
 0x282   :  { %v1233_v63 = vadd.f32 %v1232_v62, %v1023_v61  ;;  %v1441_v0 = vpop.f32.mrf.mxu2 }
 0x283   :  { %v1650_v1 = vpop.f32.mrf.mxu3  ;;  %1714 = vmatmul.f32.gmra.mxu0 %v3845_v58  ;;  %v3859_v58 = vld [vmem:[#allocation8] sm:$0xf] }
 0x284   :  { %v1651_v2 = vadd.f32 %v1650_v1, %v1441_v0  ;;  %v3517_v3 = vadd.f32 %v4096_v57, %v1233_v63  ;;  %1923 = vmatmul.f32.gmra.mxu1 %v3846_v59  ;;  %v4228_v59 = vperm.slane %v3859_v58, 2  ;;  %v4230_v63 = vperm.slane %v3859_v58, 3 }
 0x286   :  { %v3518_v4 = vadd.f32 %v4098_v60, %v1651_v2  ;;  %3773 = vst [vmem:[#allocation9 + $0x740] sm:$0xff] %v3517_v3 }
 0x287   :  { %2135 = vmatmul.f32.gmra.mxu2 %v3847_v5 }
 0x288   :  { %3774 = vst [vmem:[#allocation9 + $0x748] sm:$0xff] %v3518_v4  ;;  %2344 = vmatmul.f32.gmra.mxu3 %v3848_v6  ;;  %v1026_v7 = vpop.f32.mrf.mxu0  ;;  %v3860_v4 = vld [vmem:[#allocation3 + $0x110] sm:$0xff] }
 0x289   :  { %v1235_v8 = vpop.f32.mrf.mxu1 }
 0x28a   :  { %v1236_v9 = vadd.f32 %v1235_v8, %v1026_v7  ;;  %v1444_v10 = vpop.f32.mrf.mxu2 }
 0x28b   :  { %v1653_v11 = vpop.f32.mrf.mxu3  ;;  %1717 = vmatmul.f32.gmra.mxu0 %v3847_v5  ;;  %v3861_v5 = vld [vmem:[#allocation3 + $0x118] sm:$0xff] }
 0x28c   :  { %v1654_v12 = vadd.f32 %v1653_v11, %v1444_v10  ;;  %v3521_v13 = vadd.f32 %v4096_v57, %v1236_v9  ;;  %1926 = vmatmul.f32.gmra.mxu1 %v3848_v6 }
 0x28e   :  { %v3522_v14 = vadd.f32 %v4098_v60, %v1654_v12  ;;  %3777 = vst [vmem:[#allocation9 + $0x760] sm:$0xff] %v3521_v13 }
 0x28f   :  { %2138 = vmatmul.f32.gmra.mxu2 %v3849_v15 }
 0x290   :  { %3778 = vst [vmem:[#allocation9 + $0x768] sm:$0xff] %v3522_v14  ;;  %2347 = vmatmul.f32.gmra.mxu3 %v3850_v16  ;;  %v1029_v17 = vpop.f32.mrf.mxu0  ;;  %v3862_v14 = vld [vmem:[#allocation3 + $0x120] sm:$0xff] }
 0x291   :  { %v1238_v18 = vpop.f32.mrf.mxu1 }
 0x292   :  { %v1239_v19 = vadd.f32 %v1238_v18, %v1029_v17  ;;  %v1447_v20 = vpop.f32.mrf.mxu2 }
 0x293   :  { %v1656_v21 = vpop.f32.mrf.mxu3  ;;  %1720 = vmatmul.f32.gmra.mxu0 %v3849_v15  ;;  %v3863_v15 = vld [vmem:[#allocation3 + $0x128] sm:$0xff] }
 0x294   :  { %v1657_v22 = vadd.f32 %v1656_v21, %v1447_v20  ;;  %v3525_v23 = vadd.f32 %v4096_v57, %v1239_v19  ;;  %1929 = vmatmul.f32.gmra.mxu1 %v3850_v16 }
 0x296   :  { %v3526_v24 = vadd.f32 %v4098_v60, %v1657_v22  ;;  %3781 = vst [vmem:[#allocation9 + $0x780] sm:$0xff] %v3525_v23 }
 0x297   :  { %2141 = vmatmul.f32.gmra.mxu2 %v3851_v25 }
 0x298   :  { %3782 = vst [vmem:[#allocation9 + $0x788] sm:$0xff] %v3526_v24  ;;  %2350 = vmatmul.f32.gmra.mxu3 %v3852_v26  ;;  %v1032_v27 = vpop.f32.mrf.mxu0  ;;  %v3864_v24 = vld [vmem:[#allocation3 + $0x130] sm:$0xff] }
 0x299   :  { %v1241_v28 = vpop.f32.mrf.mxu1 }
 0x29a   :  { %v1242_v29 = vadd.f32 %v1241_v28, %v1032_v27  ;;  %v1450_v30 = vpop.f32.mrf.mxu2 }
 0x29b   :  { %v1659_v31 = vpop.f32.mrf.mxu3  ;;  %1723 = vmatmul.f32.gmra.mxu0 %v3851_v25  ;;  %v3865_v25 = vld [vmem:[#allocation3 + $0x138] sm:$0xff] }
 0x29c   :  { %v1660_v32 = vadd.f32 %v1659_v31, %v1450_v30  ;;  %v3529_v33 = vadd.f32 %v4096_v57, %v1242_v29  ;;  %1932 = vmatmul.f32.gmra.mxu1 %v3852_v26 }
 0x29e   :  { %v3530_v34 = vadd.f32 %v4098_v60, %v1660_v32  ;;  %3785 = vst [vmem:[#allocation9 + $0x7a0] sm:$0xff] %v3529_v33 }
 0x29f   :  { %2144 = vmatmul.f32.gmra.mxu2 %v3853_v35 }
 0x2a0   :  { %3786 = vst [vmem:[#allocation9 + $0x7a8] sm:$0xff] %v3530_v34  ;;  %2353 = vmatmul.f32.gmra.mxu3 %v3854_v36  ;;  %v1035_v37 = vpop.f32.mrf.mxu0  ;;  %v3866_v34 = vld [vmem:[#allocation3 + $0x140] sm:$0xff] }
 0x2a1   :  { %v1244_v38 = vpop.f32.mrf.mxu1 }
 0x2a2   :  { %v1245_v39 = vadd.f32 %v1244_v38, %v1035_v37  ;;  %v1453_v40 = vpop.f32.mrf.mxu2 }
 0x2a3   :  { %v1662_v41 = vpop.f32.mrf.mxu3  ;;  %1726 = vmatmul.f32.gmra.mxu0 %v3853_v35  ;;  %v3867_v35 = vld [vmem:[#allocation3 + $0x148] sm:$0xff] }
 0x2a4   :  { %v1663_v42 = vadd.f32 %v1662_v41, %v1453_v40  ;;  %v3533_v43 = vadd.f32 %v4096_v57, %v1245_v39  ;;  %1935 = vmatmul.f32.gmra.mxu1 %v3854_v36 }
 0x2a6   :  { %v3534_v44 = vadd.f32 %v4098_v60, %v1663_v42  ;;  %3789 = vst [vmem:[#allocation9 + $0x7c0] sm:$0xff] %v3533_v43 }
 0x2a7   :  { %2147 = vmatmul.f32.gmra.mxu2 %v3855_v45 }
 0x2a8   :  { %3790 = vst [vmem:[#allocation9 + $0x7c8] sm:$0xff] %v3534_v44  ;;  %2356 = vmatmul.f32.gmra.mxu3 %v3856_v46  ;;  %v1038_v47 = vpop.f32.mrf.mxu0  ;;  %v3868_v44 = vld [vmem:[#allocation3 + $0x150] sm:$0xff] }
 0x2a9   :  { %v1247_v48 = vpop.f32.mrf.mxu1 }
 0x2aa   :  { %v1248_v49 = vadd.f32 %v1247_v48, %v1038_v47  ;;  %v1456_v50 = vpop.f32.mrf.mxu2 }
 0x2ab   :  { %v1665_v51 = vpop.f32.mrf.mxu3  ;;  %1729 = vmatmul.f32.gmra.mxu0 %v3855_v45  ;;  %v3869_v45 = vld [vmem:[#allocation3 + $0x158] sm:$0xff] }
 0x2ac   :  { %v1666_v52 = vadd.f32 %v1665_v51, %v1456_v50  ;;  %v3537_v53 = vadd.f32 %v4096_v57, %v1248_v49  ;;  %1938 = vmatmul.f32.gmra.mxu1 %v3856_v46 }
 0x2ae   :  { %v3538_v54 = vadd.f32 %v4098_v60, %v1666_v52  ;;  %3793 = vst [vmem:[#allocation9 + $0x7e0] sm:$0xff] %v3537_v53 }
 0x2af   :  { %2150 = vmatmul.f32.gmra.mxu2 %v3857_v55 }
 0x2b0   :  { %3794 = vst [vmem:[#allocation9 + $0x7e8] sm:$0xff] %v3538_v54  ;;  %2359 = vmatmul.f32.gmra.mxu3 %v3858_v56  ;;  %v1685_v61 = vpop.f32.mrf.mxu0  ;;  %v3870_v54 = vld [vmem:[#allocation3 + $0x160] sm:$0xff] }
 0x2b1   :  { %v1894_v62 = vpop.f32.mrf.mxu1 }
 0x2b2   :  { %v1895_v0 = vadd.f32 %v1894_v62, %v1685_v61  ;;  %v2103_v1 = vpop.f32.mrf.mxu2 }
 0x2b3   :  { %v2312_v57 = vpop.f32.mrf.mxu3  ;;  %1732 = vmatmul.f32.gmra.mxu0 %v3857_v55  ;;  %v3871_v55 = vld [vmem:[#allocation3 + $0x168] sm:$0xff] }
 0x2b4   :  { %v2313_v2 = vadd.f32 %v2312_v57, %v2103_v1  ;;  %v3287_v3 = vadd.f32 %v4228_v59, %v1895_v0  ;;  %1941 = vmatmul.f32.gmra.mxu1 %v3858_v56 }
 0x2b6   :  { %v3288_v60 = vadd.f32 %v4230_v63, %v2313_v2  ;;  %3543 = vst [vmem:[#allocation9 + $0x10] sm:$0xff] %v3287_v3  ;;  %v3872_v3 = vld [vmem:[#allocation3 + $0x170] sm:$0xff] }
 0x2b7   :  { %2153 = vmatmul.f32.gmra.mxu2 %v3860_v4 }
 0x2b8   :  { %3544 = vst [vmem:[#allocation9 + $0x18] sm:$0xff] %v3288_v60  ;;  %2362 = vmatmul.f32.gmra.mxu3 %v3861_v5  ;;  %v1688_v6 = vpop.f32.mrf.mxu0  ;;  %v3873_v60 = vld [vmem:[#allocation3 + $0x178] sm:$0xff] }
 0x2b9   :  { %v1897_v7 = vpop.f32.mrf.mxu1 }
 0x2ba   :  { %v1898_v8 = vadd.f32 %v1897_v7, %v1688_v6  ;;  %v2106_v9 = vpop.f32.mrf.mxu2 }
 0x2bb   :  { %v2315_v10 = vpop.f32.mrf.mxu3  ;;  %1735 = vmatmul.f32.gmra.mxu0 %v3860_v4 }
 0x2bc   :  { %v2316_v11 = vadd.f32 %v2315_v10, %v2106_v9  ;;  %v3291_v12 = vadd.f32 %v4228_v59, %v1898_v8  ;;  %1944 = vmatmul.f32.gmra.mxu1 %v3861_v5 }
 0x2be   :  { %v3292_v13 = vadd.f32 %v4230_v63, %v2316_v11  ;;  %3547 = vst [vmem:[#allocation9 + $0x30] sm:$0xff] %v3291_v12  ;;  %v3874_v12 = vld [vmem:[#allocation3 + $0x180] sm:$0xff] }
 0x2bf   :  { %2156 = vmatmul.f32.gmra.mxu2 %v3862_v14 }
 0x2c0   :  { %3548 = vst [vmem:[#allocation9 + $0x38] sm:$0xff] %v3292_v13  ;;  %2365 = vmatmul.f32.gmra.mxu3 %v3863_v15  ;;  %v1691_v16 = vpop.f32.mrf.mxu0  ;;  %v3875_v13 = vld [vmem:[#allocation3 + $0x188] sm:$0xff] }
 0x2c1   :  { %v1900_v17 = vpop.f32.mrf.mxu1 }
 0x2c2   :  { %v1901_v18 = vadd.f32 %v1900_v17, %v1691_v16  ;;  %v2109_v19 = vpop.f32.mrf.mxu2 }
 0x2c3   :  { %v2318_v20 = vpop.f32.mrf.mxu3  ;;  %1738 = vmatmul.f32.gmra.mxu0 %v3862_v14 }
 0x2c4   :  { %v2319_v21 = vadd.f32 %v2318_v20, %v2109_v19  ;;  %v3295_v22 = vadd.f32 %v4228_v59, %v1901_v18  ;;  %1947 = vmatmul.f32.gmra.mxu1 %v3863_v15 }
 0x2c6   :  { %v3296_v23 = vadd.f32 %v4230_v63, %v2319_v21  ;;  %3551 = vst [vmem:[#allocation9 + $0x50] sm:$0xff] %v3295_v22  ;;  %v3876_v22 = vld [vmem:[#allocation3 + $0x190] sm:$0xff] }
 0x2c7   :  { %2159 = vmatmul.f32.gmra.mxu2 %v3864_v24 }
 0x2c8   :  { %3552 = vst [vmem:[#allocation9 + $0x58] sm:$0xff] %v3296_v23  ;;  %2368 = vmatmul.f32.gmra.mxu3 %v3865_v25  ;;  %v1694_v26 = vpop.f32.mrf.mxu0  ;;  %v3877_v23 = vld [vmem:[#allocation3 + $0x198] sm:$0xff] }
 0x2c9   :  { %v1903_v27 = vpop.f32.mrf.mxu1 }
 0x2ca   :  { %v1904_v28 = vadd.f32 %v1903_v27, %v1694_v26  ;;  %v2112_v29 = vpop.f32.mrf.mxu2 }
 0x2cb   :  { %v2321_v30 = vpop.f32.mrf.mxu3  ;;  %1741 = vmatmul.f32.gmra.mxu0 %v3864_v24 }
 0x2cc   :  { %v2322_v31 = vadd.f32 %v2321_v30, %v2112_v29  ;;  %v3299_v32 = vadd.f32 %v4228_v59, %v1904_v28  ;;  %1950 = vmatmul.f32.gmra.mxu1 %v3865_v25 }
 0x2ce   :  { %v3300_v33 = vadd.f32 %v4230_v63, %v2322_v31  ;;  %3555 = vst [vmem:[#allocation9 + $0x70] sm:$0xff] %v3299_v32  ;;  %v3878_v32 = vld [vmem:[#allocation3 + $0x1a0] sm:$0xff] }
 0x2cf   :  { %2162 = vmatmul.f32.gmra.mxu2 %v3866_v34 }
 0x2d0   :  { %3556 = vst [vmem:[#allocation9 + $0x78] sm:$0xff] %v3300_v33  ;;  %2371 = vmatmul.f32.gmra.mxu3 %v3867_v35  ;;  %v1697_v36 = vpop.f32.mrf.mxu0  ;;  %v3879_v33 = vld [vmem:[#allocation3 + $0x1a8] sm:$0xff] }
 0x2d1   :  { %v1906_v37 = vpop.f32.mrf.mxu1 }
 0x2d2   :  { %v1907_v38 = vadd.f32 %v1906_v37, %v1697_v36  ;;  %v2115_v39 = vpop.f32.mrf.mxu2 }
 0x2d3   :  { %v2324_v40 = vpop.f32.mrf.mxu3  ;;  %1744 = vmatmul.f32.gmra.mxu0 %v3866_v34 }
 0x2d4   :  { %v2325_v41 = vadd.f32 %v2324_v40, %v2115_v39  ;;  %v3303_v42 = vadd.f32 %v4228_v59, %v1907_v38  ;;  %1953 = vmatmul.f32.gmra.mxu1 %v3867_v35 }
 0x2d6   :  { %v3304_v43 = vadd.f32 %v4230_v63, %v2325_v41  ;;  %3559 = vst [vmem:[#allocation9 + $0x90] sm:$0xff] %v3303_v42  ;;  %v3880_v42 = vld [vmem:[#allocation3 + $0x1b0] sm:$0xff] }
 0x2d7   :  { %2165 = vmatmul.f32.gmra.mxu2 %v3868_v44 }
 0x2d8   :  { %3560 = vst [vmem:[#allocation9 + $0x98] sm:$0xff] %v3304_v43  ;;  %2374 = vmatmul.f32.gmra.mxu3 %v3869_v45  ;;  %v1700_v46 = vpop.f32.mrf.mxu0  ;;  %v3881_v43 = vld [vmem:[#allocation3 + $0x1b8] sm:$0xff] }
 0x2d9   :  { %v1909_v47 = vpop.f32.mrf.mxu1 }
 0x2da   :  { %v1910_v48 = vadd.f32 %v1909_v47, %v1700_v46  ;;  %v2118_v49 = vpop.f32.mrf.mxu2 }
 0x2db   :  { %v2327_v50 = vpop.f32.mrf.mxu3  ;;  %1747 = vmatmul.f32.gmra.mxu0 %v3868_v44 }
 0x2dc   :  { %v2328_v51 = vadd.f32 %v2327_v50, %v2118_v49  ;;  %v3307_v52 = vadd.f32 %v4228_v59, %v1910_v48  ;;  %1956 = vmatmul.f32.gmra.mxu1 %v3869_v45 }
 0x2de   :  { %v3308_v53 = vadd.f32 %v4230_v63, %v2328_v51  ;;  %3563 = vst [vmem:[#allocation9 + $0xb0] sm:$0xff] %v3307_v52  ;;  %v3882_v52 = vld [vmem:[#allocation3 + $0x1c0] sm:$0xff] }
 0x2df   :  { %2168 = vmatmul.f32.gmra.mxu2 %v3870_v54 }
 0x2e0   :  { %3564 = vst [vmem:[#allocation9 + $0xb8] sm:$0xff] %v3308_v53  ;;  %2377 = vmatmul.f32.gmra.mxu3 %v3871_v55  ;;  %v1703_v56 = vpop.f32.mrf.mxu0  ;;  %v3883_v53 = vld [vmem:[#allocation3 + $0x1c8] sm:$0xff] }
 0x2e1   :  { %v1912_v58 = vpop.f32.mrf.mxu1 }
 0x2e2   :  { %v1913_v61 = vadd.f32 %v1912_v58, %v1703_v56  ;;  %v2121_v62 = vpop.f32.mrf.mxu2 }
 0x2e3   :  { %v2330_v0 = vpop.f32.mrf.mxu3  ;;  %1750 = vmatmul.f32.gmra.mxu0 %v3870_v54 }
 0x2e4   :  { %v2331_v1 = vadd.f32 %v2330_v0, %v2121_v62  ;;  %v3311_v57 = vadd.f32 %v4228_v59, %v1913_v61  ;;  %1959 = vmatmul.f32.gmra.mxu1 %v3871_v55 }
 0x2e6   :  { %v3312_v2 = vadd.f32 %v4230_v63, %v2331_v1  ;;  %3567 = vst [vmem:[#allocation9 + $0xd0] sm:$0xff] %v3311_v57  ;;  %v3884_v57 = vld [vmem:[#allocation3 + $0x1d0] sm:$0xff] }
 0x2e7   :  { %2171 = vmatmul.f32.gmra.mxu2 %v3872_v3 }
 0x2e8   :  { %3568 = vst [vmem:[#allocation9 + $0xd8] sm:$0xff] %v3312_v2  ;;  %2380 = vmatmul.f32.gmra.mxu3 %v3873_v60  ;;  %v1706_v4 = vpop.f32.mrf.mxu0  ;;  %v3885_v2 = vld [vmem:[#allocation3 + $0x1d8] sm:$0xff] }
 0x2e9   :  { %v1915_v5 = vpop.f32.mrf.mxu1 }
 0x2ea   :  { %v1916_v6 = vadd.f32 %v1915_v5, %v1706_v4  ;;  %v2124_v7 = vpop.f32.mrf.mxu2 }
 0x2eb   :  { %v2333_v8 = vpop.f32.mrf.mxu3  ;;  %1753 = vmatmul.f32.gmra.mxu0 %v3872_v3 }
 0x2ec   :  { %v2334_v9 = vadd.f32 %v2333_v8, %v2124_v7  ;;  %v3315_v10 = vadd.f32 %v4228_v59, %v1916_v6  ;;  %1962 = vmatmul.f32.gmra.mxu1 %v3873_v60 }
 0x2ee   :  { %v3316_v11 = vadd.f32 %v4230_v63, %v2334_v9  ;;  %3571 = vst [vmem:[#allocation9 + $0xf0] sm:$0xff] %v3315_v10  ;;  %v3886_v10 = vld [vmem:[#allocation3 + $0x1e0] sm:$0xff] }
 0x2ef   :  { %2174 = vmatmul.f32.gmra.mxu2 %v3874_v12 }
 0x2f0   :  { %3572 = vst [vmem:[#allocation9 + $0xf8] sm:$0xff] %v3316_v11  ;;  %2383 = vmatmul.f32.gmra.mxu3 %v3875_v13  ;;  %v1709_v14 = vpop.f32.mrf.mxu0  ;;  %v3887_v11 = vld [vmem:[#allocation3 + $0x1e8] sm:$0xff] }
 0x2f1   :  { %v1918_v15 = vpop.f32.mrf.mxu1 }
 0x2f2   :  { %v1919_v16 = vadd.f32 %v1918_v15, %v1709_v14  ;;  %v2127_v17 = vpop.f32.mrf.mxu2 }
 0x2f3   :  { %v2336_v18 = vpop.f32.mrf.mxu3  ;;  %1756 = vmatmul.f32.gmra.mxu0 %v3874_v12 }
 0x2f4   :  { %v2337_v19 = vadd.f32 %v2336_v18, %v2127_v17  ;;  %v3319_v20 = vadd.f32 %v4228_v59, %v1919_v16  ;;  %1965 = vmatmul.f32.gmra.mxu1 %v3875_v13 }
 0x2f6   :  { %v3320_v21 = vadd.f32 %v4230_v63, %v2337_v19  ;;  %3575 = vst [vmem:[#allocation9 + $0x110] sm:$0xff] %v3319_v20  ;;  %v3888_v20 = vld [vmem:[#allocation3 + $0x1f0] sm:$0xff] }
 0x2f7   :  { %2177 = vmatmul.f32.gmra.mxu2 %v3876_v22 }
 0x2f8   :  { %3576 = vst [vmem:[#allocation9 + $0x118] sm:$0xff] %v3320_v21  ;;  %2386 = vmatmul.f32.gmra.mxu3 %v3877_v23  ;;  %v1712_v24 = vpop.f32.mrf.mxu0  ;;  %v3889_v21 = vld [vmem:[#allocation3 + $0x1f8] sm:$0xff] }
 0x2f9   :  { %v1921_v25 = vpop.f32.mrf.mxu1 }
 0x2fa   :  { %v1922_v26 = vadd.f32 %v1921_v25, %v1712_v24  ;;  %v2130_v27 = vpop.f32.mrf.mxu2 }
 0x2fb   :  { %v2339_v28 = vpop.f32.mrf.mxu3  ;;  %1759 = vmatmul.f32.gmra.mxu0 %v3876_v22 }
 0x2fc   :  { %v2340_v29 = vadd.f32 %v2339_v28, %v2130_v27  ;;  %v3323_v30 = vadd.f32 %v4228_v59, %v1922_v26  ;;  %1968 = vmatmul.f32.gmra.mxu1 %v3877_v23 }
 0x2fe   :  { %v3324_v31 = vadd.f32 %v4230_v63, %v2340_v29  ;;  %3579 = vst [vmem:[#allocation9 + $0x130] sm:$0xff] %v3323_v30  ;;  %v3890_v30 = vld [vmem:[#allocation3 + $0x200] sm:$0xff] }
 0x2ff   :  { %2180 = vmatmul.f32.gmra.mxu2 %v3878_v32 }
 0x300   :  { %3580 = vst [vmem:[#allocation9 + $0x138] sm:$0xff] %v3324_v31  ;;  %2389 = vmatmul.f32.gmra.mxu3 %v3879_v33  ;;  %v1715_v34 = vpop.f32.mrf.mxu0  ;;  %v3891_v31 = vld [vmem:[#allocation3 + $0x208] sm:$0xff] }
 0x301   :  { %v1924_v35 = vpop.f32.mrf.mxu1 }
 0x302   :  { %v1925_v36 = vadd.f32 %v1924_v35, %v1715_v34  ;;  %v2133_v37 = vpop.f32.mrf.mxu2 }
 0x303   :  { %v2342_v38 = vpop.f32.mrf.mxu3  ;;  %1762 = vmatmul.f32.gmra.mxu0 %v3878_v32 }
 0x304   :  { %v2343_v39 = vadd.f32 %v2342_v38, %v2133_v37  ;;  %v3327_v40 = vadd.f32 %v4228_v59, %v1925_v36  ;;  %1971 = vmatmul.f32.gmra.mxu1 %v3879_v33 }
 0x306   :  { %v3328_v41 = vadd.f32 %v4230_v63, %v2343_v39  ;;  %3583 = vst [vmem:[#allocation9 + $0x150] sm:$0xff] %v3327_v40  ;;  %v3892_v40 = vld [vmem:[#allocation3 + $0x210] sm:$0xff] }
 0x307   :  { %2183 = vmatmul.f32.gmra.mxu2 %v3880_v42 }
 0x308   :  { %3584 = vst [vmem:[#allocation9 + $0x158] sm:$0xff] %v3328_v41  ;;  %2392 = vmatmul.f32.gmra.mxu3 %v3881_v43  ;;  %v1718_v44 = vpop.f32.mrf.mxu0  ;;  %v3893_v41 = vld [vmem:[#allocation3 + $0x218] sm:$0xff] }
 0x309   :  { %v1927_v45 = vpop.f32.mrf.mxu1 }
 0x30a   :  { %v1928_v46 = vadd.f32 %v1927_v45, %v1718_v44  ;;  %v2136_v47 = vpop.f32.mrf.mxu2 }
 0x30b   :  { %v2345_v48 = vpop.f32.mrf.mxu3  ;;  %1765 = vmatmul.f32.gmra.mxu0 %v3880_v42 }
 0x30c   :  { %v2346_v49 = vadd.f32 %v2345_v48, %v2136_v47  ;;  %v3331_v50 = vadd.f32 %v4228_v59, %v1928_v46  ;;  %1974 = vmatmul.f32.gmra.mxu1 %v3881_v43 }
 0x30e   :  { %v3332_v51 = vadd.f32 %v4230_v63, %v2346_v49  ;;  %3587 = vst [vmem:[#allocation9 + $0x170] sm:$0xff] %v3331_v50  ;;  %v3894_v50 = vld [vmem:[#allocation3 + $0x220] sm:$0xff] }
 0x30f   :  { %2186 = vmatmul.f32.gmra.mxu2 %v3882_v52 }
 0x310   :  { %3588 = vst [vmem:[#allocation9 + $0x178] sm:$0xff] %v3332_v51  ;;  %2395 = vmatmul.f32.gmra.mxu3 %v3883_v53  ;;  %v1721_v54 = vpop.f32.mrf.mxu0  ;;  %v3895_v51 = vld [vmem:[#allocation3 + $0x228] sm:$0xff] }
 0x311   :  { %v1930_v55 = vpop.f32.mrf.mxu1 }
 0x312   :  { %v1931_v56 = vadd.f32 %v1930_v55, %v1721_v54  ;;  %v2139_v58 = vpop.f32.mrf.mxu2 }
 0x313   :  { %v2348_v61 = vpop.f32.mrf.mxu3  ;;  %1768 = vmatmul.f32.gmra.mxu0 %v3882_v52 }
 0x314   :  { %v2349_v62 = vadd.f32 %v2348_v61, %v2139_v58  ;;  %v3335_v0 = vadd.f32 %v4228_v59, %v1931_v56  ;;  %1977 = vmatmul.f32.gmra.mxu1 %v3883_v53 }
 0x316   :  { %v3336_v1 = vadd.f32 %v4230_v63, %v2349_v62  ;;  %3591 = vst [vmem:[#allocation9 + $0x190] sm:$0xff] %v3335_v0  ;;  %v3896_v0 = vld [vmem:[#allocation3 + $0x230] sm:$0xff] }
 0x317   :  { %2189 = vmatmul.f32.gmra.mxu2 %v3884_v57 }
 0x318   :  { %3592 = vst [vmem:[#allocation9 + $0x198] sm:$0xff] %v3336_v1  ;;  %2398 = vmatmul.f32.gmra.mxu3 %v3885_v2  ;;  %v1724_v3 = vpop.f32.mrf.mxu0  ;;  %v3897_v1 = vld [vmem:[#allocation3 + $0x238] sm:$0xff] }
 0x319   :  { %v1933_v60 = vpop.f32.mrf.mxu1 }
 0x31a   :  { %v1934_v4 = vadd.f32 %v1933_v60, %v1724_v3  ;;  %v2142_v5 = vpop.f32.mrf.mxu2 }
 0x31b   :  { %v2351_v6 = vpop.f32.mrf.mxu3  ;;  %1771 = vmatmul.f32.gmra.mxu0 %v3884_v57 }
 0x31c   :  { %v2352_v7 = vadd.f32 %v2351_v6, %v2142_v5  ;;  %v3339_v8 = vadd.f32 %v4228_v59, %v1934_v4  ;;  %1980 = vmatmul.f32.gmra.mxu1 %v3885_v2 }
 0x31e   :  { %v3340_v9 = vadd.f32 %v4230_v63, %v2352_v7  ;;  %3595 = vst [vmem:[#allocation9 + $0x1b0] sm:$0xff] %v3339_v8  ;;  %v3898_v8 = vld [vmem:[#allocation3 + $0x240] sm:$0xff] }
 0x31f   :  { %2192 = vmatmul.f32.gmra.mxu2 %v3886_v10 }
 0x320   :  { %3596 = vst [vmem:[#allocation9 + $0x1b8] sm:$0xff] %v3340_v9  ;;  %2401 = vmatmul.f32.gmra.mxu3 %v3887_v11  ;;  %v1727_v12 = vpop.f32.mrf.mxu0  ;;  %v3899_v9 = vld [vmem:[#allocation3 + $0x248] sm:$0xff] }
 0x321   :  { %v1936_v13 = vpop.f32.mrf.mxu1 }
 0x322   :  { %v1937_v14 = vadd.f32 %v1936_v13, %v1727_v12  ;;  %v2145_v15 = vpop.f32.mrf.mxu2 }
 0x323   :  { %v2354_v16 = vpop.f32.mrf.mxu3  ;;  %1774 = vmatmul.f32.gmra.mxu0 %v3886_v10 }
 0x324   :  { %v2355_v17 = vadd.f32 %v2354_v16, %v2145_v15  ;;  %v3343_v18 = vadd.f32 %v4228_v59, %v1937_v14  ;;  %1983 = vmatmul.f32.gmra.mxu1 %v3887_v11 }
 0x326   :  { %v3344_v19 = vadd.f32 %v4230_v63, %v2355_v17  ;;  %3599 = vst [vmem:[#allocation9 + $0x1d0] sm:$0xff] %v3343_v18  ;;  %v3900_v18 = vld [vmem:[#allocation3 + $0x250] sm:$0xff] }
 0x327   :  { %2195 = vmatmul.f32.gmra.mxu2 %v3888_v20 }
 0x328   :  { %3600 = vst [vmem:[#allocation9 + $0x1d8] sm:$0xff] %v3344_v19  ;;  %2404 = vmatmul.f32.gmra.mxu3 %v3889_v21  ;;  %v1730_v22 = vpop.f32.mrf.mxu0  ;;  %v3901_v19 = vld [vmem:[#allocation3 + $0x258] sm:$0xff] }
 0x329   :  { %v1939_v23 = vpop.f32.mrf.mxu1 }
 0x32a   :  { %v1940_v24 = vadd.f32 %v1939_v23, %v1730_v22  ;;  %v2148_v25 = vpop.f32.mrf.mxu2 }
 0x32b   :  { %v2357_v26 = vpop.f32.mrf.mxu3  ;;  %1777 = vmatmul.f32.gmra.mxu0 %v3888_v20 }
 0x32c   :  { %v2358_v27 = vadd.f32 %v2357_v26, %v2148_v25  ;;  %v3347_v28 = vadd.f32 %v4228_v59, %v1940_v24  ;;  %1986 = vmatmul.f32.gmra.mxu1 %v3889_v21 }
 0x32e   :  { %v3348_v29 = vadd.f32 %v4230_v63, %v2358_v27  ;;  %3603 = vst [vmem:[#allocation9 + $0x1f0] sm:$0xff] %v3347_v28  ;;  %v3902_v28 = vld [vmem:[#allocation3 + $0x260] sm:$0xff] }
 0x32f   :  { %2198 = vmatmul.f32.gmra.mxu2 %v3890_v30 }
 0x330   :  { %3604 = vst [vmem:[#allocation9 + $0x1f8] sm:$0xff] %v3348_v29  ;;  %2407 = vmatmul.f32.gmra.mxu3 %v3891_v31  ;;  %v1733_v32 = vpop.f32.mrf.mxu0  ;;  %v3903_v29 = vld [vmem:[#allocation3 + $0x268] sm:$0xff] }
 0x331   :  { %v1942_v33 = vpop.f32.mrf.mxu1 }
 0x332   :  { %v1943_v34 = vadd.f32 %v1942_v33, %v1733_v32  ;;  %v2151_v35 = vpop.f32.mrf.mxu2 }
 0x333   :  { %v2360_v36 = vpop.f32.mrf.mxu3  ;;  %1780 = vmatmul.f32.gmra.mxu0 %v3890_v30 }
 0x334   :  { %v2361_v37 = vadd.f32 %v2360_v36, %v2151_v35  ;;  %v3351_v38 = vadd.f32 %v4228_v59, %v1943_v34  ;;  %1989 = vmatmul.f32.gmra.mxu1 %v3891_v31 }
 0x336   :  { %v3352_v39 = vadd.f32 %v4230_v63, %v2361_v37  ;;  %3607 = vst [vmem:[#allocation9 + $0x210] sm:$0xff] %v3351_v38  ;;  %v3904_v38 = vld [vmem:[#allocation3 + $0x270] sm:$0xff] }
 0x337   :  { %2201 = vmatmul.f32.gmra.mxu2 %v3892_v40 }
 0x338   :  { %3608 = vst [vmem:[#allocation9 + $0x218] sm:$0xff] %v3352_v39  ;;  %2410 = vmatmul.f32.gmra.mxu3 %v3893_v41  ;;  %v1736_v42 = vpop.f32.mrf.mxu0  ;;  %v3905_v39 = vld [vmem:[#allocation3 + $0x278] sm:$0xff] }
 0x339   :  { %v1945_v43 = vpop.f32.mrf.mxu1 }
 0x33a   :  { %v1946_v44 = vadd.f32 %v1945_v43, %v1736_v42  ;;  %v2154_v45 = vpop.f32.mrf.mxu2 }
 0x33b   :  { %v2363_v46 = vpop.f32.mrf.mxu3  ;;  %1783 = vmatmul.f32.gmra.mxu0 %v3892_v40 }
 0x33c   :  { %v2364_v47 = vadd.f32 %v2363_v46, %v2154_v45  ;;  %v3355_v48 = vadd.f32 %v4228_v59, %v1946_v44  ;;  %1992 = vmatmul.f32.gmra.mxu1 %v3893_v41 }
 0x33e   :  { %v3356_v49 = vadd.f32 %v4230_v63, %v2364_v47  ;;  %3611 = vst [vmem:[#allocation9 + $0x230] sm:$0xff] %v3355_v48  ;;  %v3906_v48 = vld [vmem:[#allocation3 + $0x280] sm:$0xff] }
 0x33f   :  { %2204 = vmatmul.f32.gmra.mxu2 %v3894_v50 }
 0x340   :  { %3612 = vst [vmem:[#allocation9 + $0x238] sm:$0xff] %v3356_v49  ;;  %2413 = vmatmul.f32.gmra.mxu3 %v3895_v51  ;;  %v1739_v52 = vpop.f32.mrf.mxu0  ;;  %v3907_v49 = vld [vmem:[#allocation3 + $0x288] sm:$0xff] }
 0x341   :  { %v1948_v53 = vpop.f32.mrf.mxu1 }
 0x342   :  { %v1949_v54 = vadd.f32 %v1948_v53, %v1739_v52  ;;  %v2157_v55 = vpop.f32.mrf.mxu2 }
 0x343   :  { %v2366_v56 = vpop.f32.mrf.mxu3  ;;  %1786 = vmatmul.f32.gmra.mxu0 %v3894_v50 }
 0x344   :  { %v2367_v58 = vadd.f32 %v2366_v56, %v2157_v55  ;;  %v3359_v61 = vadd.f32 %v4228_v59, %v1949_v54  ;;  %1995 = vmatmul.f32.gmra.mxu1 %v3895_v51 }
 0x346   :  { %v3360_v62 = vadd.f32 %v4230_v63, %v2367_v58  ;;  %3615 = vst [vmem:[#allocation9 + $0x250] sm:$0xff] %v3359_v61  ;;  %v3908_v61 = vld [vmem:[#allocation3 + $0x290] sm:$0xff] }
 0x347   :  { %2207 = vmatmul.f32.gmra.mxu2 %v3896_v0 }
 0x348   :  { %3616 = vst [vmem:[#allocation9 + $0x258] sm:$0xff] %v3360_v62  ;;  %2416 = vmatmul.f32.gmra.mxu3 %v3897_v1  ;;  %v1742_v57 = vpop.f32.mrf.mxu0  ;;  %v3909_v62 = vld [vmem:[#allocation3 + $0x298] sm:$0xff] }
 0x349   :  { %v1951_v2 = vpop.f32.mrf.mxu1 }
 0x34a   :  { %v1952_v3 = vadd.f32 %v1951_v2, %v1742_v57  ;;  %v2160_v60 = vpop.f32.mrf.mxu2 }
 0x34b   :  { %v2369_v4 = vpop.f32.mrf.mxu3  ;;  %1789 = vmatmul.f32.gmra.mxu0 %v3896_v0 }
 0x34c   :  { %v2370_v5 = vadd.f32 %v2369_v4, %v2160_v60  ;;  %v3363_v6 = vadd.f32 %v4228_v59, %v1952_v3  ;;  %1998 = vmatmul.f32.gmra.mxu1 %v3897_v1 }
 0x34e   :  { %v3364_v7 = vadd.f32 %v4230_v63, %v2370_v5  ;;  %3619 = vst [vmem:[#allocation9 + $0x270] sm:$0xff] %v3363_v6  ;;  %v3910_v6 = vld [vmem:[#allocation3 + $0x2a0] sm:$0xff] }
 0x34f   :  { %2210 = vmatmul.f32.gmra.mxu2 %v3898_v8 }
 0x350   :  { %3620 = vst [vmem:[#allocation9 + $0x278] sm:$0xff] %v3364_v7  ;;  %2419 = vmatmul.f32.gmra.mxu3 %v3899_v9  ;;  %v1745_v10 = vpop.f32.mrf.mxu0  ;;  %v3911_v7 = vld [vmem:[#allocation3 + $0x2a8] sm:$0xff] }
 0x351   :  { %v1954_v11 = vpop.f32.mrf.mxu1 }
 0x352   :  { %v1955_v12 = vadd.f32 %v1954_v11, %v1745_v10  ;;  %v2163_v13 = vpop.f32.mrf.mxu2 }
 0x353   :  { %v2372_v14 = vpop.f32.mrf.mxu3  ;;  %1792 = vmatmul.f32.gmra.mxu0 %v3898_v8 }
 0x354   :  { %v2373_v15 = vadd.f32 %v2372_v14, %v2163_v13  ;;  %v3367_v16 = vadd.f32 %v4228_v59, %v1955_v12  ;;  %2001 = vmatmul.f32.gmra.mxu1 %v3899_v9 }
 0x356   :  { %v3368_v17 = vadd.f32 %v4230_v63, %v2373_v15  ;;  %3623 = vst [vmem:[#allocation9 + $0x290] sm:$0xff] %v3367_v16  ;;  %v3912_v16 = vld [vmem:[#allocation3 + $0x2b0] sm:$0xff] }
 0x357   :  { %2213 = vmatmul.f32.gmra.mxu2 %v3900_v18 }
 0x358   :  { %3624 = vst [vmem:[#allocation9 + $0x298] sm:$0xff] %v3368_v17  ;;  %2422 = vmatmul.f32.gmra.mxu3 %v3901_v19  ;;  %v1748_v20 = vpop.f32.mrf.mxu0  ;;  %v3913_v17 = vld [vmem:[#allocation3 + $0x2b8] sm:$0xff] }
 0x359   :  { %v1957_v21 = vpop.f32.mrf.mxu1 }
 0x35a   :  { %v1958_v22 = vadd.f32 %v1957_v21, %v1748_v20  ;;  %v2166_v23 = vpop.f32.mrf.mxu2 }
 0x35b   :  { %v2375_v24 = vpop.f32.mrf.mxu3  ;;  %1795 = vmatmul.f32.gmra.mxu0 %v3900_v18 }
 0x35c   :  { %v2376_v25 = vadd.f32 %v2375_v24, %v2166_v23  ;;  %v3371_v26 = vadd.f32 %v4228_v59, %v1958_v22  ;;  %2004 = vmatmul.f32.gmra.mxu1 %v3901_v19 }
 0x35e   :  { %v3372_v27 = vadd.f32 %v4230_v63, %v2376_v25  ;;  %3627 = vst [vmem:[#allocation9 + $0x2b0] sm:$0xff] %v3371_v26  ;;  %v3914_v26 = vld [vmem:[#allocation3 + $0x2c0] sm:$0xff] }
 0x35f   :  { %2216 = vmatmul.f32.gmra.mxu2 %v3902_v28 }
 0x360   :  { %3628 = vst [vmem:[#allocation9 + $0x2b8] sm:$0xff] %v3372_v27  ;;  %2425 = vmatmul.f32.gmra.mxu3 %v3903_v29  ;;  %v1751_v30 = vpop.f32.mrf.mxu0  ;;  %v3915_v27 = vld [vmem:[#allocation3 + $0x2c8] sm:$0xff] }
 0x361   :  { %v1960_v31 = vpop.f32.mrf.mxu1 }
 0x362   :  { %v1961_v32 = vadd.f32 %v1960_v31, %v1751_v30  ;;  %v2169_v33 = vpop.f32.mrf.mxu2 }
 0x363   :  { %v2378_v34 = vpop.f32.mrf.mxu3  ;;  %1798 = vmatmul.f32.gmra.mxu0 %v3902_v28 }
 0x364   :  { %v2379_v35 = vadd.f32 %v2378_v34, %v2169_v33  ;;  %v3375_v36 = vadd.f32 %v4228_v59, %v1961_v32  ;;  %2007 = vmatmul.f32.gmra.mxu1 %v3903_v29 }
 0x366   :  { %v3376_v37 = vadd.f32 %v4230_v63, %v2379_v35  ;;  %3631 = vst [vmem:[#allocation9 + $0x2d0] sm:$0xff] %v3375_v36  ;;  %v3916_v36 = vld [vmem:[#allocation3 + $0x2d0] sm:$0xff] }
 0x367   :  { %2219 = vmatmul.f32.gmra.mxu2 %v3904_v38 }
 0x368   :  { %3632 = vst [vmem:[#allocation9 + $0x2d8] sm:$0xff] %v3376_v37  ;;  %2428 = vmatmul.f32.gmra.mxu3 %v3905_v39  ;;  %v1754_v40 = vpop.f32.mrf.mxu0  ;;  %v3917_v37 = vld [vmem:[#allocation3 + $0x2d8] sm:$0xff] }
 0x369   :  { %v1963_v41 = vpop.f32.mrf.mxu1 }
 0x36a   :  { %v1964_v42 = vadd.f32 %v1963_v41, %v1754_v40  ;;  %v2172_v43 = vpop.f32.mrf.mxu2 }
 0x36b   :  { %v2381_v44 = vpop.f32.mrf.mxu3  ;;  %1801 = vmatmul.f32.gmra.mxu0 %v3904_v38 }
 0x36c   :  { %v2382_v45 = vadd.f32 %v2381_v44, %v2172_v43  ;;  %v3379_v46 = vadd.f32 %v4228_v59, %v1964_v42  ;;  %2010 = vmatmul.f32.gmra.mxu1 %v3905_v39 }
 0x36e   :  { %v3380_v47 = vadd.f32 %v4230_v63, %v2382_v45  ;;  %3635 = vst [vmem:[#allocation9 + $0x2f0] sm:$0xff] %v3379_v46  ;;  %v3918_v46 = vld [vmem:[#allocation3 + $0x2e0] sm:$0xff] }
 0x36f   :  { %2222 = vmatmul.f32.gmra.mxu2 %v3906_v48 }
 0x370   :  { %3636 = vst [vmem:[#allocation9 + $0x2f8] sm:$0xff] %v3380_v47  ;;  %2431 = vmatmul.f32.gmra.mxu3 %v3907_v49  ;;  %v1757_v50 = vpop.f32.mrf.mxu0  ;;  %v3919_v47 = vld [vmem:[#allocation3 + $0x2e8] sm:$0xff] }
 0x371   :  { %v1966_v51 = vpop.f32.mrf.mxu1 }
 0x372   :  { %v1967_v52 = vadd.f32 %v1966_v51, %v1757_v50  ;;  %v2175_v53 = vpop.f32.mrf.mxu2 }
 0x373   :  { %v2384_v54 = vpop.f32.mrf.mxu3  ;;  %1804 = vmatmul.f32.gmra.mxu0 %v3906_v48 }
 0x374   :  { %v2385_v55 = vadd.f32 %v2384_v54, %v2175_v53  ;;  %v3383_v56 = vadd.f32 %v4228_v59, %v1967_v52  ;;  %2013 = vmatmul.f32.gmra.mxu1 %v3907_v49 }
 0x376   :  { %v3384_v58 = vadd.f32 %v4230_v63, %v2385_v55  ;;  %3639 = vst [vmem:[#allocation9 + $0x310] sm:$0xff] %v3383_v56  ;;  %v3920_v56 = vld [vmem:[#allocation3 + $0x2f0] sm:$0xff] }
 0x377   :  { %2225 = vmatmul.f32.gmra.mxu2 %v3908_v61 }
 0x378   :  { %3640 = vst [vmem:[#allocation9 + $0x318] sm:$0xff] %v3384_v58  ;;  %2434 = vmatmul.f32.gmra.mxu3 %v3909_v62  ;;  %v1760_v0 = vpop.f32.mrf.mxu0  ;;  %v3921_v58 = vld [vmem:[#allocation3 + $0x2f8] sm:$0xff] }
 0x379   :  { %v1969_v1 = vpop.f32.mrf.mxu1 }
 0x37a   :  { %v1970_v57 = vadd.f32 %v1969_v1, %v1760_v0  ;;  %v2178_v2 = vpop.f32.mrf.mxu2 }
 0x37b   :  { %v2387_v3 = vpop.f32.mrf.mxu3  ;;  %1807 = vmatmul.f32.gmra.mxu0 %v3908_v61 }
 0x37c   :  { %v2388_v60 = vadd.f32 %v2387_v3, %v2178_v2  ;;  %v3387_v4 = vadd.f32 %v4228_v59, %v1970_v57  ;;  %2016 = vmatmul.f32.gmra.mxu1 %v3909_v62 }
 0x37e   :  { %v3388_v5 = vadd.f32 %v4230_v63, %v2388_v60  ;;  %3643 = vst [vmem:[#allocation9 + $0x330] sm:$0xff] %v3387_v4  ;;  %v3922_v4 = vld [vmem:[#allocation3 + $0x300] sm:$0xff] }
 0x37f   :  { %2228 = vmatmul.f32.gmra.mxu2 %v3910_v6 }
 0x380   :  { %3644 = vst [vmem:[#allocation9 + $0x338] sm:$0xff] %v3388_v5  ;;  %2437 = vmatmul.f32.gmra.mxu3 %v3911_v7  ;;  %v1763_v8 = vpop.f32.mrf.mxu0  ;;  %v3923_v5 = vld [vmem:[#allocation3 + $0x308] sm:$0xff] }
 0x381   :  { %v1972_v9 = vpop.f32.mrf.mxu1 }
 0x382   :  { %v1973_v10 = vadd.f32 %v1972_v9, %v1763_v8  ;;  %v2181_v11 = vpop.f32.mrf.mxu2 }
 0x383   :  { %v2390_v12 = vpop.f32.mrf.mxu3  ;;  %1810 = vmatmul.f32.gmra.mxu0 %v3910_v6 }
 0x384   :  { %v2391_v13 = vadd.f32 %v2390_v12, %v2181_v11  ;;  %v3391_v14 = vadd.f32 %v4228_v59, %v1973_v10  ;;  %2019 = vmatmul.f32.gmra.mxu1 %v3911_v7 }
 0x386   :  { %v3392_v15 = vadd.f32 %v4230_v63, %v2391_v13  ;;  %3647 = vst [vmem:[#allocation9 + $0x350] sm:$0xff] %v3391_v14  ;;  %v3924_v14 = vld [vmem:[#allocation3 + $0x310] sm:$0xff] }
 0x387   :  { %2231 = vmatmul.f32.gmra.mxu2 %v3912_v16 }
 0x388   :  { %3648 = vst [vmem:[#allocation9 + $0x358] sm:$0xff] %v3392_v15  ;;  %2440 = vmatmul.f32.gmra.mxu3 %v3913_v17  ;;  %v1766_v18 = vpop.f32.mrf.mxu0  ;;  %v3925_v15 = vld [vmem:[#allocation3 + $0x318] sm:$0xff] }
 0x389   :  { %v1975_v19 = vpop.f32.mrf.mxu1 }
 0x38a   :  { %v1976_v20 = vadd.f32 %v1975_v19, %v1766_v18  ;;  %v2184_v21 = vpop.f32.mrf.mxu2 }
 0x38b   :  { %v2393_v22 = vpop.f32.mrf.mxu3  ;;  %1813 = vmatmul.f32.gmra.mxu0 %v3912_v16 }
 0x38c   :  { %v2394_v23 = vadd.f32 %v2393_v22, %v2184_v21  ;;  %v3395_v24 = vadd.f32 %v4228_v59, %v1976_v20  ;;  %2022 = vmatmul.f32.gmra.mxu1 %v3913_v17 }
 0x38e   :  { %v3396_v25 = vadd.f32 %v4230_v63, %v2394_v23  ;;  %3651 = vst [vmem:[#allocation9 + $0x370] sm:$0xff] %v3395_v24  ;;  %v3926_v24 = vld [vmem:[#allocation3 + $0x320] sm:$0xff] }
 0x38f   :  { %2234 = vmatmul.f32.gmra.mxu2 %v3914_v26 }
 0x390   :  { %3652 = vst [vmem:[#allocation9 + $0x378] sm:$0xff] %v3396_v25  ;;  %2443 = vmatmul.f32.gmra.mxu3 %v3915_v27  ;;  %v1769_v28 = vpop.f32.mrf.mxu0  ;;  %v3927_v25 = vld [vmem:[#allocation3 + $0x328] sm:$0xff] }
 0x391   :  { %v1978_v29 = vpop.f32.mrf.mxu1 }
 0x392   :  { %v1979_v30 = vadd.f32 %v1978_v29, %v1769_v28  ;;  %v2187_v31 = vpop.f32.mrf.mxu2 }
 0x393   :  { %v2396_v32 = vpop.f32.mrf.mxu3  ;;  %1816 = vmatmul.f32.gmra.mxu0 %v3914_v26 }
 0x394   :  { %v2397_v33 = vadd.f32 %v2396_v32, %v2187_v31  ;;  %v3399_v34 = vadd.f32 %v4228_v59, %v1979_v30  ;;  %2025 = vmatmul.f32.gmra.mxu1 %v3915_v27 }
 0x396   :  { %v3400_v35 = vadd.f32 %v4230_v63, %v2397_v33  ;;  %3655 = vst [vmem:[#allocation9 + $0x390] sm:$0xff] %v3399_v34  ;;  %v3928_v34 = vld [vmem:[#allocation3 + $0x330] sm:$0xff] }
 0x397   :  { %2237 = vmatmul.f32.gmra.mxu2 %v3916_v36 }
 0x398   :  { %3656 = vst [vmem:[#allocation9 + $0x398] sm:$0xff] %v3400_v35  ;;  %2446 = vmatmul.f32.gmra.mxu3 %v3917_v37  ;;  %v1772_v38 = vpop.f32.mrf.mxu0  ;;  %v3929_v35 = vld [vmem:[#allocation3 + $0x338] sm:$0xff] }
 0x399   :  { %v1981_v39 = vpop.f32.mrf.mxu1 }
 0x39a   :  { %v1982_v40 = vadd.f32 %v1981_v39, %v1772_v38  ;;  %v2190_v41 = vpop.f32.mrf.mxu2 }
 0x39b   :  { %v2399_v42 = vpop.f32.mrf.mxu3  ;;  %1819 = vmatmul.f32.gmra.mxu0 %v3916_v36 }
 0x39c   :  { %v2400_v43 = vadd.f32 %v2399_v42, %v2190_v41  ;;  %v3403_v44 = vadd.f32 %v4228_v59, %v1982_v40  ;;  %2028 = vmatmul.f32.gmra.mxu1 %v3917_v37 }
 0x39e   :  { %v3404_v45 = vadd.f32 %v4230_v63, %v2400_v43  ;;  %3659 = vst [vmem:[#allocation9 + $0x3b0] sm:$0xff] %v3403_v44  ;;  %v3930_v44 = vld [vmem:[#allocation3 + $0x340] sm:$0xff] }
 0x39f   :  { %2240 = vmatmul.f32.gmra.mxu2 %v3918_v46 }
 0x3a0   :  { %3660 = vst [vmem:[#allocation9 + $0x3b8] sm:$0xff] %v3404_v45  ;;  %2449 = vmatmul.f32.gmra.mxu3 %v3919_v47  ;;  %v1775_v48 = vpop.f32.mrf.mxu0  ;;  %v3931_v45 = vld [vmem:[#allocation3 + $0x348] sm:$0xff] }
 0x3a1   :  { %v1984_v49 = vpop.f32.mrf.mxu1 }
 0x3a2   :  { %v1985_v50 = vadd.f32 %v1984_v49, %v1775_v48  ;;  %v2193_v51 = vpop.f32.mrf.mxu2 }
 0x3a3   :  { %v2402_v52 = vpop.f32.mrf.mxu3  ;;  %1822 = vmatmul.f32.gmra.mxu0 %v3918_v46 }
 0x3a4   :  { %v2403_v53 = vadd.f32 %v2402_v52, %v2193_v51  ;;  %v3407_v54 = vadd.f32 %v4228_v59, %v1985_v50  ;;  %2031 = vmatmul.f32.gmra.mxu1 %v3919_v47 }
 0x3a6   :  { %v3408_v55 = vadd.f32 %v4230_v63, %v2403_v53  ;;  %3663 = vst [vmem:[#allocation9 + $0x3d0] sm:$0xff] %v3407_v54  ;;  %v3932_v54 = vld [vmem:[#allocation3 + $0x350] sm:$0xff] }
 0x3a7   :  { %2243 = vmatmul.f32.gmra.mxu2 %v3920_v56 }
 0x3a8   :  { %3664 = vst [vmem:[#allocation9 + $0x3d8] sm:$0xff] %v3408_v55  ;;  %2452 = vmatmul.f32.gmra.mxu3 %v3921_v58  ;;  %v1778_v61 = vpop.f32.mrf.mxu0  ;;  %v3933_v55 = vld [vmem:[#allocation3 + $0x358] sm:$0xff] }
 0x3a9   :  { %v1987_v62 = vpop.f32.mrf.mxu1 }
 0x3aa   :  { %v1988_v0 = vadd.f32 %v1987_v62, %v1778_v61  ;;  %v2196_v1 = vpop.f32.mrf.mxu2 }
 0x3ab   :  { %v2405_v57 = vpop.f32.mrf.mxu3  ;;  %1825 = vmatmul.f32.gmra.mxu0 %v3920_v56 }
 0x3ac   :  { %v2406_v2 = vadd.f32 %v2405_v57, %v2196_v1  ;;  %v3411_v3 = vadd.f32 %v4228_v59, %v1988_v0  ;;  %2034 = vmatmul.f32.gmra.mxu1 %v3921_v58 }
 0x3ae   :  { %v3412_v60 = vadd.f32 %v4230_v63, %v2406_v2  ;;  %3667 = vst [vmem:[#allocation9 + $0x3f0] sm:$0xff] %v3411_v3  ;;  %v3934_v3 = vld [vmem:[#allocation3 + $0x360] sm:$0xff] }
 0x3af   :  { %2246 = vmatmul.f32.gmra.mxu2 %v3922_v4 }
 0x3b0   :  { %3668 = vst [vmem:[#allocation9 + $0x3f8] sm:$0xff] %v3412_v60  ;;  %2455 = vmatmul.f32.gmra.mxu3 %v3923_v5  ;;  %v1781_v6 = vpop.f32.mrf.mxu0  ;;  %v3935_v60 = vld [vmem:[#allocation3 + $0x368] sm:$0xff] }
 0x3b1   :  { %v1990_v7 = vpop.f32.mrf.mxu1 }
 0x3b2   :  { %v1991_v8 = vadd.f32 %v1990_v7, %v1781_v6  ;;  %v2199_v9 = vpop.f32.mrf.mxu2 }
 0x3b3   :  { %v2408_v10 = vpop.f32.mrf.mxu3  ;;  %1828 = vmatmul.f32.gmra.mxu0 %v3922_v4 }
 0x3b4   :  { %v2409_v11 = vadd.f32 %v2408_v10, %v2199_v9  ;;  %v3415_v12 = vadd.f32 %v4228_v59, %v1991_v8  ;;  %2037 = vmatmul.f32.gmra.mxu1 %v3923_v5 }
 0x3b6   :  { %v3416_v13 = vadd.f32 %v4230_v63, %v2409_v11  ;;  %3671 = vst [vmem:[#allocation9 + $0x410] sm:$0xff] %v3415_v12  ;;  %v3936_v12 = vld [vmem:[#allocation3 + $0x370] sm:$0xff] }
 0x3b7   :  { %2249 = vmatmul.f32.gmra.mxu2 %v3924_v14 }
 0x3b8   :  { %3672 = vst [vmem:[#allocation9 + $0x418] sm:$0xff] %v3416_v13  ;;  %2458 = vmatmul.f32.gmra.mxu3 %v3925_v15  ;;  %v1784_v16 = vpop.f32.mrf.mxu0  ;;  %v3937_v13 = vld [vmem:[#allocation3 + $0x378] sm:$0xff] }
 0x3b9   :  { %v1993_v17 = vpop.f32.mrf.mxu1 }
 0x3ba   :  { %v1994_v18 = vadd.f32 %v1993_v17, %v1784_v16  ;;  %v2202_v19 = vpop.f32.mrf.mxu2 }
 0x3bb   :  { %v2411_v20 = vpop.f32.mrf.mxu3  ;;  %1831 = vmatmul.f32.gmra.mxu0 %v3924_v14 }
 0x3bc   :  { %v2412_v21 = vadd.f32 %v2411_v20, %v2202_v19  ;;  %v3419_v22 = vadd.f32 %v4228_v59, %v1994_v18  ;;  %2040 = vmatmul.f32.gmra.mxu1 %v3925_v15 }
 0x3be   :  { %v3420_v23 = vadd.f32 %v4230_v63, %v2412_v21  ;;  %3675 = vst [vmem:[#allocation9 + $0x430] sm:$0xff] %v3419_v22  ;;  %v3938_v22 = vld [vmem:[#allocation3 + $0x380] sm:$0xff] }
 0x3bf   :  { %2252 = vmatmul.f32.gmra.mxu2 %v3926_v24 }
 0x3c0   :  { %3676 = vst [vmem:[#allocation9 + $0x438] sm:$0xff] %v3420_v23  ;;  %2461 = vmatmul.f32.gmra.mxu3 %v3927_v25  ;;  %v1787_v26 = vpop.f32.mrf.mxu0  ;;  %v3939_v23 = vld [vmem:[#allocation3 + $0x388] sm:$0xff] }
 0x3c1   :  { %v1996_v27 = vpop.f32.mrf.mxu1 }
 0x3c2   :  { %v1997_v28 = vadd.f32 %v1996_v27, %v1787_v26  ;;  %v2205_v29 = vpop.f32.mrf.mxu2 }
 0x3c3   :  { %v2414_v30 = vpop.f32.mrf.mxu3  ;;  %1834 = vmatmul.f32.gmra.mxu0 %v3926_v24 }
 0x3c4   :  { %v2415_v31 = vadd.f32 %v2414_v30, %v2205_v29  ;;  %v3423_v32 = vadd.f32 %v4228_v59, %v1997_v28  ;;  %2043 = vmatmul.f32.gmra.mxu1 %v3927_v25 }
 0x3c6   :  { %v3424_v33 = vadd.f32 %v4230_v63, %v2415_v31  ;;  %3679 = vst [vmem:[#allocation9 + $0x450] sm:$0xff] %v3423_v32  ;;  %v3940_v32 = vld [vmem:[#allocation3 + $0x390] sm:$0xff] }
 0x3c7   :  { %2255 = vmatmul.f32.gmra.mxu2 %v3928_v34 }
 0x3c8   :  { %3680 = vst [vmem:[#allocation9 + $0x458] sm:$0xff] %v3424_v33  ;;  %2464 = vmatmul.f32.gmra.mxu3 %v3929_v35  ;;  %v1790_v36 = vpop.f32.mrf.mxu0  ;;  %v3941_v33 = vld [vmem:[#allocation3 + $0x398] sm:$0xff] }
 0x3c9   :  { %v1999_v37 = vpop.f32.mrf.mxu1 }
 0x3ca   :  { %v2000_v38 = vadd.f32 %v1999_v37, %v1790_v36  ;;  %v2208_v39 = vpop.f32.mrf.mxu2 }
 0x3cb   :  { %v2417_v40 = vpop.f32.mrf.mxu3  ;;  %1837 = vmatmul.f32.gmra.mxu0 %v3928_v34 }
 0x3cc   :  { %v2418_v41 = vadd.f32 %v2417_v40, %v2208_v39  ;;  %v3427_v42 = vadd.f32 %v4228_v59, %v2000_v38  ;;  %2046 = vmatmul.f32.gmra.mxu1 %v3929_v35 }
 0x3ce   :  { %v3428_v43 = vadd.f32 %v4230_v63, %v2418_v41  ;;  %3683 = vst [vmem:[#allocation9 + $0x470] sm:$0xff] %v3427_v42  ;;  %v3942_v42 = vld [vmem:[#allocation3 + $0x3a0] sm:$0xff] }
 0x3cf   :  { %2258 = vmatmul.f32.gmra.mxu2 %v3930_v44 }
 0x3d0   :  { %3684 = vst [vmem:[#allocation9 + $0x478] sm:$0xff] %v3428_v43  ;;  %2467 = vmatmul.f32.gmra.mxu3 %v3931_v45  ;;  %v1793_v46 = vpop.f32.mrf.mxu0  ;;  %v3943_v43 = vld [vmem:[#allocation3 + $0x3a8] sm:$0xff] }
 0x3d1   :  { %v2002_v47 = vpop.f32.mrf.mxu1 }
 0x3d2   :  { %v2003_v48 = vadd.f32 %v2002_v47, %v1793_v46  ;;  %v2211_v49 = vpop.f32.mrf.mxu2 }
 0x3d3   :  { %v2420_v50 = vpop.f32.mrf.mxu3  ;;  %1840 = vmatmul.f32.gmra.mxu0 %v3930_v44 }
 0x3d4   :  { %v2421_v51 = vadd.f32 %v2420_v50, %v2211_v49  ;;  %v3431_v52 = vadd.f32 %v4228_v59, %v2003_v48  ;;  %2049 = vmatmul.f32.gmra.mxu1 %v3931_v45 }
 0x3d6   :  { %v3432_v53 = vadd.f32 %v4230_v63, %v2421_v51  ;;  %3687 = vst [vmem:[#allocation9 + $0x490] sm:$0xff] %v3431_v52  ;;  %v3944_v52 = vld [vmem:[#allocation3 + $0x3b0] sm:$0xff] }
 0x3d7   :  { %2261 = vmatmul.f32.gmra.mxu2 %v3932_v54 }
 0x3d8   :  { %3688 = vst [vmem:[#allocation9 + $0x498] sm:$0xff] %v3432_v53  ;;  %2470 = vmatmul.f32.gmra.mxu3 %v3933_v55  ;;  %v1796_v56 = vpop.f32.mrf.mxu0  ;;  %v3945_v53 = vld [vmem:[#allocation3 + $0x3b8] sm:$0xff] }
 0x3d9   :  { %v2005_v58 = vpop.f32.mrf.mxu1 }
 0x3da   :  { %v2006_v61 = vadd.f32 %v2005_v58, %v1796_v56  ;;  %v2214_v62 = vpop.f32.mrf.mxu2 }
 0x3db   :  { %v2423_v0 = vpop.f32.mrf.mxu3  ;;  %1843 = vmatmul.f32.gmra.mxu0 %v3932_v54 }
 0x3dc   :  { %v2424_v1 = vadd.f32 %v2423_v0, %v2214_v62  ;;  %v3435_v57 = vadd.f32 %v4228_v59, %v2006_v61  ;;  %2052 = vmatmul.f32.gmra.mxu1 %v3933_v55 }
 0x3de   :  { %v3436_v2 = vadd.f32 %v4230_v63, %v2424_v1  ;;  %3691 = vst [vmem:[#allocation9 + $0x4b0] sm:$0xff] %v3435_v57  ;;  %v3946_v57 = vld [vmem:[#allocation3 + $0x3c0] sm:$0xff] }
 0x3df   :  { %2264 = vmatmul.f32.gmra.mxu2 %v3934_v3 }
 0x3e0   :  { %3692 = vst [vmem:[#allocation9 + $0x4b8] sm:$0xff] %v3436_v2  ;;  %2473 = vmatmul.f32.gmra.mxu3 %v3935_v60  ;;  %v1799_v4 = vpop.f32.mrf.mxu0  ;;  %v3947_v2 = vld [vmem:[#allocation3 + $0x3c8] sm:$0xff] }
 0x3e1   :  { %v2008_v5 = vpop.f32.mrf.mxu1 }
 0x3e2   :  { %v2009_v6 = vadd.f32 %v2008_v5, %v1799_v4  ;;  %v2217_v7 = vpop.f32.mrf.mxu2 }
 0x3e3   :  { %v2426_v8 = vpop.f32.mrf.mxu3  ;;  %1846 = vmatmul.f32.gmra.mxu0 %v3934_v3 }
 0x3e4   :  { %v2427_v9 = vadd.f32 %v2426_v8, %v2217_v7  ;;  %v3439_v10 = vadd.f32 %v4228_v59, %v2009_v6  ;;  %2055 = vmatmul.f32.gmra.mxu1 %v3935_v60 }
 0x3e6   :  { %v3440_v11 = vadd.f32 %v4230_v63, %v2427_v9  ;;  %3695 = vst [vmem:[#allocation9 + $0x4d0] sm:$0xff] %v3439_v10  ;;  %v3948_v10 = vld [vmem:[#allocation3 + $0x3d0] sm:$0xff] }
 0x3e7   :  { %2267 = vmatmul.f32.gmra.mxu2 %v3936_v12 }
 0x3e8   :  { %3696 = vst [vmem:[#allocation9 + $0x4d8] sm:$0xff] %v3440_v11  ;;  %2476 = vmatmul.f32.gmra.mxu3 %v3937_v13  ;;  %v1802_v14 = vpop.f32.mrf.mxu0  ;;  %v3949_v11 = vld [vmem:[#allocation3 + $0x3d8] sm:$0xff] }
 0x3e9   :  { %v2011_v15 = vpop.f32.mrf.mxu1 }
 0x3ea   :  { %v2012_v16 = vadd.f32 %v2011_v15, %v1802_v14  ;;  %v2220_v17 = vpop.f32.mrf.mxu2 }
 0x3eb   :  { %v2429_v18 = vpop.f32.mrf.mxu3  ;;  %1849 = vmatmul.f32.gmra.mxu0 %v3936_v12 }
 0x3ec   :  { %v2430_v19 = vadd.f32 %v2429_v18, %v2220_v17  ;;  %v3443_v20 = vadd.f32 %v4228_v59, %v2012_v16  ;;  %2058 = vmatmul.f32.gmra.mxu1 %v3937_v13 }
 0x3ee   :  { %v3444_v21 = vadd.f32 %v4230_v63, %v2430_v19  ;;  %3699 = vst [vmem:[#allocation9 + $0x4f0] sm:$0xff] %v3443_v20  ;;  %v3950_v20 = vld [vmem:[#allocation3 + $0x3e0] sm:$0xff] }
 0x3ef   :  { %2270 = vmatmul.f32.gmra.mxu2 %v3938_v22 }
 0x3f0   :  { %3700 = vst [vmem:[#allocation9 + $0x4f8] sm:$0xff] %v3444_v21  ;;  %2479 = vmatmul.f32.gmra.mxu3 %v3939_v23  ;;  %v1805_v24 = vpop.f32.mrf.mxu0  ;;  %v3951_v21 = vld [vmem:[#allocation3 + $0x3e8] sm:$0xff] }
 0x3f1   :  { %v2014_v25 = vpop.f32.mrf.mxu1 }
 0x3f2   :  { %v2015_v26 = vadd.f32 %v2014_v25, %v1805_v24  ;;  %v2223_v27 = vpop.f32.mrf.mxu2 }
 0x3f3   :  { %v2432_v28 = vpop.f32.mrf.mxu3  ;;  %1852 = vmatmul.f32.gmra.mxu0 %v3938_v22 }
 0x3f4   :  { %v2433_v29 = vadd.f32 %v2432_v28, %v2223_v27  ;;  %v3447_v30 = vadd.f32 %v4228_v59, %v2015_v26  ;;  %2061 = vmatmul.f32.gmra.mxu1 %v3939_v23 }
 0x3f6   :  { %v3448_v31 = vadd.f32 %v4230_v63, %v2433_v29  ;;  %3703 = vst [vmem:[#allocation9 + $0x510] sm:$0xff] %v3447_v30  ;;  %v3952_v30 = vld [vmem:[#allocation3 + $0x3f0] sm:$0xff] }
 0x3f7   :  { %2273 = vmatmul.f32.gmra.mxu2 %v3940_v32 }
 0x3f8   :  { %3704 = vst [vmem:[#allocation9 + $0x518] sm:$0xff] %v3448_v31  ;;  %2482 = vmatmul.f32.gmra.mxu3 %v3941_v33  ;;  %v1808_v34 = vpop.f32.mrf.mxu0  ;;  %v3953_v31 = vld [vmem:[#allocation3 + $0x3f8] sm:$0xff] }
 0x3f9   :  { %v2017_v35 = vpop.f32.mrf.mxu1 }
 0x3fa   :  { %v2018_v36 = vadd.f32 %v2017_v35, %v1808_v34  ;;  %v2226_v37 = vpop.f32.mrf.mxu2 }
 0x3fb   :  { %v2435_v38 = vpop.f32.mrf.mxu3  ;;  %1855 = vmatmul.f32.gmra.mxu0 %v3940_v32 }
 0x3fc   :  { %v2436_v39 = vadd.f32 %v2435_v38, %v2226_v37  ;;  %v3451_v40 = vadd.f32 %v4228_v59, %v2018_v36  ;;  %2064 = vmatmul.f32.gmra.mxu1 %v3941_v33 }
 0x3fe   :  { %v3452_v41 = vadd.f32 %v4230_v63, %v2436_v39  ;;  %3707 = vst [vmem:[#allocation9 + $0x530] sm:$0xff] %v3451_v40 }
 0x3ff   :  { %2276 = vmatmul.f32.gmra.mxu2 %v3942_v42 }
 0x400   :  { %3708 = vst [vmem:[#allocation9 + $0x538] sm:$0xff] %v3452_v41  ;;  %2485 = vmatmul.f32.gmra.mxu3 %v3943_v43  ;;  %v1811_v44 = vpop.f32.mrf.mxu0 }
 0x401   :  { %v2020_v45 = vpop.f32.mrf.mxu1 }
 0x402   :  { %v2021_v46 = vadd.f32 %v2020_v45, %v1811_v44  ;;  %v2229_v47 = vpop.f32.mrf.mxu2 }
 0x403   :  { %v2438_v48 = vpop.f32.mrf.mxu3  ;;  %1858 = vmatmul.f32.gmra.mxu0 %v3942_v42 }
 0x404   :  { %v2439_v49 = vadd.f32 %v2438_v48, %v2229_v47  ;;  %v3455_v50 = vadd.f32 %v4228_v59, %v2021_v46  ;;  %2067 = vmatmul.f32.gmra.mxu1 %v3943_v43 }
 0x406   :  { %v3456_v51 = vadd.f32 %v4230_v63, %v2439_v49  ;;  %3711 = vst [vmem:[#allocation9 + $0x550] sm:$0xff] %v3455_v50 }
 0x407   :  { %2279 = vmatmul.f32.gmra.mxu2 %v3944_v52 }
 0x408   :  { %3712 = vst [vmem:[#allocation9 + $0x558] sm:$0xff] %v3456_v51  ;;  %2488 = vmatmul.f32.gmra.mxu3 %v3945_v53  ;;  %v1814_v54 = vpop.f32.mrf.mxu0 }
 0x409   :  { %v2023_v55 = vpop.f32.mrf.mxu1 }
 0x40a   :  { %v2024_v56 = vadd.f32 %v2023_v55, %v1814_v54  ;;  %v2232_v58 = vpop.f32.mrf.mxu2 }
 0x40b   :  { %v2441_v61 = vpop.f32.mrf.mxu3  ;;  %1861 = vmatmul.f32.gmra.mxu0 %v3944_v52 }
 0x40c   :  { %v2442_v62 = vadd.f32 %v2441_v61, %v2232_v58  ;;  %v3459_v0 = vadd.f32 %v4228_v59, %v2024_v56  ;;  %2070 = vmatmul.f32.gmra.mxu1 %v3945_v53 }
 0x40e   :  { %v3460_v1 = vadd.f32 %v4230_v63, %v2442_v62  ;;  %3715 = vst [vmem:[#allocation9 + $0x570] sm:$0xff] %v3459_v0 }
 0x40f   :  { %2282 = vmatmul.f32.gmra.mxu2 %v3946_v57 }
 0x410   :  { %3716 = vst [vmem:[#allocation9 + $0x578] sm:$0xff] %v3460_v1  ;;  %2491 = vmatmul.f32.gmra.mxu3 %v3947_v2  ;;  %v1817_v3 = vpop.f32.mrf.mxu0 }
 0x411   :  { %v2026_v60 = vpop.f32.mrf.mxu1 }
 0x412   :  { %v2027_v4 = vadd.f32 %v2026_v60, %v1817_v3  ;;  %v2235_v5 = vpop.f32.mrf.mxu2 }
 0x413   :  { %v2444_v6 = vpop.f32.mrf.mxu3  ;;  %1864 = vmatmul.f32.gmra.mxu0 %v3946_v57 }
 0x414   :  { %v2445_v7 = vadd.f32 %v2444_v6, %v2235_v5  ;;  %v3463_v8 = vadd.f32 %v4228_v59, %v2027_v4  ;;  %2073 = vmatmul.f32.gmra.mxu1 %v3947_v2 }
 0x416   :  { %v3464_v9 = vadd.f32 %v4230_v63, %v2445_v7  ;;  %3719 = vst [vmem:[#allocation9 + $0x590] sm:$0xff] %v3463_v8 }
 0x417   :  { %2285 = vmatmul.f32.gmra.mxu2 %v3948_v10 }
 0x418   :  { %3720 = vst [vmem:[#allocation9 + $0x598] sm:$0xff] %v3464_v9  ;;  %2494 = vmatmul.f32.gmra.mxu3 %v3949_v11  ;;  %v1820_v12 = vpop.f32.mrf.mxu0 }
 0x419   :  { %v2029_v13 = vpop.f32.mrf.mxu1 }
 0x41a   :  { %v2030_v14 = vadd.f32 %v2029_v13, %v1820_v12  ;;  %v2238_v15 = vpop.f32.mrf.mxu2 }
 0x41b   :  { %v2447_v16 = vpop.f32.mrf.mxu3  ;;  %1867 = vmatmul.f32.gmra.mxu0 %v3948_v10 }
 0x41c   :  { %v2448_v17 = vadd.f32 %v2447_v16, %v2238_v15  ;;  %v3467_v18 = vadd.f32 %v4228_v59, %v2030_v14  ;;  %2076 = vmatmul.f32.gmra.mxu1 %v3949_v11 }
 0x41e   :  { %v3468_v19 = vadd.f32 %v4230_v63, %v2448_v17  ;;  %3723 = vst [vmem:[#allocation9 + $0x5b0] sm:$0xff] %v3467_v18 }
 0x41f   :  { %2288 = vmatmul.f32.gmra.mxu2 %v3950_v20 }
 0x420   :  { %3724 = vst [vmem:[#allocation9 + $0x5b8] sm:$0xff] %v3468_v19  ;;  %2497 = vmatmul.f32.gmra.mxu3 %v3951_v21  ;;  %v1823_v22 = vpop.f32.mrf.mxu0 }
 0x421   :  { %v2032_v23 = vpop.f32.mrf.mxu1 }
 0x422   :  { %v2033_v24 = vadd.f32 %v2032_v23, %v1823_v22  ;;  %v2241_v25 = vpop.f32.mrf.mxu2 }
 0x423   :  { %v2450_v26 = vpop.f32.mrf.mxu3  ;;  %1870 = vmatmul.f32.gmra.mxu0 %v3950_v20 }
 0x424   :  { %v2451_v27 = vadd.f32 %v2450_v26, %v2241_v25  ;;  %v3471_v28 = vadd.f32 %v4228_v59, %v2033_v24  ;;  %2079 = vmatmul.f32.gmra.mxu1 %v3951_v21 }
 0x426   :  { %v3472_v29 = vadd.f32 %v4230_v63, %v2451_v27  ;;  %3727 = vst [vmem:[#allocation9 + $0x5d0] sm:$0xff] %v3471_v28 }
 0x427   :  { %2291 = vmatmul.f32.gmra.mxu2 %v3952_v30 }
 0x428   :  { %3728 = vst [vmem:[#allocation9 + $0x5d8] sm:$0xff] %v3472_v29  ;;  %2500 = vmatmul.f32.gmra.mxu3 %v3953_v31  ;;  %v1826_v32 = vpop.f32.mrf.mxu0 }
 0x429   :  { %v2035_v33 = vpop.f32.mrf.mxu1 }
 0x42a   :  { %v2036_v34 = vadd.f32 %v2035_v33, %v1826_v32  ;;  %v2244_v35 = vpop.f32.mrf.mxu2 }
 0x42b   :  { %v2453_v36 = vpop.f32.mrf.mxu3  ;;  %1873 = vmatmul.f32.gmra.mxu0 %v3952_v30 }
 0x42c   :  { %v2454_v37 = vadd.f32 %v2453_v36, %v2244_v35  ;;  %v3475_v38 = vadd.f32 %v4228_v59, %v2036_v34  ;;  %2082 = vmatmul.f32.gmra.mxu1 %v3953_v31 }
 0x42e   :  { %v3476_v39 = vadd.f32 %v4230_v63, %v2454_v37  ;;  %3731 = vst [vmem:[#allocation9 + $0x5f0] sm:$0xff] %v3475_v38 }
 0x430   :  { %3732 = vst [vmem:[#allocation9 + $0x5f8] sm:$0xff] %v3476_v39  ;;  %v1829_v40 = vpop.f32.mrf.mxu0 }
 0x431   :  { %v2038_v41 = vpop.f32.mrf.mxu1 }
 0x432   :  { %v2039_v42 = vadd.f32 %v2038_v41, %v1829_v40  ;;  %v2247_v43 = vpop.f32.mrf.mxu2 }
 0x433   :  { %v2456_v44 = vpop.f32.mrf.mxu3 }
 0x434   :  { %v2457_v45 = vadd.f32 %v2456_v44, %v2247_v43  ;;  %v3479_v46 = vadd.f32 %v4228_v59, %v2039_v42 }
 0x436   :  { %v3480_v47 = vadd.f32 %v4230_v63, %v2457_v45  ;;  %3735 = vst [vmem:[#allocation9 + $0x610] sm:$0xff] %v3479_v46 }
 0x438   :  { %3736 = vst [vmem:[#allocation9 + $0x618] sm:$0xff] %v3480_v47  ;;  %v1832_v48 = vpop.f32.mrf.mxu0 }
 0x439   :  { %v2041_v49 = vpop.f32.mrf.mxu1 }
 0x43a   :  { %v2042_v50 = vadd.f32 %v2041_v49, %v1832_v48  ;;  %v2250_v51 = vpop.f32.mrf.mxu2 }
 0x43b   :  { %v2459_v52 = vpop.f32.mrf.mxu3 }
 0x43c   :  { %v2460_v53 = vadd.f32 %v2459_v52, %v2250_v51  ;;  %v3483_v54 = vadd.f32 %v4228_v59, %v2042_v50 }
 0x43e   :  { %v3484_v55 = vadd.f32 %v4230_v63, %v2460_v53  ;;  %3739 = vst [vmem:[#allocation9 + $0x630] sm:$0xff] %v3483_v54 }
 0x440   :  { %3740 = vst [vmem:[#allocation9 + $0x638] sm:$0xff] %v3484_v55  ;;  %v1835_v56 = vpop.f32.mrf.mxu0 }
 0x441   :  { %v2044_v58 = vpop.f32.mrf.mxu1 }
 0x442   :  { %v2045_v61 = vadd.f32 %v2044_v58, %v1835_v56  ;;  %v2253_v62 = vpop.f32.mrf.mxu2 }
 0x443   :  { %v2462_v0 = vpop.f32.mrf.mxu3 }
 0x444   :  { %v2463_v1 = vadd.f32 %v2462_v0, %v2253_v62  ;;  %v3487_v57 = vadd.f32 %v4228_v59, %v2045_v61 }
 0x446   :  { %v3488_v2 = vadd.f32 %v4230_v63, %v2463_v1  ;;  %3743 = vst [vmem:[#allocation9 + $0x650] sm:$0xff] %v3487_v57 }
 0x448   :  { %3744 = vst [vmem:[#allocation9 + $0x658] sm:$0xff] %v3488_v2  ;;  %v1838_v3 = vpop.f32.mrf.mxu0 }
 0x449   :  { %v2047_v60 = vpop.f32.mrf.mxu1 }
 0x44a   :  { %v2048_v4 = vadd.f32 %v2047_v60, %v1838_v3  ;;  %v2256_v5 = vpop.f32.mrf.mxu2 }
 0x44b   :  { %v2465_v6 = vpop.f32.mrf.mxu3 }
 0x44c   :  { %v2466_v7 = vadd.f32 %v2465_v6, %v2256_v5  ;;  %v3491_v8 = vadd.f32 %v4228_v59, %v2048_v4 }
 0x44e   :  { %v3492_v9 = vadd.f32 %v4230_v63, %v2466_v7  ;;  %3747 = vst [vmem:[#allocation9 + $0x670] sm:$0xff] %v3491_v8 }
 0x450   :  { %3748 = vst [vmem:[#allocation9 + $0x678] sm:$0xff] %v3492_v9  ;;  %v1841_v10 = vpop.f32.mrf.mxu0 }
 0x451   :  { %v2050_v11 = vpop.f32.mrf.mxu1 }
 0x452   :  { %v2051_v12 = vadd.f32 %v2050_v11, %v1841_v10  ;;  %v2259_v13 = vpop.f32.mrf.mxu2 }
 0x453   :  { %v2468_v14 = vpop.f32.mrf.mxu3 }
 0x454   :  { %v2469_v15 = vadd.f32 %v2468_v14, %v2259_v13  ;;  %v3495_v16 = vadd.f32 %v4228_v59, %v2051_v12 }
 0x456   :  { %v3496_v17 = vadd.f32 %v4230_v63, %v2469_v15  ;;  %3751 = vst [vmem:[#allocation9 + $0x690] sm:$0xff] %v3495_v16 }
 0x458   :  { %3752 = vst [vmem:[#allocation9 + $0x698] sm:$0xff] %v3496_v17  ;;  %v1844_v18 = vpop.f32.mrf.mxu0 }
 0x459   :  { %v2053_v19 = vpop.f32.mrf.mxu1 }
 0x45a   :  { %v2054_v20 = vadd.f32 %v2053_v19, %v1844_v18  ;;  %v2262_v21 = vpop.f32.mrf.mxu2 }
 0x45b   :  { %v2471_v22 = vpop.f32.mrf.mxu3 }
 0x45c   :  { %v2472_v23 = vadd.f32 %v2471_v22, %v2262_v21  ;;  %v3499_v24 = vadd.f32 %v4228_v59, %v2054_v20 }
 0x45e   :  { %v3500_v25 = vadd.f32 %v4230_v63, %v2472_v23  ;;  %3755 = vst [vmem:[#allocation9 + $0x6b0] sm:$0xff] %v3499_v24 }
 0x460   :  { %3756 = vst [vmem:[#allocation9 + $0x6b8] sm:$0xff] %v3500_v25  ;;  %v1847_v26 = vpop.f32.mrf.mxu0 }
 0x461   :  { %v2056_v27 = vpop.f32.mrf.mxu1 }
 0x462   :  { %v2057_v28 = vadd.f32 %v2056_v27, %v1847_v26  ;;  %v2265_v29 = vpop.f32.mrf.mxu2 }
 0x463   :  { %v2474_v30 = vpop.f32.mrf.mxu3 }
 0x464   :  { %v2475_v31 = vadd.f32 %v2474_v30, %v2265_v29  ;;  %v3503_v32 = vadd.f32 %v4228_v59, %v2057_v28 }
 0x466   :  { %v3504_v33 = vadd.f32 %v4230_v63, %v2475_v31  ;;  %3759 = vst [vmem:[#allocation9 + $0x6d0] sm:$0xff] %v3503_v32 }
 0x468   :  { %3760 = vst [vmem:[#allocation9 + $0x6d8] sm:$0xff] %v3504_v33  ;;  %v1850_v34 = vpop.f32.mrf.mxu0 }
 0x469   :  { %v2059_v35 = vpop.f32.mrf.mxu1 }
 0x46a   :  { %v2060_v36 = vadd.f32 %v2059_v35, %v1850_v34  ;;  %v2268_v37 = vpop.f32.mrf.mxu2 }
 0x46b   :  { %v2477_v38 = vpop.f32.mrf.mxu3 }
 0x46c   :  { %v2478_v39 = vadd.f32 %v2477_v38, %v2268_v37  ;;  %v3507_v40 = vadd.f32 %v4228_v59, %v2060_v36 }
 0x46e   :  { %v3508_v41 = vadd.f32 %v4230_v63, %v2478_v39  ;;  %3763 = vst [vmem:[#allocation9 + $0x6f0] sm:$0xff] %v3507_v40 }
 0x470   :  { %3764 = vst [vmem:[#allocation9 + $0x6f8] sm:$0xff] %v3508_v41  ;;  %v1853_v42 = vpop.f32.mrf.mxu0 }
 0x471   :  { %v2062_v43 = vpop.f32.mrf.mxu1 }
 0x472   :  { %v2063_v44 = vadd.f32 %v2062_v43, %v1853_v42  ;;  %v2271_v45 = vpop.f32.mrf.mxu2 }
 0x473   :  { %v2480_v46 = vpop.f32.mrf.mxu3 }
 0x474   :  { %v2481_v47 = vadd.f32 %v2480_v46, %v2271_v45  ;;  %v3511_v48 = vadd.f32 %v4228_v59, %v2063_v44 }
 0x476   :  { %v3512_v49 = vadd.f32 %v4230_v63, %v2481_v47  ;;  %3767 = vst [vmem:[#allocation9 + $0x710] sm:$0xff] %v3511_v48 }
 0x478   :  { %3768 = vst [vmem:[#allocation9 + $0x718] sm:$0xff] %v3512_v49  ;;  %v1856_v50 = vpop.f32.mrf.mxu0 }
 0x479   :  { %v2065_v51 = vpop.f32.mrf.mxu1 }
 0x47a   :  { %v2066_v52 = vadd.f32 %v2065_v51, %v1856_v50  ;;  %v2274_v53 = vpop.f32.mrf.mxu2 }
 0x47b   :  { %v2483_v54 = vpop.f32.mrf.mxu3 }
 0x47c   :  { %v2484_v55 = vadd.f32 %v2483_v54, %v2274_v53  ;;  %v3515_v56 = vadd.f32 %v4228_v59, %v2066_v52 }
 0x47e   :  { %v3516_v58 = vadd.f32 %v4230_v63, %v2484_v55  ;;  %3771 = vst [vmem:[#allocation9 + $0x730] sm:$0xff] %v3515_v56 }
 0x480   :  { %3772 = vst [vmem:[#allocation9 + $0x738] sm:$0xff] %v3516_v58  ;;  %v1859_v61 = vpop.f32.mrf.mxu0 }
 0x481   :  { %v2068_v62 = vpop.f32.mrf.mxu1 }
 0x482   :  { %v2069_v0 = vadd.f32 %v2068_v62, %v1859_v61  ;;  %v2277_v1 = vpop.f32.mrf.mxu2 }
 0x483   :  { %v2486_v57 = vpop.f32.mrf.mxu3 }
 0x484   :  { %v2487_v2 = vadd.f32 %v2486_v57, %v2277_v1  ;;  %v3519_v3 = vadd.f32 %v4228_v59, %v2069_v0 }
 0x486   :  { %v3520_v60 = vadd.f32 %v4230_v63, %v2487_v2  ;;  %3775 = vst [vmem:[#allocation9 + $0x750] sm:$0xff] %v3519_v3 }
 0x488   :  { %3776 = vst [vmem:[#allocation9 + $0x758] sm:$0xff] %v3520_v60  ;;  %v1862_v4 = vpop.f32.mrf.mxu0 }
 0x489   :  { %v2071_v5 = vpop.f32.mrf.mxu1 }
 0x48a   :  { %v2072_v6 = vadd.f32 %v2071_v5, %v1862_v4  ;;  %v2280_v7 = vpop.f32.mrf.mxu2 }
 0x48b   :  { %v2489_v8 = vpop.f32.mrf.mxu3 }
 0x48c   :  { %v2490_v9 = vadd.f32 %v2489_v8, %v2280_v7  ;;  %v3523_v10 = vadd.f32 %v4228_v59, %v2072_v6 }
 0x48e   :  { %v3524_v11 = vadd.f32 %v4230_v63, %v2490_v9  ;;  %3779 = vst [vmem:[#allocation9 + $0x770] sm:$0xff] %v3523_v10 }
 0x490   :  { %3780 = vst [vmem:[#allocation9 + $0x778] sm:$0xff] %v3524_v11  ;;  %v1865_v12 = vpop.f32.mrf.mxu0 }
 0x491   :  { %v2074_v13 = vpop.f32.mrf.mxu1 }
 0x492   :  { %v2075_v14 = vadd.f32 %v2074_v13, %v1865_v12  ;;  %v2283_v15 = vpop.f32.mrf.mxu2 }
 0x493   :  { %v2492_v16 = vpop.f32.mrf.mxu3 }
 0x494   :  { %v2493_v17 = vadd.f32 %v2492_v16, %v2283_v15  ;;  %v3527_v18 = vadd.f32 %v4228_v59, %v2075_v14 }
 0x496   :  { %v3528_v19 = vadd.f32 %v4230_v63, %v2493_v17  ;;  %3783 = vst [vmem:[#allocation9 + $0x790] sm:$0xff] %v3527_v18 }
 0x498   :  { %3784 = vst [vmem:[#allocation9 + $0x798] sm:$0xff] %v3528_v19  ;;  %v1868_v20 = vpop.f32.mrf.mxu0 }
 0x499   :  { %v2077_v21 = vpop.f32.mrf.mxu1 }
 0x49a   :  { %v2078_v22 = vadd.f32 %v2077_v21, %v1868_v20  ;;  %v2286_v23 = vpop.f32.mrf.mxu2 }
 0x49b   :  { %v2495_v24 = vpop.f32.mrf.mxu3 }
 0x49c   :  { %v2496_v25 = vadd.f32 %v2495_v24, %v2286_v23  ;;  %v3531_v26 = vadd.f32 %v4228_v59, %v2078_v22 }
 0x49e   :  { %v3532_v27 = vadd.f32 %v4230_v63, %v2496_v25  ;;  %3787 = vst [vmem:[#allocation9 + $0x7b0] sm:$0xff] %v3531_v26 }
 0x4a0   :  { %3788 = vst [vmem:[#allocation9 + $0x7b8] sm:$0xff] %v3532_v27  ;;  %v1871_v28 = vpop.f32.mrf.mxu0 }
 0x4a1   :  { %v2080_v29 = vpop.f32.mrf.mxu1 }
 0x4a2   :  { %v2081_v30 = vadd.f32 %v2080_v29, %v1871_v28  ;;  %v2289_v31 = vpop.f32.mrf.mxu2 }
 0x4a3   :  { %v2498_v32 = vpop.f32.mrf.mxu3 }
 0x4a4   :  { %v2499_v33 = vadd.f32 %v2498_v32, %v2289_v31  ;;  %v3535_v34 = vadd.f32 %v4228_v59, %v2081_v30 }
 0x4a6   :  { %v3536_v35 = vadd.f32 %v4230_v63, %v2499_v33  ;;  %3791 = vst [vmem:[#allocation9 + $0x7d0] sm:$0xff] %v3535_v34 }
 0x4a8   :  { %3792 = vst [vmem:[#allocation9 + $0x7d8] sm:$0xff] %v3536_v35  ;;  %v1874_v36 = vpop.f32.mrf.mxu0 }
 0x4a9   :  { %v2083_v37 = vpop.f32.mrf.mxu1 }
 0x4aa   :  { %v2084_v38 = vadd.f32 %v2083_v37, %v1874_v36  ;;  %v2292_v39 = vpop.f32.mrf.mxu2 }
 0x4ab   :  { %v2501_v40 = vpop.f32.mrf.mxu3 }
 0x4ac   :  { %v2502_v41 = vadd.f32 %v2501_v40, %v2292_v39  ;;  %v3539_v42 = vadd.f32 %v4228_v59, %v2084_v38 }
 0x4ae   :  { %v3540_v43 = vadd.f32 %v4230_v63, %v2502_v41  ;;  %3795 = vst [vmem:[#allocation9 + $0x7f0] sm:$0xff] %v3539_v42 }
 0x4b0   :  { %3796 = vst [vmem:[#allocation9 + $0x7f8] sm:$0xff] %v3540_v43 }
 0x4b1   :  { %3809 = dma.vmem_to_hbm [thread:$0]  %s3802_s29, 32768, %s3804_s5, [#allocation5], %s4057_s20, %s4057_s20, %s4058_s21  }
 0x4b2   :  { %4054 = dma.done.wait [#allocation5], 32768  }
 0x4b3   :  { %4055 = vsyncadd [#allocation5], 4294934528 }
 0x4b4   :  { %3814 = vsyncpa [#allocation4], 1 }
 0x4b5   :  { %3815 = vsyncpa [#allocation7], 1 }
 0x4b6   :  { %3816 = vsyncpa [#allocation5], 1 }

</bundles_post_ra>
